<compile_context>
chip_gen: v6e
topology: v6e:2x2x1
jax: 0.10.0
libtpu: 0.0.40
codegen_flags: <defaults>
</compile_context>

<pallas_src>
import functools
import math

import jax
import jax.numpy as jnp
from jax.experimental import pallas as pl
from jax.experimental.pallas import tpu as pltpu


# ----------------------------------------------------------------------------
# Hardware-aware VMEM budget (v5e/v6e: 128 MiB, 1 TC; v7x: 64 MiB/TC, 2 TCs)
# ----------------------------------------------------------------------------
def _vmem_budget():
    try:
        cap = int(pltpu.get_tpu_info().vmem_capacity_bytes)
    except Exception:  # conservative fallback = v7x per-core VMEM
        cap = 64 * 1024 * 1024
    num_tc = 2 if cap <= 64 * 1024 * 1024 else 1
    limit = min(cap * 3 // 4, 96 * 1024 * 1024)
    return limit, num_tc


_VMEM_LIMIT, _NUM_TC = _vmem_budget()


# ----------------------------------------------------------------------------
# In-kernel exact GELU (erf-based, matches torch.nn.functional.gelu default)
# ----------------------------------------------------------------------------
_INV_SQRT2 = 0.7071067811865476


def _erf_f32(x):
    """float32 erf via the Eigen/XLA rational polynomial (|err| ~1e-7)."""
    x = jnp.clip(x, -4.0, 4.0)
    x2 = x * x
    p = jnp.float32(-2.72614225801306e-10)
    p = p * x2 + jnp.float32(2.77068142495902e-08)
    p = p * x2 + jnp.float32(-2.10102402082508e-06)
    p = p * x2 + jnp.float32(-5.69250639462346e-05)
    p = p * x2 + jnp.float32(-7.34990630326855e-04)
    p = p * x2 + jnp.float32(-2.95459980854025e-03)
    p = p * x2 + jnp.float32(-1.60960333262415e-02)
    p = p * x
    q = jnp.float32(-1.45660718464996e-05)
    q = q * x2 + jnp.float32(-2.13374055278905e-04)
    q = q * x2 + jnp.float32(-1.68282697438203e-03)
    q = q * x2 + jnp.float32(-7.37332916720468e-03)
    q = q * x2 + jnp.float32(-1.42647390514189e-02)
    # divide on the EUP slot (pl.reciprocal) instead of a VALU expansion
    return p * pl.reciprocal(q)


def _gelu(x):
    """Exact (erf-based) GELU."""
    return 0.5 * x * (1.0 + _erf_f32(x * _INV_SQRT2))


# ----------------------------------------------------------------------------
# Pallas kernels
# ----------------------------------------------------------------------------
def _spectral_kernel(xr_ref, xi_ref, wr_ref, wi_ref, or_ref, oi_ref):
    """4-matmul complex product for one (Fourier corner, mode chunk) cell.

    Blocks: xr/xi (1, 1, B, Mb*Ci) f32, wr/wi (1, 1, Mb*Ci, Mb*Co) bf16
    block-diagonal, outputs (1, 1, B, Mb*Co) f32.
    """
    xr = xr_ref[0, 0].astype(jnp.bfloat16)
    xi = xi_ref[0, 0].astype(jnp.bfloat16)
    wr = wr_ref[0, 0]
    wi = wi_ref[0, 0]
    rr = jnp.dot(xr, wr, preferred_element_type=jnp.float32)
    ii = jnp.dot(xi, wi, preferred_element_type=jnp.float32)
    ri = jnp.dot(xr, wi, preferred_element_type=jnp.float32)
    ir = jnp.dot(xi, wr, preferred_element_type=jnp.float32)
    or_ref[0, 0] = rr - ii
    oi_ref[0, 0] = ri + ir


def _mix_gelu_kernel(x_ref, w_ref, b_ref, r_ref, o_ref):
    """o = gelu(x @ w + b + residual) — non-last FNO layer (channel-folded)."""
    xb = x_ref[...].astype(jnp.bfloat16)
    acc = jnp.dot(xb, w_ref[...], preferred_element_type=jnp.float32)
    o_ref[...] = _gelu(acc + b_ref[...] + r_ref[...]).astype(o_ref.dtype)


def _mix_head_kernel(x_ref, cw_ref, cb_ref, r_ref,
                     w1_ref, b1_ref, w2_ref, b2_ref, o_ref):
    """Last FNO layer (1x1 conv + residual, no GELU) fused with the head:
    fc1 -> erf-GELU -> fc2.  All intermediates stay in VMEM."""
    xb = x_ref[...].astype(jnp.bfloat16)
    t = jnp.dot(xb, cw_ref[...], preferred_element_type=jnp.float32)
    t = t + cb_ref[...] + r_ref[...]          # last FNO layer: no activation
    h = jnp.dot(t.astype(jnp.bfloat16), w1_ref[...],
                preferred_element_type=jnp.float32)
    h = _gelu(h + b1_ref[...])
    o = jnp.dot(h.astype(jnp.bfloat16), w2_ref[...],
                preferred_element_type=jnp.float32)
    o_ref[...] = (o + b2_ref[...]).astype(o_ref.dtype)


# ----------------------------------------------------------------------------
# Static sizing helpers (channel folding, mode chunking, row tiles)
# ----------------------------------------------------------------------------
def _round_up(n, m):
    return ((n + m - 1) // m) * m


def _fold_factor(ny, c):
    """Fold F consecutive y-pixels' channels into the lane axis so the mix /
    head kernels see a lane-dense (multiple-of-128) last dim."""
    if c % 128 == 0:
        return 1
    f = 128 // math.gcd(c, 128)
    if ny % f == 0 and f * c <= 1024:
        return f
    return 1


def _pick_mode_chunk(m_total, ci, co):
    """Mode-chunk size Mb: largest divisor of M whose double-buffered bf16
    weight footprint (wr + wi) fits ~40% of the VMEM budget, preferring >= 2
    chunks per corner so weight DMA overlaps compute."""
    budget = int(_VMEM_LIMIT * 0.4)

    def fits(mb):
        return 2 * (mb * ci) * (mb * co) * 2 * 2 <= budget  # 2 arrays, bf16, x2 buf

    divs = [d for d in range(1, m_total + 1) if m_total % d == 0]
    fitting = [d for d in divs if fits(d)] or [1]
    multi = [d for d in fitting if m_total // d >= 2]
    return max(multi) if multi else max(fitting)


def _pick_tm(n_rows, row_bytes, fixed_bytes):
    """Largest row tile (multiple of 8, dividing n_rows) fitting the VMEM
    budget.  Single-TC (v5e/v6e): take the largest tile.  Dual-TC (v7x):
    prefer >= 2 grid steps so 'parallel' splits across both cores."""
    budget = _VMEM_LIMIT // 2
    cands = [t for t in (4096, 2048, 1024, 512, 256, 128, 64, 32, 16, 8)
             if t <= n_rows and n_rows % t == 0
             and fixed_bytes + t * row_bytes <= budget]
    if not cands:
        return None
    if _NUM_TC > 1:
        multi = [t for t in cands if n_rows // t >= 2]
        if multi:
            return multi[0]
    return cands[0]


# ----------------------------------------------------------------------------
# Pallas wrappers
# ----------------------------------------------------------------------------
def spectral_mix(xr, xi, wr, wi):
    """(xr + i*xi) @ (wr + i*wi) per (corner, mode-chunk) grid cell.

    xr/xi: (2, n_chunks, B, Mb*Ci) f32; wr/wi: (2, n_chunks, Mb*Ci, Mb*Co)
    bf16 block-diagonal.  Returns (real, imag), each (2, n_chunks, B, Mb*Co).
    """
    c2, k, b, mci = xr.shape
    mco = wr.shape[3]
    act_spec = pl.BlockSpec((1, 1, b, mci), lambda c, j: (c, j, 0, 0))
    w_spec = pl.BlockSpec((1, 1, mci, mco), lambda c, j: (c, j, 0, 0))
    out_spec = pl.BlockSpec((1, 1, b, mco), lambda c, j: (c, j, 0, 0))
    return pl.pallas_call(
        _spectral_kernel,
        out_shape=(jax.ShapeDtypeStruct((c2, k, b, mco), jnp.float32),
                   jax.ShapeDtypeStruct((c2, k, b, mco), jnp.float32)),
        grid_spec=pltpu.PrefetchScalarGridSpec(
            num_scalar_prefetch=0,
            grid=(c2, k),
            in_specs=[act_spec, act_spec, w_spec, w_spec],
            out_specs=[out_spec, out_spec],
        ),
        compiler_params=pltpu.CompilerParams(
            dimension_semantics=("parallel", "parallel"),
            vmem_limit_bytes=_VMEM_LIMIT),
    )(xr, xi, wr, wi)


def pointwise_conv_gelu(x2d, w, b, r2d):
    """gelu(x @ w + b + residual), row-tiled; x2d/r2d: (N, FC) f32 folded
    lane-dense layout, w: (FC, FC) bf16 block-diagonal (kron(I_F, conv_w))."""
    n, fc = x2d.shape
    row_bytes = 3 * fc * 4 * 2                       # x, r, out tiles (double-buf)
    fixed = fc * fc * 2 * 2 + fc * 4 * 2             # weight (bf16) + bias
    tm = _pick_tm(n, row_bytes, fixed)
    if tm is None:                                   # ragged-N fallback: pad rows
        tm = min(128, _round_up(n, 8))
        np_ = _round_up(n, tm)
        x2d = jnp.pad(x2d, ((0, np_ - n), (0, 0)))
        r2d = jnp.pad(r2d, ((0, np_ - n), (0, 0)))
    else:
        np_ = n
    b2 = b.reshape(1, fc).astype(jnp.float32)
    out = pl.pallas_call(
        _mix_gelu_kernel,
        out_shape=jax.ShapeDtypeStruct((np_, fc), jnp.float32),
        grid_spec=pltpu.PrefetchScalarGridSpec(
            num_scalar_prefetch=0,
            grid=(np_ // tm,),
            in_specs=[
                pl.BlockSpec((tm, fc), lambda i: (i, 0)),
                pl.BlockSpec((fc, fc), lambda i: (0, 0)),
                pl.BlockSpec((1, fc), lambda i: (0, 0)),
                pl.BlockSpec((tm, fc), lambda i: (i, 0)),
            ],
            out_specs=pl.BlockSpec((tm, fc), lambda i: (i, 0)),
        ),
        compiler_params=pltpu.CompilerParams(
            dimension_semantics=("parallel",),
            vmem_limit_bytes=_VMEM_LIMIT),
    )(x2d, w, b2, r2d)
    return out[:n] if np_ != n else out


def fused_mix_head(x2d, cw, cb, r2d, w1, b1, w2, b2):
    """Last FNO layer + fc1 -> GELU -> fc2 head in ONE pallas_call.
    All weights are channel-folded block-diagonals in bf16."""
    n, fc = x2d.shape
    h = w1.shape[1]      # F*128
    co = w2.shape[1]     # F*2
    row_bytes = (2 * fc + co) * 4 * 2 + 2 * h * 4    # tiles + in-kernel intermediate
    fixed = (fc * fc + fc * h + h * co) * 2 * 2 + (fc + h + co) * 4 * 2
    tm = _pick_tm(n, row_bytes, fixed)
    if tm is None:
        tm = min(128, _round_up(n, 8))
        np_ = _round_up(n, tm)
        x2d = jnp.pad(x2d, ((0, np_ - n), (0, 0)))
        r2d = jnp.pad(r2d, ((0, np_ - n), (0, 0)))
    else:
        np_ = n
    cb2 = cb.reshape(1, fc).astype(jnp.float32)
    b1r = b1.reshape(1, h).astype(jnp.float32)
    b2r = b2.reshape(1, co).astype(jnp.float32)
    out = pl.pallas_call(
        _mix_head_kernel,
        out_shape=jax.ShapeDtypeStruct((np_, co), jnp.float32),
        grid_spec=pltpu.PrefetchScalarGridSpec(
            num_scalar_prefetch=0,
            grid=(np_ // tm,),
            in_specs=[
                pl.BlockSpec((tm, fc), lambda i: (i, 0)),
                pl.BlockSpec((fc, fc), lambda i: (0, 0)),
                pl.BlockSpec((1, fc), lambda i: (0, 0)),
                pl.BlockSpec((tm, fc), lambda i: (i, 0)),
                pl.BlockSpec((fc, h), lambda i: (0, 0)),
                pl.BlockSpec((1, h), lambda i: (0, 0)),
                pl.BlockSpec((h, co), lambda i: (0, 0)),
                pl.BlockSpec((1, co), lambda i: (0, 0)),
            ],
            out_specs=pl.BlockSpec((tm, co), lambda i: (i, 0)),
        ),
        compiler_params=pltpu.CompilerParams(
            dimension_semantics=("parallel",),
            vmem_limit_bytes=_VMEM_LIMIT),
    )(x2d, cw, cb2, r2d, w1, b1r, w2, b2r)
    return out[:n] if np_ != n else out


# ----------------------------------------------------------------------------
# Model pieces (plain-JAX glue around the Pallas kernels)
# ----------------------------------------------------------------------------
def spectral_conv2d(h, lp, m1, m2):
    """SpectralConv2d.forward in channel-last layout. h: (B, nx, ny, Ci)."""
    b, nx, ny, ci = h.shape
    nyh = ny // 2 + 1
    m_total = m1 * m2
    wr = lp["spec_wr"]                       # (2, n_chunks, Mb*Ci, Mb*Co) bf16
    n_chunks = wr.shape[1]
    mb = m_total // n_chunks
    co = wr.shape[3] // mb

    # TODO(synk): rfft2/irfft2 have no Pallas TPU equivalent; done in plain JAX.
    x_ft = jnp.fft.rfft2(h, axes=(1, 2))     # (B, nx, nyh, Ci) complex64

    corners = jnp.stack([x_ft[:, :m1, :m2, :],           # low-freq  (weights1)
                         x_ft[:, nx - m1:, :m2, :]])     # high-freq (weights2)
    corners = corners.reshape(2, b, n_chunks, mb, ci)
    corners = jnp.transpose(corners, (0, 2, 1, 3, 4)).reshape(2, n_chunks, b, mb * ci)

    o_r, o_i = spectral_mix(jnp.real(corners), jnp.imag(corners),
                            wr, lp["spec_wi"])
    out_c = jax.lax.complex(o_r, o_i)
    out_c = out_c.reshape(2, n_chunks, b, mb, co)
    out_c = jnp.transpose(out_c, (0, 2, 1, 3, 4)).reshape(2, b, m1, m2, co)

    if 2 * m1 <= nx and m2 <= nyh:
        # Assemble out_ft by pad + concat (no full-buffer scatter passes).
        top = jnp.pad(out_c[0], ((0, 0), (0, 0), (0, nyh - m2), (0, 0)))
        bot = jnp.pad(out_c[1], ((0, 0), (0, 0), (0, nyh - m2), (0, 0)))
        mid = jnp.zeros((b, nx - 2 * m1, nyh, co), jnp.complex64)
        out_ft = jnp.concatenate([top, mid, bot], axis=1)
    else:  # degenerate overlap case: keep exact PyTorch overwrite semantics
        out_ft = jnp.zeros((b, nx, nyh, co), jnp.complex64)
        out_ft = out_ft.at[:, :m1, :m2, :].set(out_c[0])
        out_ft = out_ft.at[:, nx - m1:, :m2, :].set(out_c[1])

    return jnp.fft.irfft2(out_ft, s=(nx, ny), axes=(1, 2)).astype(jnp.float32)


def fno_layer(h, lp, m1, m2, fold, last, head=None):
    """x1 = SpectralConv2d(h); x2 = 1x1 conv(h); gelu(x1+x2) unless last; the
    last layer is fused with the fc1/fc2 head."""
    b, nx, ny, c = h.shape
    x1 = spectral_conv2d(h, lp, m1, m2)
    fc = fold * c
    nf = b * nx * ny // fold
    x2d = h.reshape(nf, fc)                  # pure reshape (fold y into lanes)
    r2d = x1.reshape(nf, fc)
    if not last:
        y = pointwise_conv_gelu(x2d, lp["conv_w"], lp["conv_b"], r2d)
        return y.reshape(b, nx, ny, c)
    out = fused_mix_head(x2d, lp["conv_w"], lp["conv_b"], r2d,
                         head["fc1_w"], head["fc1_b"],
                         head["fc2_w"], head["fc2_b"])
    return out.reshape(b, nx, ny, 2)


def state_mo_prev_forward(params, x, modes1, modes2, width, L):
    """x: (B, width, nx, ny) float32 (NCHW, as in the PyTorch module)."""
    b, _, nx, ny = x.shape
    h = jnp.transpose(x, (0, 2, 3, 1))       # -> channel-last (B, nx, ny, width)
    fold = _fold_factor(ny, width)
    for l in range(L):
        last = (l == L - 1)
        h = fno_layer(h, params["layers"][l], modes1, modes2, fold,
                      last=last, head=params["head"] if last else None)
    # PyTorch's permute(0, 2, 3, 1) is a no-op here; head already applied.
    return h                                  # (B, nx, ny, 2)


# ----------------------------------------------------------------------------
# Deterministic parameter init (synthetic; shapes follow the PyTorch module).
# All kernel-side packing (block-diag spectral chunks, channel folding via
# kron(I_F, W), bf16 casts) is hoisted here.
# ----------------------------------------------------------------------------
def _pack_block_diag_chunks(w, mb):
    """(Ci, Co, m1, m2) per-mode weights -> (n_chunks, Mb*Ci, Mb*Co) block-diag."""
    ci, co, m1, m2 = w.shape
    n_chunks = (m1 * m2) // mb
    wt = jnp.transpose(w, (2, 3, 0, 1)).reshape(n_chunks, mb, ci, co)
    eye = jnp.eye(mb, dtype=w.dtype)
    bd = jnp.einsum("fg,kfio->kfigo", eye, wt)   # (n_chunks, Mb, Ci, Mb, Co)
    return bd.reshape(n_chunks, mb * ci, mb * co)


def init_params(key, modes1, modes2, width, L, ny):
    def nxt():
        nonlocal key
        key, sub = jax.random.split(key)
        return sub

    m_total = modes1 * modes2
    mb = _pick_mode_chunk(m_total, width, width)
    fold = _fold_factor(ny, width)
    eye_f = jnp.eye(fold, dtype=jnp.float32)

    scale = 1.0 / (width * width)
    fc1_w = 0.1 * jax.random.normal(nxt(), (width, 128), jnp.float32)
    fc1_b = 0.1 * jax.random.normal(nxt(), (128,), jnp.float32)
    fc2_w = 0.1 * jax.random.normal(nxt(), (128, 2), jnp.float32)
    fc2_b = 0.1 * jax.random.normal(nxt(), (2,), jnp.float32)
    params = {
        "head": {
            "fc1_w": jnp.kron(eye_f, fc1_w).astype(jnp.bfloat16),  # (F*w, F*128)
            "fc1_b": jnp.tile(fc1_b, fold),
            "fc2_w": jnp.kron(eye_f, fc2_w).astype(jnp.bfloat16),  # (F*128, F*2)
            "fc2_b": jnp.tile(fc2_b, fold),
        },
        "layers": [],
    }
    for _ in range(L):
        w1r = scale * jax.random.uniform(nxt(), (width, width, modes1, modes2), jnp.float32)
        w1i = scale * jax.random.uniform(nxt(), (width, width, modes1, modes2), jnp.float32)
        w2r = scale * jax.random.uniform(nxt(), (width, width, modes1, modes2), jnp.float32)
        w2i = scale * jax.random.uniform(nxt(), (width, width, modes1, modes2), jnp.float32)
        conv_w = 0.1 * jax.random.normal(nxt(), (width, width), jnp.float32)
        conv_b = 0.1 * jax.random.normal(nxt(), (width,), jnp.float32)
        lp = {
            "spec_wr": jnp.stack([_pack_block_diag_chunks(w1r, mb),
                                  _pack_block_diag_chunks(w2r, mb)]).astype(jnp.bfloat16),
            "spec_wi": jnp.stack([_pack_block_diag_chunks(w1i, mb),
                                  _pack_block_diag_chunks(w2i, mb)]).astype(jnp.bfloat16),
            # 1x1 Conv2d(width, width), channel-folded: kron(I_F, W), bf16
            "conv_w": jnp.kron(eye_f, conv_w).astype(jnp.bfloat16),
            "conv_b": jnp.tile(conv_b, fold),
        }
        params["layers"].append(lp)
    return params


# ----------------------------------------------------------------------------
if __name__ == "__main__":
    modes1, modes2, width, L = 4, 4, 8, 2
    batch, nx, ny = 2, 16, 16

    key = jax.random.PRNGKey(0)
    kx, kp = jax.random.split(key)

    # PyTorch input layout: (batch, hidden_channels=width, dim_x, dim_t)
    x_in = jax.random.normal(kx, (batch, width, nx, ny), jnp.float32)
    params = init_params(kp, modes1, modes2, width, L, ny)

    fwd = functools.partial(
        state_mo_prev_forward, modes1=modes1, modes2=modes2, width=width, L=L
    )
    out = jax.jit(fwd)(params, x_in)
    jax.block_until_ready(out)

    assert out.shape == (batch, nx, ny, 2)
    assert bool(jnp.all(jnp.isfinite(out)))
    print("KERNEL_OK")
</pallas_src>

<mosaic_0001>
module attributes {stable_mosaic.version = 11 : i64} {
  func.func @_spectral_kernel(%arg0: i32, %arg1: i32, %arg2: memref<1x1x2x64xf32, #tpu.memory_space<vmem>>, %arg3: memref<1x1x2x64xf32, #tpu.memory_space<vmem>>, %arg4: memref<1x1x64x64xbf16, #tpu.memory_space<vmem>>, %arg5: memref<1x1x64x64xbf16, #tpu.memory_space<vmem>>, %arg6: memref<1x1x2x64xf32, #tpu.memory_space<vmem>>, %arg7: memref<1x1x2x64xf32, #tpu.memory_space<vmem>>) attributes {dimension_semantics = [#tpu.dimension_semantics<parallel>, #tpu.dimension_semantics<parallel>], iteration_bounds = array<i64: 2, 2>, scalar_prefetch = 0 : i64, scratch_operands = 0 : i64, tpu.core_type = #tpu.core_type<tc>, window_params = [{transform_indices = @transform_0, window_bounds = array<i64: 1, 1, 2, 64>}, {transform_indices = @transform_1, window_bounds = array<i64: 1, 1, 2, 64>}, {transform_indices = @transform_2, window_bounds = array<i64: 1, 1, 64, 64>}, {transform_indices = @transform_3, window_bounds = array<i64: 1, 1, 64, 64>}, {transform_indices = @transform_4, window_bounds = array<i64: 1, 1, 2, 64>}, {transform_indices = @transform_5, window_bounds = array<i64: 1, 1, 2, 64>}]} {
    %c0 = arith.constant 0 : index
    %c0_0 = arith.constant 0 : index
    %c0_1 = arith.constant 0 : index
    %c0_2 = arith.constant 0 : index
    %0 = vector.load %arg2[%c0, %c0_0, %c0_1, %c0_2] : memref<1x1x2x64xf32, #tpu.memory_space<vmem>>, vector<1x1x2x64xf32>
    %1 = vector.shape_cast %0 : vector<1x1x2x64xf32> to vector<2x64xf32>
    %2 = arith.truncf %1 : vector<2x64xf32> to vector<2x64xbf16>
    %c0_3 = arith.constant 0 : index
    %c0_4 = arith.constant 0 : index
    %c0_5 = arith.constant 0 : index
    %c0_6 = arith.constant 0 : index
    %3 = vector.load %arg3[%c0_3, %c0_4, %c0_5, %c0_6] : memref<1x1x2x64xf32, #tpu.memory_space<vmem>>, vector<1x1x2x64xf32>
    %4 = vector.shape_cast %3 : vector<1x1x2x64xf32> to vector<2x64xf32>
    %5 = arith.truncf %4 : vector<2x64xf32> to vector<2x64xbf16>
    %c0_7 = arith.constant 0 : index
    %c0_8 = arith.constant 0 : index
    %c0_9 = arith.constant 0 : index
    %c0_10 = arith.constant 0 : index
    %6 = vector.load %arg4[%c0_7, %c0_8, %c0_9, %c0_10] : memref<1x1x64x64xbf16, #tpu.memory_space<vmem>>, vector<1x1x64x64xbf16>
    %7 = vector.shape_cast %6 : vector<1x1x64x64xbf16> to vector<64x64xbf16>
    %c0_11 = arith.constant 0 : index
    %c0_12 = arith.constant 0 : index
    %c0_13 = arith.constant 0 : index
    %c0_14 = arith.constant 0 : index
    %8 = vector.load %arg5[%c0_11, %c0_12, %c0_13, %c0_14] : memref<1x1x64x64xbf16, #tpu.memory_space<vmem>>, vector<1x1x64x64xbf16>
    %9 = vector.shape_cast %8 : vector<1x1x64x64xbf16> to vector<64x64xbf16>
    %cst = arith.constant dense<0.000000e+00> : vector<2x64xf32>
    %10 = tpu.matmul %2, %7, %cst {dimension_numbers = #tpu.dot_dimension_numbers<[1], [0], [0], [1], [0, 0, 1, 1], [], []>} : vector<2x64xbf16>, vector<64x64xbf16>, vector<2x64xf32> -> vector<2x64xf32>
    %cst_15 = arith.constant dense<0.000000e+00> : vector<2x64xf32>
    %11 = tpu.matmul %5, %9, %cst_15 {dimension_numbers = #tpu.dot_dimension_numbers<[1], [0], [0], [1], [0, 0, 1, 1], [], []>} : vector<2x64xbf16>, vector<64x64xbf16>, vector<2x64xf32> -> vector<2x64xf32>
    %cst_16 = arith.constant dense<0.000000e+00> : vector<2x64xf32>
    %12 = tpu.matmul %2, %9, %cst_16 {dimension_numbers = #tpu.dot_dimension_numbers<[1], [0], [0], [1], [0, 0, 1, 1], [], []>} : vector<2x64xbf16>, vector<64x64xbf16>, vector<2x64xf32> -> vector<2x64xf32>
    %cst_17 = arith.constant dense<0.000000e+00> : vector<2x64xf32>
    %13 = tpu.matmul %5, %7, %cst_17 {dimension_numbers = #tpu.dot_dimension_numbers<[1], [0], [0], [1], [0, 0, 1, 1], [], []>} : vector<2x64xbf16>, vector<64x64xbf16>, vector<2x64xf32> -> vector<2x64xf32>
    %14 = arith.subf %10, %11 : vector<2x64xf32>
    %c0_18 = arith.constant 0 : index
    %c0_19 = arith.constant 0 : index
    %c0_20 = arith.constant 0 : index
    %c0_21 = arith.constant 0 : index
    %15 = vector.load %arg6[%c0_18, %c0_19, %c0_20, %c0_21] : memref<1x1x2x64xf32, #tpu.memory_space<vmem>>, vector<1x1x2x64xf32>
    %16 = vector.shape_cast %15 : vector<1x1x2x64xf32> to vector<2x64xf32>
    %17 = vector.shape_cast %14 : vector<2x64xf32> to vector<1x1x2x64xf32>
    tpu.vector_store %arg6[%c0_18, %c0_19, %c0_20, %c0_21], %17 {strides = array<i32>} : memref<1x1x2x64xf32, #tpu.memory_space<vmem>>, vector<1x1x2x64xf32>,
    %18 = arith.addf %12, %13 : vector<2x64xf32>
    %c0_22 = arith.constant 0 : index
    %c0_23 = arith.constant 0 : index
    %c0_24 = arith.constant 0 : index
    %c0_25 = arith.constant 0 : index
    %19 = vector.load %arg7[%c0_22, %c0_23, %c0_24, %c0_25] : memref<1x1x2x64xf32, #tpu.memory_space<vmem>>, vector<1x1x2x64xf32>
    %20 = vector.shape_cast %19 : vector<1x1x2x64xf32> to vector<2x64xf32>
    %21 = vector.shape_cast %18 : vector<2x64xf32> to vector<1x1x2x64xf32>
    tpu.vector_store %arg7[%c0_22, %c0_23, %c0_24, %c0_25], %21 {strides = array<i32>} : memref<1x1x2x64xf32, #tpu.memory_space<vmem>>, vector<1x1x2x64xf32>,
    return
  }
  func.func @transform_0(%arg0: i32, %arg1: i32) -> (i32, i32, i32, i32) {
    %c0_i32 = arith.constant 0 : i32
    %c0_i32_0 = arith.constant 0 : i32
    %c0_i32_1 = arith.constant 0 : i32
    return %arg0, %arg1, %c0_i32, %c0_i32_0 : i32, i32, i32, i32
  }
  func.func @transform_1(%arg0: i32, %arg1: i32) -> (i32, i32, i32, i32) {
    %c0_i32 = arith.constant 0 : i32
    %c0_i32_0 = arith.constant 0 : i32
    %c0_i32_1 = arith.constant 0 : i32
    return %arg0, %arg1, %c0_i32, %c0_i32_0 : i32, i32, i32, i32
  }
  func.func @transform_2(%arg0: i32, %arg1: i32) -> (i32, i32, i32, i32) {
    %c0_i32 = arith.constant 0 : i32
    %c0_i32_0 = arith.constant 0 : i32
    %c0_i32_1 = arith.constant 0 : i32
    return %arg0, %arg1, %c0_i32, %c0_i32_0 : i32, i32, i32, i32
  }
  func.func @transform_3(%arg0: i32, %arg1: i32) -> (i32, i32, i32, i32) {
    %c0_i32 = arith.constant 0 : i32
    %c0_i32_0 = arith.constant 0 : i32
    %c0_i32_1 = arith.constant 0 : i32
    return %arg0, %arg1, %c0_i32, %c0_i32_0 : i32, i32, i32, i32
  }
  func.func @transform_4(%arg0: i32, %arg1: i32) -> (i32, i32, i32, i32) {
    %c0_i32 = arith.constant 0 : i32
    %c0_i32_0 = arith.constant 0 : i32
    %c0_i32_1 = arith.constant 0 : i32
    return %arg0, %arg1, %c0_i32, %c0_i32_0 : i32, i32, i32, i32
  }
  func.func @transform_5(%arg0: i32, %arg1: i32) -> (i32, i32, i32, i32) {
    %c0_i32 = arith.constant 0 : i32
    %c0_i32_0 = arith.constant 0 : i32
    %c0_i32_1 = arith.constant 0 : i32
    return %arg0, %arg1, %c0_i32, %c0_i32_0 : i32, i32, i32, i32
  }
}

module attributes {stable_mosaic.version = 11 : i64} {
  func.func @_mix_gelu_kernel(%arg0: i32, %arg1: memref<16x128xf32, #tpu.memory_space<vmem>>, %arg2: memref<128x128xbf16, #tpu.memory_space<vmem>>, %arg3: memref<1x128xf32, #tpu.memory_space<vmem>>, %arg4: memref<16x128xf32, #tpu.memory_space<vmem>>, %arg5: memref<16x128xf32, #tpu.memory_space<vmem>>) attributes {dimension_semantics = [#tpu.dimension_semantics<parallel>], iteration_bounds = array<i64: 2>, scalar_prefetch = 0 : i64, scratch_operands = 0 : i64, tpu.core_type = #tpu.core_type<tc>, window_params = [{transform_indices = @transform_0, window_bounds = array<i64: 16, 128>}, {pipeline_mode = #tpu.pipeline_mode<synchronous>, transform_indices = @transform_1, window_bounds = array<i64: 128, 128>}, {pipeline_mode = #tpu.pipeline_mode<synchronous>, transform_indices = @transform_2, window_bounds = array<i64: 1, 128>}, {transform_indices = @transform_3, window_bounds = array<i64: 16, 128>}, {transform_indices = @transform_4, window_bounds = array<i64: 16, 128>}]} {
    %c0 = arith.constant 0 : index
    %c0_0 = arith.constant 0 : index
    %0 = vector.load %arg1[%c0, %c0_0] : memref<16x128xf32, #tpu.memory_space<vmem>>, vector<16x128xf32>
    %1 = arith.truncf %0 : vector<16x128xf32> to vector<16x128xbf16>
    %c0_1 = arith.constant 0 : index
    %c0_2 = arith.constant 0 : index
    %2 = vector.load %arg2[%c0_1, %c0_2] : memref<128x128xbf16, #tpu.memory_space<vmem>>, vector<128x128xbf16>
    %cst = arith.constant dense<0.000000e+00> : vector<16x128xf32>
    %3 = tpu.matmul %1, %2, %cst {dimension_numbers = #tpu.dot_dimension_numbers<[1], [0], [0], [1], [0, 0, 1, 1], [], []>} : vector<16x128xbf16>, vector<128x128xbf16>, vector<16x128xf32> -> vector<16x128xf32>
    %c0_3 = arith.constant 0 : index
    %c0_4 = arith.constant 0 : index
    %4 = vector.load %arg3[%c0_3, %c0_4] : memref<1x128xf32, #tpu.memory_space<vmem>>, vector<1x128xf32>
    %5 = vector.broadcast %4 : vector<1x128xf32> to vector<16x128xf32>
    %6 = arith.addf %3, %5 : vector<16x128xf32>
    %c0_5 = arith.constant 0 : index
    %c0_6 = arith.constant 0 : index
    %7 = vector.load %arg4[%c0_5, %c0_6] : memref<16x128xf32, #tpu.memory_space<vmem>>, vector<16x128xf32>
    %8 = arith.addf %6, %7 : vector<16x128xf32>
    %cst_7 = arith.constant 5.000000e-01 : f32
    %9 = vector.broadcast %cst_7 : f32 to vector<16x128xf32>
    %10 = arith.mulf %9, %8 : vector<16x128xf32>
    %cst_8 = arith.constant 0.707106769 : f32
    %11 = vector.broadcast %cst_8 : f32 to vector<16x128xf32>
    %12 = arith.mulf %8, %11 : vector<16x128xf32>
    %cst_9 = arith.constant -4.000000e+00 : f32
    %cst_10 = arith.constant 4.000000e+00 : f32
    %13 = vector.broadcast %cst_9 : f32 to vector<16x128xf32>
    %14 = arith.maximumf %13, %12 : vector<16x128xf32>
    %15 = vector.broadcast %cst_10 : f32 to vector<16x128xf32>
    %16 = arith.minimumf %15, %14 : vector<16x128xf32>
    %17 = arith.mulf %16, %16 : vector<16x128xf32>
    %cst_11 = arith.constant -2.72614237E-10 : f32
    %18 = vector.broadcast %cst_11 : f32 to vector<16x128xf32>
    %19 = arith.mulf %18, %17 : vector<16x128xf32>
    %cst_12 = arith.constant 2.77068146E-8 : f32
    %20 = vector.broadcast %cst_12 : f32 to vector<16x128xf32>
    %21 = arith.addf %19, %20 : vector<16x128xf32>
    %22 = arith.mulf %21, %17 : vector<16x128xf32>
    %cst_13 = arith.constant -2.10102394E-6 : f32
    %23 = vector.broadcast %cst_13 : f32 to vector<16x128xf32>
    %24 = arith.addf %22, %23 : vector<16x128xf32>
    %25 = arith.mulf %24, %17 : vector<16x128xf32>
    %cst_14 = arith.constant -5.69250624E-5 : f32
    %26 = vector.broadcast %cst_14 : f32 to vector<16x128xf32>
    %27 = arith.addf %25, %26 : vector<16x128xf32>
    %28 = arith.mulf %27, %17 : vector<16x128xf32>
    %cst_15 = arith.constant -7.34990637E-4 : f32
    %29 = vector.broadcast %cst_15 : f32 to vector<16x128xf32>
    %30 = arith.addf %28, %29 : vector<16x128xf32>
    %31 = arith.mulf %30, %17 : vector<16x128xf32>
    %cst_16 = arith.constant -2.954600e-03 : f32
    %32 = vector.broadcast %cst_16 : f32 to vector<16x128xf32>
    %33 = arith.addf %31, %32 : vector<16x128xf32>
    %34 = arith.mulf %33, %17 : vector<16x128xf32>
    %cst_17 = arith.constant -0.0160960332 : f32
    %35 = vector.broadcast %cst_17 : f32 to vector<16x128xf32>
    %36 = arith.addf %34, %35 : vector<16x128xf32>
    %37 = arith.mulf %36, %16 : vector<16x128xf32>
    %cst_18 = arith.constant -1.45660715E-5 : f32
    %38 = vector.broadcast %cst_18 : f32 to vector<16x128xf32>
    %39 = arith.mulf %38, %17 : vector<16x128xf32>
    %cst_19 = arith.constant -2.13374049E-4 : f32
    %40 = vector.broadcast %cst_19 : f32 to vector<16x128xf32>
    %41 = arith.addf %39, %40 : vector<16x128xf32>
    %42 = arith.mulf %41, %17 : vector<16x128xf32>
    %cst_20 = arith.constant -0.00168282702 : f32
    %43 = vector.broadcast %cst_20 : f32 to vector<16x128xf32>
    %44 = arith.addf %42, %43 : vector<16x128xf32>
    %45 = arith.mulf %44, %17 : vector<16x128xf32>
    %cst_21 = arith.constant -0.00737332925 : f32
    %46 = vector.broadcast %cst_21 : f32 to vector<16x128xf32>
    %47 = arith.addf %45, %46 : vector<16x128xf32>
    %48 = arith.mulf %47, %17 : vector<16x128xf32>
    %cst_22 = arith.constant -0.0142647391 : f32
    %49 = vector.broadcast %cst_22 : f32 to vector<16x128xf32>
    %50 = arith.addf %48, %49 : vector<16x128xf32>
    %51 = tpu.reciprocal %50 : vector<16x128xf32> -> vector<16x128xf32>
    %52 = arith.mulf %37, %51 : vector<16x128xf32>
    %cst_23 = arith.constant 1.000000e+00 : f32
    %53 = vector.broadcast %cst_23 : f32 to vector<16x128xf32>
    %54 = arith.addf %53, %52 : vector<16x128xf32>
    %55 = arith.mulf %10, %54 : vector<16x128xf32>
    %c0_24 = arith.constant 0 : index
    %c0_25 = arith.constant 0 : index
    %56 = vector.load %arg5[%c0_24, %c0_25] : memref<16x128xf32, #tpu.memory_space<vmem>>, vector<16x128xf32>
    tpu.vector_store %arg5[%c0_24, %c0_25], %55 {strides = array<i32>} : memref<16x128xf32, #tpu.memory_space<vmem>>, vector<16x128xf32>,
    return
  }
  func.func @transform_0(%arg0: i32) -> (i32, i32) {
    %c0_i32 = arith.constant 0 : i32
    %c0_i32_0 = arith.constant 0 : i32
    return %arg0, %c0_i32 : i32, i32
  }
  func.func @transform_1(%arg0: i32) -> (i32, i32) {
    %c0_i32 = arith.constant 0 : i32
    %c0_i32_0 = arith.constant 0 : i32
    %c0_i32_1 = arith.constant 0 : i32
    return %c0_i32, %c0_i32_0 : i32, i32
  }
  func.func @transform_2(%arg0: i32) -> (i32, i32) {
    %c0_i32 = arith.constant 0 : i32
    %c0_i32_0 = arith.constant 0 : i32
    %c0_i32_1 = arith.constant 0 : i32
    return %c0_i32, %c0_i32_0 : i32, i32
  }
  func.func @transform_3(%arg0: i32) -> (i32, i32) {
    %c0_i32 = arith.constant 0 : i32
    %c0_i32_0 = arith.constant 0 : i32
    return %arg0, %c0_i32 : i32, i32
  }
  func.func @transform_4(%arg0: i32) -> (i32, i32) {
    %c0_i32 = arith.constant 0 : i32
    %c0_i32_0 = arith.constant 0 : i32
    return %arg0, %c0_i32 : i32, i32
  }
}

module attributes {stable_mosaic.version = 11 : i64} {
  func.func @_mix_head_kernel(%arg0: i32, %arg1: memref<16x128xf32, #tpu.memory_space<vmem>>, %arg2: memref<128x128xbf16, #tpu.memory_space<vmem>>, %arg3: memref<1x128xf32, #tpu.memory_space<vmem>>, %arg4: memref<16x128xf32, #tpu.memory_space<vmem>>, %arg5: memref<128x2048xbf16, #tpu.memory_space<vmem>>, %arg6: memref<1x2048xf32, #tpu.memory_space<vmem>>, %arg7: memref<2048x32xbf16, #tpu.memory_space<vmem>>, %arg8: memref<1x32xf32, #tpu.memory_space<vmem>>, %arg9: memref<16x32xf32, #tpu.memory_space<vmem>>) attributes {dimension_semantics = [#tpu.dimension_semantics<parallel>], iteration_bounds = array<i64: 2>, scalar_prefetch = 0 : i64, scratch_operands = 0 : i64, tpu.core_type = #tpu.core_type<tc>, window_params = [{transform_indices = @transform_0, window_bounds = array<i64: 16, 128>}, {pipeline_mode = #tpu.pipeline_mode<synchronous>, transform_indices = @transform_1, window_bounds = array<i64: 128, 128>}, {pipeline_mode = #tpu.pipeline_mode<synchronous>, transform_indices = @transform_2, window_bounds = array<i64: 1, 128>}, {transform_indices = @transform_3, window_bounds = array<i64: 16, 128>}, {pipeline_mode = #tpu.pipeline_mode<synchronous>, transform_indices = @transform_4, window_bounds = array<i64: 128, 2048>}, {pipeline_mode = #tpu.pipeline_mode<synchronous>, transform_indices = @transform_5, window_bounds = array<i64: 1, 2048>}, {pipeline_mode = #tpu.pipeline_mode<synchronous>, transform_indices = @transform_6, window_bounds = array<i64: 2048, 32>}, {pipeline_mode = #tpu.pipeline_mode<synchronous>, transform_indices = @transform_7, window_bounds = array<i64: 1, 32>}, {transform_indices = @transform_8, window_bounds = array<i64: 16, 32>}]} {
    %c0 = arith.constant 0 : index
    %c0_0 = arith.constant 0 : index
    %0 = vector.load %arg1[%c0, %c0_0] : memref<16x128xf32, #tpu.memory_space<vmem>>, vector<16x128xf32>
    %1 = arith.truncf %0 : vector<16x128xf32> to vector<16x128xbf16>
    %c0_1 = arith.constant 0 : index
    %c0_2 = arith.constant 0 : index
    %2 = vector.load %arg2[%c0_1, %c0_2] : memref<128x128xbf16, #tpu.memory_space<vmem>>, vector<128x128xbf16>
    %cst = arith.constant dense<0.000000e+00> : vector<16x128xf32>
    %3 = tpu.matmul %1, %2, %cst {dimension_numbers = #tpu.dot_dimension_numbers<[1], [0], [0], [1], [0, 0, 1, 1], [], []>} : vector<16x128xbf16>, vector<128x128xbf16>, vector<16x128xf32> -> vector<16x128xf32>
    %c0_3 = arith.constant 0 : index
    %c0_4 = arith.constant 0 : index
    %4 = vector.load %arg3[%c0_3, %c0_4] : memref<1x128xf32, #tpu.memory_space<vmem>>, vector<1x128xf32>
    %5 = vector.broadcast %4 : vector<1x128xf32> to vector<16x128xf32>
    %6 = arith.addf %3, %5 : vector<16x128xf32>
    %c0_5 = arith.constant 0 : index
    %c0_6 = arith.constant 0 : index
    %7 = vector.load %arg4[%c0_5, %c0_6] : memref<16x128xf32, #tpu.memory_space<vmem>>, vector<16x128xf32>
    %8 = arith.addf %6, %7 : vector<16x128xf32>
    %9 = arith.truncf %8 : vector<16x128xf32> to vector<16x128xbf16>
    %c0_7 = arith.constant 0 : index
    %c0_8 = arith.constant 0 : index
    %10 = vector.load %arg5[%c0_7, %c0_8] : memref<128x2048xbf16, #tpu.memory_space<vmem>>, vector<128x2048xbf16>
    %cst_9 = arith.constant dense<0.000000e+00> : vector<16x2048xf32>
    %11 = tpu.matmul %9, %10, %cst_9 {dimension_numbers = #tpu.dot_dimension_numbers<[1], [0], [0], [1], [0, 0, 1, 1], [], []>} : vector<16x128xbf16>, vector<128x2048xbf16>, vector<16x2048xf32> -> vector<16x2048xf32>
    %c0_10 = arith.constant 0 : index
    %c0_11 = arith.constant 0 : index
    %12 = vector.load %arg6[%c0_10, %c0_11] : memref<1x2048xf32, #tpu.memory_space<vmem>>, vector<1x2048xf32>
    %13 = vector.broadcast %12 : vector<1x2048xf32> to vector<16x2048xf32>
    %14 = arith.addf %11, %13 : vector<16x2048xf32>
    %cst_12 = arith.constant 5.000000e-01 : f32
    %15 = vector.broadcast %cst_12 : f32 to vector<16x2048xf32>
    %16 = arith.mulf %15, %14 : vector<16x2048xf32>
    %cst_13 = arith.constant 0.707106769 : f32
    %17 = vector.broadcast %cst_13 : f32 to vector<16x2048xf32>
    %18 = arith.mulf %14, %17 : vector<16x2048xf32>
    %cst_14 = arith.constant -4.000000e+00 : f32
    %cst_15 = arith.constant 4.000000e+00 : f32
    %19 = vector.broadcast %cst_14 : f32 to vector<16x2048xf32>
    %20 = arith.maximumf %19, %18 : vector<16x2048xf32>
    %21 = vector.broadcast %cst_15 : f32 to vector<16x2048xf32>
    %22 = arith.minimumf %21, %20 : vector<16x2048xf32>
    %23 = arith.mulf %22, %22 : vector<16x2048xf32>
    %cst_16 = arith.constant -2.72614237E-10 : f32
    %24 = vector.broadcast %cst_16 : f32 to vector<16x2048xf32>
    %25 = arith.mulf %24, %23 : vector<16x2048xf32>
    %cst_17 = arith.constant 2.77068146E-8 : f32
    %26 = vector.broadcast %cst_17 : f32 to vector<16x2048xf32>
    %27 = arith.addf %25, %26 : vector<16x2048xf32>
    %28 = arith.mulf %27, %23 : vector<16x2048xf32>
    %cst_18 = arith.constant -2.10102394E-6 : f32
    %29 = vector.broadcast %cst_18 : f32 to vector<16x2048xf32>
    %30 = arith.addf %28, %29 : vector<16x2048xf32>
    %31 = arith.mulf %30, %23 : vector<16x2048xf32>
    %cst_19 = arith.constant -5.69250624E-5 : f32
    %32 = vector.broadcast %cst_19 : f32 to vector<16x2048xf32>
    %33 = arith.addf %31, %32 : vector<16x2048xf32>
    %34 = arith.mulf %33, %23 : vector<16x2048xf32>
    %cst_20 = arith.constant -7.34990637E-4 : f32
    %35 = vector.broadcast %cst_20 : f32 to vector<16x2048xf32>
    %36 = arith.addf %34, %35 : vector<16x2048xf32>
    %37 = arith.mulf %36, %23 : vector<16x2048xf32>
    %cst_21 = arith.constant -2.954600e-03 : f32
    %38 = vector.broadcast %cst_21 : f32 to vector<16x2048xf32>
    %39 = arith.addf %37, %38 : vector<16x2048xf32>
    %40 = arith.mulf %39, %23 : vector<16x2048xf32>
    %cst_22 = arith.constant -0.0160960332 : f32
    %41 = vector.broadcast %cst_22 : f32 to vector<16x2048xf32>
    %42 = arith.addf %40, %41 : vector<16x2048xf32>
    %43 = arith.mulf %42, %22 : vector<16x2048xf32>
    %cst_23 = arith.constant -1.45660715E-5 : f32
    %44 = vector.broadcast %cst_23 : f32 to vector<16x2048xf32>
    %45 = arith.mulf %44, %23 : vector<16x2048xf32>
    %cst_24 = arith.constant -2.13374049E-4 : f32
    %46 = vector.broadcast %cst_24 : f32 to vector<16x2048xf32>
    %47 = arith.addf %45, %46 : vector<16x2048xf32>
    %48 = arith.mulf %47, %23 : vector<16x2048xf32>
    %cst_25 = arith.constant -0.00168282702 : f32
    %49 = vector.broadcast %cst_25 : f32 to vector<16x2048xf32>
    %50 = arith.addf %48, %49 : vector<16x2048xf32>
    %51 = arith.mulf %50, %23 : vector<16x2048xf32>
    %cst_26 = arith.constant -0.00737332925 : f32
    %52 = vector.broadcast %cst_26 : f32 to vector<16x2048xf32>
    %53 = arith.addf %51, %52 : vector<16x2048xf32>
    %54 = arith.mulf %53, %23 : vector<16x2048xf32>
    %cst_27 = arith.constant -0.0142647391 : f32
    %55 = vector.broadcast %cst_27 : f32 to vector<16x2048xf32>
    %56 = arith.addf %54, %55 : vector<16x2048xf32>
    %57 = tpu.reciprocal %56 : vector<16x2048xf32> -> vector<16x2048xf32>
    %58 = arith.mulf %43, %57 : vector<16x2048xf32>
    %cst_28 = arith.constant 1.000000e+00 : f32
    %59 = vector.broadcast %cst_28 : f32 to vector<16x2048xf32>
    %60 = arith.addf %59, %58 : vector<16x2048xf32>
    %61 = arith.mulf %16, %60 : vector<16x2048xf32>
    %62 = arith.truncf %61 : vector<16x2048xf32> to vector<16x2048xbf16>
    %c0_29 = arith.constant 0 : index
    %c0_30 = arith.constant 0 : index
    %63 = vector.load %arg7[%c0_29, %c0_30] : memref<2048x32xbf16, #tpu.memory_space<vmem>>, vector<2048x32xbf16>
    %cst_31 = arith.constant dense<0.000000e+00> : vector<16x32xf32>
    %64 = tpu.matmul %62, %63, %cst_31 {dimension_numbers = #tpu.dot_dimension_numbers<[1], [0], [0], [1], [0, 0, 1, 1], [], []>} : vector<16x2048xbf16>, vector<2048x32xbf16>, vector<16x32xf32> -> vector<16x32xf32>
    %c0_32 = arith.constant 0 : index
    %c0_33 = arith.constant 0 : index
    %65 = vector.load %arg8[%c0_32, %c0_33] : memref<1x32xf32, #tpu.memory_space<vmem>>, vector<1x32xf32>
    %66 = vector.broadcast %65 : vector<1x32xf32> to vector<16x32xf32>
    %67 = arith.addf %64, %66 : vector<16x32xf32>
    %c0_34 = arith.constant 0 : index
    %c0_35 = arith.constant 0 : index
    %68 = vector.load %arg9[%c0_34, %c0_35] : memref<16x32xf32, #tpu.memory_space<vmem>>, vector<16x32xf32>
    tpu.vector_store %arg9[%c0_34, %c0_35], %67 {strides = array<i32>} : memref<16x32xf32, #tpu.memory_space<vmem>>, vector<16x32xf32>,
    return
  }
  func.func @transform_0(%arg0: i32) -> (i32, i32) {
    %c0_i32 = arith.constant 0 : i32
    %c0_i32_0 = arith.constant 0 : i32
    return %arg0, %c0_i32 : i32, i32
  }
  func.func @transform_1(%arg0: i32) -> (i32, i32) {
    %c0_i32 = arith.constant 0 : i32
    %c0_i32_0 = arith.constant 0 : i32
    %c0_i32_1 = arith.constant 0 : i32
    return %c0_i32, %c0_i32_0 : i32, i32
  }
  func.func @transform_2(%arg0: i32) -> (i32, i32) {
    %c0_i32 = arith.constant 0 : i32
    %c0_i32_0 = arith.constant 0 : i32
    %c0_i32_1 = arith.constant 0 : i32
    return %c0_i32, %c0_i32_0 : i32, i32
  }
  func.func @transform_3(%arg0: i32) -> (i32, i32) {
    %c0_i32 = arith.constant 0 : i32
    %c0_i32_0 = arith.constant 0 : i32
    return %arg0, %c0_i32 : i32, i32
  }
  func.func @transform_4(%arg0: i32) -> (i32, i32) {
    %c0_i32 = arith.constant 0 : i32
    %c0_i32_0 = arith.constant 0 : i32
    %c0_i32_1 = arith.constant 0 : i32
    return %c0_i32, %c0_i32_0 : i32, i32
  }
  func.func @transform_5(%arg0: i32) -> (i32, i32) {
    %c0_i32 = arith.constant 0 : i32
    %c0_i32_0 = arith.constant 0 : i32
    %c0_i32_1 = arith.constant 0 : i32
    return %c0_i32, %c0_i32_0 : i32, i32
  }
  func.func @transform_6(%arg0: i32) -> (i32, i32) {
    %c0_i32 = arith.constant 0 : i32
    %c0_i32_0 = arith.constant 0 : i32
    %c0_i32_1 = arith.constant 0 : i32
    return %c0_i32, %c0_i32_0 : i32, i32
  }
  func.func @transform_7(%arg0: i32) -> (i32, i32) {
    %c0_i32 = arith.constant 0 : i32
    %c0_i32_0 = arith.constant 0 : i32
    %c0_i32_1 = arith.constant 0 : i32
    return %c0_i32, %c0_i32_0 : i32, i32
  }
  func.func @transform_8(%arg0: i32) -> (i32, i32) {
    %c0_i32 = arith.constant 0 : i32
    %c0_i32_0 = arith.constant 0 : i32
    return %arg0, %c0_i32 : i32, i32
  }
}

</mosaic_0001>

<bundles_post_ra>
// kernel: state_mo_prev_forward.4
= control target key start
LH: loop header
LB: loop body
LE: loop exit
PB: predicated region body
PF: predicated region fallthrough
CT: control target
= control target key end

     0   :  { %s1032_s18 = smov 0   ;;  %s1034_s19 = smov 0   ;;  %s1109_s0 = inlined_call_operand.vmem [shape: f32[2,2,2,64], index: 0, kind: input, shape index: {}]   ;;  %s1110_s1 = inlined_call_operand.vmem [shape: f32[2,2,2,64], index: 1, kind: input, shape index: {}]   ;;  %s1111_s2 = inlined_call_operand.vmem [shape: bf16[2,2,64,64], index: 2, kind: input, shape index: {}]   ;;  %s1112_s3 = inlined_call_operand.vmem [shape: bf16[2,2,64,64], index: 3, kind: input, shape index: {}]   ;;  %s1113_s4 = inlined_call_operand.vmem [shape: f32[2,2,2,64], index: 4, kind: output, shape index: {0}]   ;;  %s1114_s5 = inlined_call_operand.vmem [shape: f32[2,2,2,64], index: 5, kind: output, shape index: {1}]  }
   0x1   :  { %s1036_s20 = smov 0   ;;  %s1038_s21 = smov 0  }
   0x2   :  { %s1040_s22 = smov 0  }
   0x3 LB: > { %s25_s23 = sadd.s32 1, %s990_s20  ;;  %s28_s24 = sadd.s32 1, %s994_s21  ;;  %s998_s22 = sphi %s1040_s22, %s16_s22   ;;  %s994_s21 = sphi %s1038_s21, %s1118_s21   ;;  %s990_s20 = sphi %s1036_s20, %s1117_s20   ;;  %s986_s19 = sphi %s1034_s19, %s1116_s19   ;;  %s982_s18 = sphi %s1032_s18, %s1115_s18  }
   0x4   : > { %p26_p0 = scmp.ge.s32.totalorder %s25_s23, 2  ;;  %p813_p1 = scmp.ge.s32.totalorder %s998_s22, 1 }
   0x5   : > { %p258_p2 = scmp.lt.s32.totalorder %s998_s22, 5 }
   0x6   : > { %s1120_s23 = smov (%p26_p0, %s25_s23), 0  ;;  %s1122_s24 = smov (!%p26_p0, %s28_s24), %s994_s21 }
   0x7   : > { %p259_p3 = pnand %p813_p1, %p258_p2  ;;  %p30_p4 = scmp.ge.s32.totalorder %s1122_s24, 2 }
   0x8   : > { %p326_p5 = scmp.lt.s32.totalorder (!%p259_p3), %s986_s19, 1  ;;  %p328_p6 = scmp.lt.s32.totalorder (!%p259_p3), %s982_s18, 1 }
   0x9   : > { %s1124_s24 = smov (%p30_p4, %s1122_s24), 0  ;;  %262 = sbr.rel (%p259_p3) target bundleno = 251 (0xfb), region = 36 }
   0xe   : > { %v1000_v0 = vmov 0.0   ;;  %s1126_s19 = smov (!%p326_p5, %s986_s19), 1  ;;  %vm1001_vm0 = vmmov 0   ;;  %s1128_s18 = smov (!%p328_p6, %s982_s18), 1  ;;  %vm421_vm1 = vcmask 523264   ;;  %vm573_vm2 = vcmask 517120  }
   0xf   : > { %862 = vmatprep.subr.bf16.mxu0 %v1000_v0  ;;  %874 = vmatprep.subr.bf16.mxu1 %v1000_v0  ;;  %s819_s25 = sshll.u32 %s1126_s19, 4  ;;  %s818_s26 = sshll.u32 %s1128_s18, 3 }
  0x10   : > { %870 = vmatprep.mubr.msk.bf16.mxu0 %vm1001_vm0, %v1000_v0  ;;  %882 = vmatprep.mubr.msk.bf16.mxu1 %vm1001_vm0, %v1000_v0  ;;  %s348_s27 = sadd.s32 %s819_s25, %s818_s26  ;;  %s814_s29 = sshll.u32 %s1126_s19, 1 }
  0x11   : > { %s820_s28 = sshll.u32 %s348_s27, 2  ;;  %s331_s11 = sadd.s32 %s814_s29, %s1128_s18 }
  0x12   : > { %s350_s7 = scalar_lea.vmem %s1111_s2, %s820_s28  ;;  %s359_s10 = scalar_lea.vmem %s1112_s3, %s820_s28 }
  0x13   : > { %v952_v1 = vld [vmem:[%s350_s7 + $0x18] sm:$0xff]   ;;  %v954_v3 = vld [vmem:[%s350_s7 + $0x10] sm:$0xff]   ;;  %s1070_s12 = sshll.u32 %s331_s11, 1  ;;  %v956_v5 = vld [vmem:[%s350_s7 + $0x8] sm:$0xff]  }
  0x14   : > { %v953_v2 = vld [vmem:[%s359_s10 + $0x18] sm:$0xff]   ;;  %863 = vmatpush3.bf16.msra.mxu0 %v952_v1  ;;  %v955_v4 = vld [vmem:[%s359_s10 + $0x10] sm:$0xff]   ;;  %v957_v6 = vld [vmem:[%s359_s10 + $0x8] sm:$0xff]   ;;  %s333_s15 = scalar_lea.vmem %s1109_s0, %s1070_s12  ;;  %s341_s18 = scalar_lea.vmem %s1110_s1, %s1070_s12 }
  0x15   : > { %875 = vmatpush3.bf16.msra.mxu1 %v953_v2  ;;  %864 = vmatprep.subr.bf16.mxu0 %v1000_v0  ;;  %v958_v7 = vld [vmem:[%s350_s7] sm:$0xff]   ;;  %s367_s26 = scalar_lea.vmem %s1113_s4, %s1070_s12  ;;  %s375_s29 = scalar_lea.vmem %s1114_s5, %s1070_s12 }
  0x16   : > { %876 = vmatprep.subr.bf16.mxu1 %v1000_v0  ;;  %v377_v8 = vld [vmem:[%s333_s15] sm:$0x3] }
  0x17   : > { %v959_v9 = vld [vmem:[%s359_s10] sm:$0xff]   ;;  %v378_v11 = vpack.c.bf16 %v377_v8, %v377_v8 }
  0x18   : > { %865 = vmatpush3.bf16.msra.mxu0 %v954_v3  ;;  %v379_v10 = vld [vmem:[%s341_s18] sm:$0x3] }
  0x19   : > { %877 = vmatpush3.bf16.msra.mxu1 %v955_v4  ;;  %866 = vmatprep.subr.bf16.mxu0 %v1000_v0  ;;  %v380_v12 = vpack.c.bf16 %v379_v10, %v379_v10 }
  0x1a   : > { %878 = vmatprep.subr.bf16.mxu1 %v1000_v0 }
  0x1c   : > { %867 = vmatpush3.bf16.msra.mxu0 %v956_v5 }
  0x1d   : > { %879 = vmatpush3.bf16.msra.mxu1 %v957_v6  ;;  %868 = vmatprep.subr.bf16.mxu0 %v1000_v0 }
  0x1e   : > { %880 = vmatprep.subr.bf16.mxu1 %v1000_v0 }
  0x20   : > { %869 = vmatpush3.bf16.msra.mxu0 %v958_v7 }
  0x21   : > { %881 = vmatpush3.bf16.msra.mxu1 %v959_v9  ;;  %886 = vmatprep.subr.bf16.mxu0 %v1000_v0 }
  0x22   : > { %898 = vmatprep.subr.bf16.mxu1 %v1000_v0 }
  0x23   : > { %871 = vmatmul.mubr.msk.bf16.vlgmr.msra.gmra.mxu0 %vm421_vm1, %v378_v11 }
  0x24   : > { %883 = vmatmul.mubr.msk.bf16.vlgmr.msra.gmra.mxu1 %vm421_vm1, %v380_v12  ;;  %887 = vmatpush3.bf16.msra.mxu0 %v952_v1 }
  0x25   : > { %899 = vmatpush3.bf16.msra.mxu1 %v953_v2  ;;  %888 = vmatprep.subr.bf16.mxu0 %v1000_v0 }
  0x26   : > { %900 = vmatprep.subr.bf16.mxu1 %v1000_v0  ;;  %894 = vmatprep.mubr.msk.bf16.mxu0 %vm1001_vm0, %v1000_v0 }
  0x27   : > { %906 = vmatprep.mubr.msk.bf16.mxu1 %vm1001_vm0, %v1000_v0 }
  0x28   : > { %889 = vmatpush3.bf16.msra.mxu0 %v954_v3 }
  0x29   : > { %901 = vmatpush3.bf16.msra.mxu1 %v955_v4  ;;  %890 = vmatprep.subr.bf16.mxu0 %v1000_v0 }
  0x2a   : > { %902 = vmatprep.subr.bf16.mxu1 %v1000_v0 }
  0x2c   : > { %891 = vmatpush3.bf16.msra.mxu0 %v956_v5 }
  0x2d   : > { %903 = vmatpush3.bf16.msra.mxu1 %v957_v6  ;;  %892 = vmatprep.subr.bf16.mxu0 %v1000_v0 }
  0x2e   : > { %904 = vmatprep.subr.bf16.mxu1 %v1000_v0 }
  0x30   : > { %893 = vmatpush3.bf16.msra.mxu0 %v958_v7 }
  0x31   : > { %905 = vmatpush3.bf16.msra.mxu1 %v959_v9 }
  0x33   : > { %895 = vmatmul.mubr.msk.bf16.vlgmr.msra.gmra.mxu0 %vm421_vm1, %v380_v12 }
  0x34   : > { %907 = vmatmul.mubr.msk.bf16.vlgmr.msra.gmra.mxu1 %vm421_vm1, %v378_v11 }
  0xe3   : > { %v459_v13 = vpop.f32.mrf.mxu0 }
  0xe4   : > { %v526_v14 = vpop.f32.mrf.mxu1 }
  0xe5   : > { %v572_v15 = vsub.f32 %v459_v13, %v526_v14  ;;  %v872_v16 = vpop.f32.mrf.mxu0 }
  0xe6   : > { %v884_v17 = vpop.f32.mrf.mxu1 }
  0xe7   : > { %574 = vst.msk [vmem:[%s367_s26] sm:$0x3] %vm573_vm2, %v572_v15  ;;  %v462_v18 = vpop.f32.mrf.mxu0 }
  0xe8   : > { %v529_v19 = vpop.f32.mrf.mxu1 }
  0xe9   : > { %v873_v20 = vpop.f32.mrf.mxu0 }
  0xea   : > { %v885_v21 = vpop.f32.mrf.mxu1 }
  0xf3   : > { %v566_v22 = vpop.f32.mrf.mxu0 }
  0xf4   : > { %v609_v23 = vpop.f32.mrf.mxu1 }
  0xf5   : > { %v610_v24 = vadd.f32 %v609_v23, %v566_v22  ;;  %v896_v25 = vpop.f32.mrf.mxu0 }
  0xf6   : > { %v908_v26 = vpop.f32.mrf.mxu1 }
  0xf7   : > { %615 = vst.msk [vmem:[%s375_s29] sm:$0x3] %vm573_vm2, %v610_v24  ;;  %v569_v27 = vpop.f32.mrf.mxu0 }
  0xf8   : > { %v612_v28 = vpop.f32.mrf.mxu1 }
  0xf9   : > { %v897_v29 = vpop.f32.mrf.mxu0 }
  0xfa   : > { %v909_v30 = vpop.f32.mrf.mxu1 }
  0xfb PF: > { %s16_s22 = sadd.s32 1, %s998_s22   ;;  %s1115_s18 = smov %s990_s20 }
  0xfc   : > { %p13_p7 = scmp.ge.s32.totalorder %s16_s22, 6   ;;  %s1116_s19 = smov %s994_s21 }
  0xfd   : > { %s1117_s20 = smov %s1120_s23  ;;  %s1118_s21 = smov %s1124_s24 }
  0xfe   :  { %15 = sbr.rel (!%p13_p7) target bundleno = 3 (0x3), region = 87 }

// kernel: reverse.4
= control target key start
LH: loop header
LB: loop body
LE: loop exit
PB: predicated region body
PF: predicated region fallthrough
CT: control target
= control target key end

     0   :  { %v104_v3 = vlaneseq  ;;  %v97_v18 = vld [vmem:[#allocation0 + $0x7] ss:$-1 sm:$0xff]  ;;  %v111_v19 = vld [vmem:[#allocation0 + $0x17] ss:$-1 sm:$0xff]  ;;  %s606_s0 = inlined_call_operand.vmem [shape: f32[2,8,16,7], index: 0, kind: input, shape index: {}]   ;;  %s607_s1 = inlined_call_operand.vmem [shape: f32[2,8,16,7], index: 1, kind: output, shape index: {}]  }
   0x1   :  { %v61_v0 = vld [vmem:[%s606_s0] sm:$0xff]  ;;  %v63_v1 = vld [vmem:[%s606_s0 + $0x8] sm:$0xff]  ;;  %v65_v2 = vld [vmem:[%s606_s0 + $0x10] sm:$0xff]  ;;  %v98_v20 = vrot.slane %v97_v18, 1  ;;  %v112_v21 = vrot.slane %v111_v19, 1 }
   0x2   :  { %62 = vst [vmem:[#allocation0 + $0x8] sm:$0xff] %v61_v0  ;;  %64 = vst [vmem:[#allocation0 + $0x18] sm:$0xff] %v63_v1  ;;  %v67_v4 = vld [vmem:[%s606_s0 + $0x18] sm:$0xff]  ;;  %v69_v5 = vld [vmem:[%s606_s0 + $0x20] sm:$0xff]  ;;  %v502_v10 = vshrl.u32 %v104_v3, 7 }
   0x3   :  { %66 = vst [vmem:[#allocation0 + $0x28] sm:$0xff] %v65_v2  ;;  %v71_v6 = vld [vmem:[%s606_s0 + $0x28] sm:$0xff]  ;;  %68 = vst [vmem:[#allocation0 + $0x38] sm:$0xff] %v67_v4  ;;  %v73_v7 = vld [vmem:[%s606_s0 + $0x30] sm:$0xff] }
   0x4   :  { %70 = vst [vmem:[#allocation0 + $0x48] sm:$0xff] %v69_v5  ;;  %72 = vst [vmem:[#allocation0 + $0x58] sm:$0xff] %v71_v6  ;;  %v75_v8 = vld [vmem:[%s606_s0 + $0x38] sm:$0xff]  ;;  %v77_v9 = vld [vmem:[%s606_s0 + $0x40] sm:$0xff]  ;;  %vm106_vm0 = vcmp.lt.s32.totalorder %v502_v10, 7 }
   0x5   :  { %74 = vst [vmem:[#allocation0 + $0x68] sm:$0xff] %v73_v7  ;;  %76 = vst [vmem:[#allocation0 + $0x78] sm:$0xff] %v75_v8  ;;  %v79_v11 = vld [vmem:[%s606_s0 + $0x48] sm:$0xff]  ;;  %v81_v12 = vld [vmem:[%s606_s0 + $0x50] sm:$0xff] }
   0x6   :  { %78 = vst [vmem:[#allocation0 + $0x88] sm:$0xff] %v77_v9  ;;  %v83_v13 = vld [vmem:[%s606_s0 + $0x58] sm:$0xff]  ;;  %80 = vst [vmem:[#allocation0 + $0x98] sm:$0xff] %v79_v11  ;;  %v85_v14 = vld [vmem:[%s606_s0 + $0x60] sm:$0xff] }
   0x7   :  { %82 = vst [vmem:[#allocation0 + $0xa8] sm:$0xff] %v81_v12  ;;  %84 = vst [vmem:[#allocation0 + $0xb8] sm:$0xff] %v83_v13  ;;  %v87_v15 = vld [vmem:[%s606_s0 + $0x68] sm:$0xff]  ;;  %v89_v16 = vld [vmem:[%s606_s0 + $0x70] sm:$0xff] }
   0x8   :  { %86 = vst [vmem:[#allocation0 + $0xc8] sm:$0xff] %v85_v14  ;;  %88 = vst [vmem:[#allocation0 + $0xd8] sm:$0xff] %v87_v15  ;;  %v91_v17 = vld [vmem:[%s606_s0 + $0x78] sm:$0xff]  ;;  %v125_v22 = vld [vmem:[#allocation0 + $0x27] ss:$-1 sm:$0xff] }
   0x9   :  { %90 = vst [vmem:[#allocation0 + $0xe8] sm:$0xff] %v89_v16  ;;  %92 = vst [vmem:[#allocation0 + $0xf8] sm:$0xff] %v91_v17  ;;  %v139_v23 = vld [vmem:[#allocation0 + $0x37] ss:$-1 sm:$0xff]  ;;  %v126_v24 = vrot.slane %v125_v22, 1 }
   0xa   :  { %v140_v25 = vrot.slane %v139_v23, 1  ;;  %v153_v26 = vld [vmem:[#allocation0 + $0x47] ss:$-1 sm:$0xff]  ;;  %v167_v27 = vld [vmem:[#allocation0 + $0x57] ss:$-1 sm:$0xff]  ;;  %99 = vst [vmem:[#allocation1] sm:$0xff] %v98_v20 }
   0xb   :  { %v102_v28 = vld [vmem:[#allocation0 + $0xf] ss:$-1 sm:$0xff]  ;;  %113 = vst [vmem:[#allocation1 + $0x8] sm:$0xff] %v112_v21  ;;  %v116_v29 = vld [vmem:[#allocation0 + $0x1f] ss:$-1 sm:$0xff]  ;;  %127 = vst [vmem:[#allocation1 + $0x10] sm:$0xff] %v126_v24 }
   0xc   :  { %v130_v30 = vld [vmem:[#allocation0 + $0x2f] ss:$-1 sm:$0xff]  ;;  %v103_v31 = vrot.slane %v102_v28, 1  ;;  %v117_v32 = vrot.slane %v116_v29, 1  ;;  %141 = vst [vmem:[#allocation1 + $0x18] sm:$0xff] %v140_v25  ;;  %v154_v35 = vrot.slane %v153_v26, 1 }
   0xd   :  { %v131_v33 = vrot.slane %v130_v30, 1  ;;  %v144_v34 = vld [vmem:[#allocation0 + $0x3f] ss:$-1 sm:$0xff]  ;;  %v158_v37 = vld [vmem:[#allocation0 + $0x4f] ss:$-1 sm:$0xff]  ;;  %v168_v38 = vrot.slane %v167_v27, 1 }
   0xe   :  { %v145_v36 = vrot.slane %v144_v34, 1  ;;  %v172_v39 = vld [vmem:[#allocation0 + $0x5f] ss:$-1 sm:$0xff]  ;;  %107 = vst.msk [vmem:[#allocation1] sm:$0xff] %vm106_vm0, %v103_v31  ;;  %121 = vst.msk [vmem:[#allocation1 + $0x8] sm:$0xff] %vm106_vm0, %v117_v32  ;;  %v159_v40 = vrot.slane %v158_v37, 1 }
   0xf   :  { %135 = vst.msk [vmem:[#allocation1 + $0x10] sm:$0xff] %vm106_vm0, %v131_v33  ;;  %155 = vst [vmem:[#allocation1 + $0x20] sm:$0xff] %v154_v35  ;;  %v173_v41 = vrot.slane %v172_v39, 1  ;;  %v181_v42 = vld [vmem:[#allocation0 + $0x67] ss:$-1 sm:$0xff] }
  0x10   :  { %v186_v43 = vld [vmem:[#allocation0 + $0x6f] ss:$-1 sm:$0xff]  ;;  %149 = vst.msk [vmem:[#allocation1 + $0x18] sm:$0xff] %vm106_vm0, %v145_v36  ;;  %169 = vst [vmem:[#allocation1 + $0x28] sm:$0xff] %v168_v38  ;;  %v182_v44 = vrot.slane %v181_v42, 1 }
  0x11   :  { %v187_v45 = vrot.slane %v186_v43, 1  ;;  %v195_v46 = vld [vmem:[#allocation0 + $0x77] ss:$-1 sm:$0xff]  ;;  %v200_v47 = vld [vmem:[#allocation0 + $0x7f] ss:$-1 sm:$0xff]  ;;  %163 = vst.msk [vmem:[#allocation1 + $0x20] sm:$0xff] %vm106_vm0, %v159_v40 }
  0x12   :  { %177 = vst.msk [vmem:[#allocation1 + $0x28] sm:$0xff] %vm106_vm0, %v173_v41  ;;  %v196_v48 = vrot.slane %v195_v46, 1  ;;  %v201_v49 = vrot.slane %v200_v47, 1  ;;  %v209_v50 = vld [vmem:[#allocation0 + $0x87] ss:$-1 sm:$0xff]  ;;  %183 = vst [vmem:[#allocation1 + $0x30] sm:$0xff] %v182_v44 }
  0x13   :  { %v214_v51 = vld [vmem:[#allocation0 + $0x8f] ss:$-1 sm:$0xff]  ;;  %v210_v52 = vrot.slane %v209_v50, 1  ;;  %v223_v54 = vld [vmem:[#allocation0 + $0x97] ss:$-1 sm:$0xff]  ;;  %191 = vst.msk [vmem:[#allocation1 + $0x30] sm:$0xff] %vm106_vm0, %v187_v45 }
  0x14   :  { %v215_v53 = vrot.slane %v214_v51, 1  ;;  %v228_v55 = vld [vmem:[#allocation0 + $0x9f] ss:$-1 sm:$0xff]  ;;  %197 = vst [vmem:[#allocation1 + $0x38] sm:$0xff] %v196_v48  ;;  %v224_v56 = vrot.slane %v223_v54, 1 }
  0x15   :  { %v229_v57 = vrot.slane %v228_v55, 1  ;;  %v237_v58 = vld [vmem:[#allocation0 + $0xa7] ss:$-1 sm:$0xff]  ;;  %v242_v59 = vld [vmem:[#allocation0 + $0xaf] ss:$-1 sm:$0xff]  ;;  %205 = vst.msk [vmem:[#allocation1 + $0x38] sm:$0xff] %vm106_vm0, %v201_v49 }
  0x16   :  { %211 = vst [vmem:[#allocation1 + $0x40] sm:$0xff] %v210_v52  ;;  %v238_v60 = vrot.slane %v237_v58, 1  ;;  %v243_v61 = vrot.slane %v242_v59, 1  ;;  %v251_v62 = vld [vmem:[#allocation0 + $0xb7] ss:$-1 sm:$0xff]  ;;  %225 = vst [vmem:[#allocation1 + $0x48] sm:$0xff] %v224_v56 }
  0x17   :  { %v256_v63 = vld [vmem:[#allocation0 + $0xbf] ss:$-1 sm:$0xff]  ;;  %219 = vst.msk [vmem:[#allocation1 + $0x40] sm:$0xff] %vm106_vm0, %v215_v53  ;;  %v252_v0 = vrot.slane %v251_v62, 1  ;;  %v265_v2 = vld [vmem:[#allocation0 + $0xc7] ss:$-1 sm:$0xff] }
  0x18   :  { %v257_v1 = vrot.slane %v256_v63, 1  ;;  %v270_v3 = vld [vmem:[#allocation0 + $0xcf] ss:$-1 sm:$0xff]  ;;  %233 = vst.msk [vmem:[#allocation1 + $0x48] sm:$0xff] %vm106_vm0, %v229_v57  ;;  %239 = vst [vmem:[#allocation1 + $0x50] sm:$0xff] %v238_v60  ;;  %v266_v4 = vrot.slane %v265_v2, 1 }
  0x19   :  { %v271_v5 = vrot.slane %v270_v3, 1  ;;  %v279_v6 = vld [vmem:[#allocation0 + $0xd7] ss:$-1 sm:$0xff]  ;;  %v284_v7 = vld [vmem:[#allocation0 + $0xdf] ss:$-1 sm:$0xff]  ;;  %247 = vst.msk [vmem:[#allocation1 + $0x50] sm:$0xff] %vm106_vm0, %v243_v61 }
  0x1a   :  { %253 = vst [vmem:[#allocation1 + $0x58] sm:$0xff] %v252_v0  ;;  %v280_v8 = vrot.slane %v279_v6, 1  ;;  %v285_v9 = vrot.slane %v284_v7, 1  ;;  %v293_v11 = vld [vmem:[#allocation0 + $0xe7] ss:$-1 sm:$0xff]  ;;  %267 = vst [vmem:[#allocation1 + $0x60] sm:$0xff] %v266_v4 }
  0x1b   :  { %v298_v12 = vld [vmem:[#allocation0 + $0xef] ss:$-1 sm:$0xff]  ;;  %261 = vst.msk [vmem:[#allocation1 + $0x58] sm:$0xff] %vm106_vm0, %v257_v1  ;;  %v294_v13 = vrot.slane %v293_v11, 1  ;;  %v307_v15 = vld [vmem:[#allocation0 + $0xf7] ss:$-1 sm:$0xff] }
  0x1c   :  { %v299_v14 = vrot.slane %v298_v12, 1  ;;  %v312_v16 = vld [vmem:[#allocation0 + $0xff] ss:$-1 sm:$0xff]  ;;  %275 = vst.msk [vmem:[#allocation1 + $0x60] sm:$0xff] %vm106_vm0, %v271_v5  ;;  %281 = vst [vmem:[#allocation1 + $0x68] sm:$0xff] %v280_v8  ;;  %v308_v17 = vrot.slane %v307_v15, 1 }
  0x1d   :  { %v313_v18 = vrot.slane %v312_v16, 1  ;;  %v376_v19 = vld [vmem:[#allocation1] sm:$0xff]  ;;  %v378_v20 = vld [vmem:[#allocation1 + $0x8] sm:$0xff]  ;;  %v380_v21 = vld [vmem:[#allocation1 + $0x10] sm:$0xff]  ;;  %289 = vst.msk [vmem:[#allocation1 + $0x68] sm:$0xff] %vm106_vm0, %v285_v9 }
  0x1e   :  { %295 = vst [vmem:[#allocation1 + $0x70] sm:$0xff] %v294_v13  ;;  %377 = vst [vmem:[%s607_s1] sm:$0xff] %v376_v19  ;;  %v382_v22 = vld [vmem:[#allocation1 + $0x18] sm:$0xff]  ;;  %v384_v23 = vld [vmem:[#allocation1 + $0x20] sm:$0xff] }
  0x1f   :  { %379 = vst [vmem:[%s607_s1 + $0x8] sm:$0xff] %v378_v20  ;;  %381 = vst [vmem:[%s607_s1 + $0x10] sm:$0xff] %v380_v21  ;;  %v386_v24 = vld [vmem:[#allocation1 + $0x28] sm:$0xff]  ;;  %v388_v25 = vld [vmem:[#allocation1 + $0x30] sm:$0xff] }
  0x20   :  { %303 = vst.msk [vmem:[#allocation1 + $0x70] sm:$0xff] %vm106_vm0, %v299_v14  ;;  %309 = vst [vmem:[#allocation1 + $0x78] sm:$0xff] %v308_v17  ;;  %v390_v26 = vld [vmem:[#allocation1 + $0x38] sm:$0xff]  ;;  %v392_v10 = vld [vmem:[#allocation1 + $0x40] sm:$0xff] }
  0x21   :  { %383 = vst [vmem:[%s607_s1 + $0x18] sm:$0xff] %v382_v22  ;;  %385 = vst [vmem:[%s607_s1 + $0x20] sm:$0xff] %v384_v23  ;;  %v394_v27 = vld [vmem:[#allocation1 + $0x48] sm:$0xff]  ;;  %v396_v28 = vld [vmem:[#allocation1 + $0x50] sm:$0xff] }
  0x22   :  { %387 = vst [vmem:[%s607_s1 + $0x28] sm:$0xff] %v386_v24  ;;  %317 = vst.msk [vmem:[#allocation1 + $0x78] sm:$0xff] %vm106_vm0, %v313_v18  ;;  %v398_v29 = vld [vmem:[#allocation1 + $0x58] sm:$0xff] }
  0x23   :  { %389 = vst [vmem:[%s607_s1 + $0x30] sm:$0xff] %v388_v25  ;;  %391 = vst [vmem:[%s607_s1 + $0x38] sm:$0xff] %v390_v26  ;;  %v400_v30 = vld [vmem:[#allocation1 + $0x60] sm:$0xff] }
  0x24   :  { %393 = vst [vmem:[%s607_s1 + $0x40] sm:$0xff] %v392_v10  ;;  %395 = vst [vmem:[%s607_s1 + $0x48] sm:$0xff] %v394_v27  ;;  %v402_v31 = vld [vmem:[#allocation1 + $0x68] sm:$0xff] }
  0x25   :  { %397 = vst [vmem:[%s607_s1 + $0x50] sm:$0xff] %v396_v28  ;;  %399 = vst [vmem:[%s607_s1 + $0x58] sm:$0xff] %v398_v29 }
  0x26   :  { %401 = vst [vmem:[%s607_s1 + $0x60] sm:$0xff] %v400_v30  ;;  %403 = vst [vmem:[%s607_s1 + $0x68] sm:$0xff] %v402_v31 }
  0x27   :  { %v404_v32 = vld [vmem:[#allocation1 + $0x70] sm:$0xff] }
  0x28   :  { %405 = vst [vmem:[%s607_s1 + $0x70] sm:$0xff] %v404_v32 }
  0x29   :  { %v406_v33 = vld [vmem:[#allocation1 + $0x78] sm:$0xff] }
  0x2a   :  { %407 = vst [vmem:[%s607_s1 + $0x78] sm:$0xff] %v406_v33 }

// kernel: state_mo_prev_forward.5
= control target key start
LH: loop header
LB: loop body
LE: loop exit
PB: predicated region body
PF: predicated region fallthrough
CT: control target
= control target key end

     0   :  { %s583_s15 = smov 0   ;;  %s635_s0 = inlined_call_operand.vmem [shape: f32[32,128], index: 0, kind: input, shape index: {}]   ;;  %s636_s1 = inlined_call_operand.vmem [shape: bf16[128,128], index: 1, kind: input, shape index: {}]   ;;  %s637_s2 = inlined_call_operand.vmem [shape: f32[1,128], index: 2, kind: input, shape index: {}]   ;;  %s638_s3 = inlined_call_operand.vmem [shape: f32[32,128], index: 3, kind: input, shape index: {}]   ;;  %s639_s4 = inlined_call_operand.vmem [shape: f32[32,128], index: 4, kind: output, shape index: {}]  }
   0x1 LB: > { %s473_s16 = sadd.s32 4294967295, %s554_s15   ;;  %p477_p0 = scmp.ge.s32.totalorder %s554_s15, 1  ;;  %s554_s15 = sphi %s583_s15, %s14_s15  }
   0x2   : > { %p174_p1 = scmp.lt.s32.totalorder %s554_s15, 3 }
   0x4   : > { %p175_p2 = pnand %p477_p0, %p174_p1 }
   0x5   : > { %s478_s23 = sshll.u32 (!%p175_p2), %s473_s16, 1 }
   0x6   : > { %178 = sbr.rel (%p175_p2) target bundleno = 289 (0x121), region = 36  ;;  %p206_p3 = scmp.lt.s32.totalorder (!%p175_p2), %s478_s23, 3 }
   0xb   : > { %v536_v0 = vld [vmem:[%s636_s1 + $0x38] sm:$0xff]   ;;  %v556_v1 = vmov 0.0   ;;  %v537_v2 = vld [vmem:[%s636_s1 + $0x30] sm:$0xff]   ;;  %vm557_vm0 = vmmov 0   ;;  %v538_v3 = vld [vmem:[%s636_s1 + $0x28] sm:$0xff]   ;;  %s641_s23 = smov (!%p206_p3, %s478_s23), 3 }
   0xc   : > { %506 = vmatprep.subr.bf16.mxu0 %v556_v1  ;;  %522 = vmatprep.mubr.msk.bf16.mxu0 %vm557_vm0, %v556_v1  ;;  %v539_v4 = vld [vmem:[%s636_s1 + $0x20] sm:$0xff]   ;;  %v540_v5 = vld [vmem:[%s636_s1 + $0x18] sm:$0xff]   ;;  %v541_v6 = vld [vmem:[%s636_s1 + $0x10] sm:$0xff]   ;;  %s609_s30 = sshll.u32 %s641_s23, 3 }
   0xd   : > { %507 = vmatpush3.bf16.msra.mxu0 %v536_v0  ;;  %v542_v7 = vld [vmem:[%s636_s1 + $0x8] sm:$0xff]   ;;  %s209_s9 = scalar_lea.vmem %s635_s0, %s609_s30  ;;  %v543_v8 = vld [vmem:[%s636_s1] sm:$0xff]   ;;  %s215_s14 = scalar_lea.vmem %s638_s3, %s609_s30 }
   0xe   : > { %508 = vmatprep.subr.bf16.mxu0 %v556_v1  ;;  %v224_v9 = vld [vmem:[%s209_s9] sm:$0xff]  ;;  %v225_v10 = vld [vmem:[%s209_s9 + $0x8] sm:$0xff]  ;;  %s221_s20 = scalar_lea.vmem %s639_s4, %s609_s30 }
   0xf   : > { %v226_v11 = vpack.c.bf16 %v225_v10, %v224_v9  ;;  %v484_v12 = vld [vmem:[%s637_s2] ss:$0 sm:$0xff]  ;;  %v340_v19 = vld [vmem:[%s215_s14 + $0x8] sm:$0xff] }
  0x10   : > { %v339_v14 = vld [vmem:[%s215_s14] sm:$0xff] }
  0x11   : > { %509 = vmatpush3.bf16.msra.mxu0 %v537_v2 }
  0x12   : > { %510 = vmatprep.subr.bf16.mxu0 %v556_v1 }
  0x15   : > { %511 = vmatpush3.bf16.msra.mxu0 %v538_v3 }
  0x16   : > { %512 = vmatprep.subr.bf16.mxu0 %v556_v1 }
  0x19   : > { %513 = vmatpush3.bf16.msra.mxu0 %v539_v4 }
  0x1a   : > { %514 = vmatprep.subr.bf16.mxu0 %v556_v1 }
  0x1d   : > { %515 = vmatpush3.bf16.msra.mxu0 %v540_v5 }
  0x1e   : > { %516 = vmatprep.subr.bf16.mxu0 %v556_v1 }
  0x21   : > { %517 = vmatpush3.bf16.msra.mxu0 %v541_v6 }
  0x22   : > { %518 = vmatprep.subr.bf16.mxu0 %v556_v1 }
  0x25   : > { %519 = vmatpush3.bf16.msra.mxu0 %v542_v7 }
  0x26   : > { %520 = vmatprep.subr.bf16.mxu0 %v556_v1 }
  0x29   : > { %521 = vmatpush3.bf16.msra.mxu0 %v543_v8 }
  0x2c   : > { %523 = vmatmul.mubr.bf16.vlgmr.msra.gmra.mxu0 %v226_v11 }
  0xec   : > { %v332_v13 = vpop.f32.mrf.mxu0 }
  0xed   : > { %v333_v15 = vadd.f32 %v484_v12, %v332_v13 }
  0xee   : > { %v524_v16 = vpop.f32.mrf.mxu0 }
  0xef   : > { %v341_v17 = vadd.f32 %v339_v14, %v333_v15 }
  0xf0   : > { %v335_v18 = vpop.f32.mrf.mxu0 }
  0xf1   : > { %v345_v20 = vmul.f32 0.70710677, %v341_v17  ;;  %v336_v21 = vadd.f32 %v484_v12, %v335_v18  ;;  %v343_v8 = vmul.f32 0.5, %v341_v17 }
  0xf2   : > { %v525_v22 = vpop.f32.mrf.mxu0 }
  0xf3   : > { %v493_v23 = vclamps-f32 %v345_v20, 4.0  ;;  %v342_v24 = vadd.f32 %v340_v19, %v336_v21 }
  0xf5   : > { %v351_v25 = vmul.f32 %v493_v23, %v493_v23  ;;  %v346_v26 = vmul.f32 0.70710677, %v342_v24  ;;  %v344_v14 = vmul.f32 0.5, %v342_v24 }
  0xf7   : > { %v353_v27 = vmul.f32 -2.7261424e-10, %v351_v25  ;;  %v379_v28 = vmul.f32 -1.45660715e-05, %v351_v25  ;;  %v494_v29 = vclamps-f32 %v346_v26, 4.0 }
  0xf9   : > { %v355_v30 = vadd.f32 2.7706815e-08, %v353_v27  ;;  %v381_v31 = vadd.f32 -0.00021337405, %v379_v28  ;;  %v352_v32 = vmul.f32 %v494_v29, %v494_v29 }
  0xfb   : > { %v357_v33 = vmul.f32 %v355_v30, %v351_v25  ;;  %v383_v34 = vmul.f32 %v381_v31, %v351_v25  ;;  %v354_v35 = vmul.f32 -2.7261424e-10, %v352_v32  ;;  %v380_v36 = vmul.f32 -1.45660715e-05, %v352_v32 }
  0xfd   : > { %v359_v37 = vadd.f32 -2.101024e-06, %v357_v33  ;;  %v385_v38 = vadd.f32 -0.001682827, %v383_v34  ;;  %v356_v39 = vadd.f32 2.7706815e-08, %v354_v35 }
  0xfe   : > { %v382_v40 = vadd.f32 -0.00021337405, %v380_v36 }
  0xff   : > { %v361_v41 = vmul.f32 %v359_v37, %v351_v25  ;;  %v387_v42 = vmul.f32 %v385_v38, %v351_v25  ;;  %v358_v43 = vmul.f32 %v356_v39, %v352_v32 }
 0x100   : > { %v384_v44 = vmul.f32 %v382_v40, %v352_v32 }
 0x101   : > { %v363_v45 = vadd.f32 -5.6925062e-05, %v361_v41  ;;  %v389_v46 = vadd.f32 -0.0073733293, %v387_v42  ;;  %v360_v47 = vadd.f32 -2.101024e-06, %v358_v43 }
 0x102   : > { %v386_v48 = vadd.f32 -0.001682827, %v384_v44 }
 0x103   : > { %v365_v49 = vmul.f32 %v363_v45, %v351_v25  ;;  %v391_v50 = vmul.f32 %v389_v46, %v351_v25  ;;  %v362_v51 = vmul.f32 %v360_v47, %v352_v32 }
 0x104   : > { %v388_v52 = vmul.f32 %v386_v48, %v352_v32 }
 0x105   : > { %v367_v53 = vadd.f32 -0.00073499064, %v365_v49  ;;  %v393_v54 = vadd.f32 -0.014264739, %v391_v50  ;;  %v364_v55 = vadd.f32 -5.6925062e-05, %v362_v51 }
 0x106   : > { %v390_v56 = vadd.f32 -0.0073733293, %v388_v52 }
 0x107   : > { %v369_v57 = vmul.f32 %v367_v53, %v351_v25  ;;  %544 = vrcp.f32 %v393_v54  ;;  %v366_v58 = vmul.f32 %v364_v55, %v352_v32 }
 0x108   : > { %v392_v59 = vmul.f32 %v390_v56, %v352_v32 }
 0x109   : > { %v371_v60 = vadd.f32 -0.0029546, %v369_v57  ;;  %v368_v61 = vadd.f32 -0.00073499064, %v366_v58 }
 0x10a   : > { %v394_v62 = vadd.f32 -0.014264739, %v392_v59 }
 0x10b   : > { %v373_v63 = vmul.f32 %v371_v60, %v351_v25  ;;  %v370_v0 = vmul.f32 %v368_v61, %v352_v32 }
 0x10c   : > { %546 = vrcp.f32 %v394_v62 }
 0x10d   : > { %v372_v1 = vadd.f32 -0.0029546, %v370_v0  ;;  %v375_v2 = vadd.f32 -0.016096033, %v373_v63 }
 0x10f   : > { %v374_v3 = vmul.f32 %v372_v1, %v352_v32  ;;  %v377_v4 = vmul.f32 %v493_v23, %v375_v2 }
 0x111   : > { %v376_v6 = vadd.f32 -0.016096033, %v374_v3 }
 0x113   : > { %v378_v10 = vmul.f32 %v494_v29, %v376_v6 }
 0x114   : > { %v545_v5 = vpop.eup %544 }
 0x115   : > { %v397_v7 = vmul.f32 %v545_v5, %v377_v4 }
 0x117   : > { %v399_v9 = vadd.f32 1.0, %v397_v7 }
 0x119   : > { %v547_v11 = vpop.eup %546  ;;  %v401_v12 = vmul.f32 %v399_v9, %v343_v8 }
 0x11a   : > { %v398_v13 = vmul.f32 %v547_v11, %v378_v10 }
 0x11b   : > { %403 = vst [vmem:[%s221_s20] sm:$0xff] %v401_v12 }
 0x11c   : > { %v400_v15 = vadd.f32 1.0, %v398_v13 }
 0x11e   : > { %v402_v16 = vmul.f32 %v400_v15, %v344_v14 }
 0x120   : > { %404 = vst [vmem:[%s221_s20 + $0x8] sm:$0xff] %v402_v16 }
 0x121 PF: > { %s14_s15 = sadd.s32 1, %s554_s15  }
 0x122   : > { %p11_p4 = scmp.ge.s32.totalorder %s14_s15, 4  }
 0x124   :  { %13 = sbr.rel (!%p11_p4) target bundleno = 1 (0x1), region = 69 }

// kernel: state_mo_prev_forward.7
= control target key start
LH: loop header
LB: loop body
LE: loop exit
PB: predicated region body
PF: predicated region fallthrough
CT: control target
= control target key end

     0   :  { %s4838_s27 = smov 0   ;;  %s6619_s0 = inlined_call_operand.vmem [shape: f32[32,128], index: 0, kind: input, shape index: {}]   ;;  %s6620_s1 = inlined_call_operand.vmem [shape: bf16[128,128], index: 1, kind: input, shape index: {}]   ;;  %s6621_s2 = inlined_call_operand.vmem [shape: f32[1,128], index: 2, kind: input, shape index: {}]   ;;  %s6622_s3 = inlined_call_operand.vmem [shape: f32[32,128], index: 3, kind: input, shape index: {}]   ;;  %s6623_s4 = inlined_call_operand.vmem [shape: bf16[128,2048], index: 4, kind: input, shape index: {}]   ;;  %s6624_s5 = inlined_call_operand.vmem [shape: f32[1,2048], index: 5, kind: input, shape index: {}]   ;;  %s6625_s6 = inlined_call_operand.vmem [shape: bf16[2048,32], index: 6, kind: input, shape index: {}]   ;;  %s6626_s7 = inlined_call_operand.vmem [shape: f32[1,32], index: 7, kind: input, shape index: {}]   ;;  %s6627_s8 = inlined_call_operand.vmem [shape: f32[32,32], index: 8, kind: output, shape index: {}]  }
   0x1 LB: > { %s4054_s28 = sadd.s32 4294967295, %s4788_s27   ;;  %p4058_p0 = scmp.ge.s32.totalorder %s4788_s27, 1  ;;  %s4788_s27 = sphi %s4838_s27, %s18_s27  }
   0x2   : > { %p274_p1 = scmp.lt.s32.totalorder %s4788_s27, 3 }
   0x4   : > { %p275_p2 = pnand %p4058_p0, %p274_p1 }
   0x6   : > { %278 = sbr.rel (%p275_p2) target bundleno = 910 (0x38e), region = 52 }
   0xb   : > { %v4581_v0 = vld [vmem:[%s6620_s1 + $0x38] sm:$0xff]   ;;  %v4790_v1 = vmov 0.0   ;;  %v4582_v2 = vld [vmem:[%s6620_s1 + $0x30] sm:$0xff]   ;;  %vm4791_vm0 = vmmov 0   ;;  %s4059_s11 = sshll.u32 %s4054_s28, 1  ;;  %v4583_v3 = vld [vmem:[%s6620_s1 + $0x28] sm:$0xff]  }
   0xc   : > { %4550 = vmatprep.subr.bf16.mxu0 %v4790_v1  ;;  %4566 = vmatprep.mubr.msk.bf16.mxu0 %vm4791_vm0, %v4790_v1  ;;  %p314_p3 = scmp.lt.s32.totalorder %s4059_s11, 3  ;;  %v564_v4 = vld [vmem:[%s6623_s4 + $0x380] sm:$0xff]  ;;  %v4585_v16 = vld [vmem:[%s6620_s1 + $0x18] sm:$0xff]   ;;  %v4586_v19 = vld [vmem:[%s6620_s1 + $0x10] sm:$0xff]   ;;  %vm3983_vm1 = vcmask 261120  }
   0xd   : > { %4551 = vmatpush3.bf16.msra.mxu0 %v4581_v0  ;;  %v572_v5 = vld [vmem:[%s6623_s4 + $0x3c0] sm:$0xff]  ;;  %v4587_v24 = vld [vmem:[%s6620_s1 + $0x8] sm:$0xff]  }
   0xe   : > { %4552 = vmatprep.subr.bf16.mxu0 %v4790_v1  ;;  %v4187_v6 = vcombine.high %v564_v4, %v572_v5  ;;  %v4186_v7 = vcombine.low %v564_v4, %v572_v5  ;;  %v4584_v8 = vld [vmem:[%s6620_s1 + $0x20] sm:$0xff]   ;;  %s6644_s11 = smov (!%p314_p3, %s4059_s11), 3  ;;  %v565_v29 = vld [vmem:[%s6623_s4 + $0x388] sm:$0xff] }
   0xf   : > { %v548_v9 = vld [vmem:[%s6623_s4 + $0x300] sm:$0xff]  ;;  %s4895_s16 = sshll.u32 %s6644_s11, 3  ;;  %v573_v30 = vld [vmem:[%s6623_s4 + $0x3c8] sm:$0xff] }
  0x10   : > { %v556_v10 = vld [vmem:[%s6623_s4 + $0x340] sm:$0xff]  ;;  %1304 = vmatprep.subr.bf16.mxu1 %v4187_v6  ;;  %s317_s29 = scalar_lea.vmem %s6619_s0, %s4895_s16  ;;  %v549_v36 = vld [vmem:[%s6623_s4 + $0x308] sm:$0xff]  ;;  %v4189_v38 = vcombine.high %v565_v29, %v573_v30  ;;  %v4188_v41 = vcombine.low %v565_v29, %v573_v30  ;;  %s323_s23 = scalar_lea.vmem %s6622_s3, %s4895_s16  ;;  %v550_v29 = vld [vmem:[%s6623_s4 + $0x310] sm:$0xff] }
  0x11   : > { %4553 = vmatpush3.bf16.msra.mxu0 %v4582_v2  ;;  %v4171_v11 = vcombine.high %v548_v9, %v556_v10  ;;  %v532_v12 = vld [vmem:[%s6623_s4 + $0x280] sm:$0xff]  ;;  %1305 = vmatpush1.bf16.msra.mxu1 %v4186_v7  ;;  %v4170_v14 = vcombine.low %v548_v9, %v556_v10  ;;  %v333_v33 = vld [vmem:[%s317_s29 + $0x8] sm:$0xff]  ;;  %s329_s14 = scalar_lea.vmem %s6627_s8, %s4895_s16 }
  0x12   : > { %4554 = vmatprep.subr.bf16.mxu0 %v4790_v1  ;;  %v540_v13 = vld [vmem:[%s6623_s4 + $0x2c0] sm:$0xff]  ;;  %v557_v37 = vld [vmem:[%s6623_s4 + $0x348] sm:$0xff] }
  0x13   : > { %1306 = vmatprep.subr.bf16.mxu1 %v4171_v11  ;;  %v4155_v15 = vcombine.high %v532_v12, %v540_v13  ;;  %v516_v17 = vld [vmem:[%s6623_s4 + $0x200] sm:$0xff]  ;;  %v4154_v20 = vcombine.low %v532_v12, %v540_v13  ;;  %v533_v42 = vld [vmem:[%s6623_s4 + $0x288] sm:$0xff]  ;;  %v4173_v44 = vcombine.high %v549_v36, %v557_v37  ;;  %v4172_v45 = vcombine.low %v549_v36, %v557_v37  ;;  %v566_v12 = vld [vmem:[%s6623_s4 + $0x390] sm:$0xff] }
  0x14   : > { %v524_v18 = vld [vmem:[%s6623_s4 + $0x240] sm:$0xff]  ;;  %v541_v43 = vld [vmem:[%s6623_s4 + $0x2c8] sm:$0xff]  ;;  %v574_v13 = vld [vmem:[%s6623_s4 + $0x3d0] sm:$0xff] }
  0x15   : > { %4555 = vmatpush3.bf16.msra.mxu0 %v4583_v3  ;;  %1307 = vmatpush1.bf16.msra.mxu1 %v4170_v14  ;;  %v500_v21 = vld [vmem:[%s6623_s4 + $0x180] sm:$0xff]  ;;  %v4139_v23 = vcombine.high %v516_v17, %v524_v18  ;;  %v4138_v25 = vcombine.low %v516_v17, %v524_v18  ;;  %v517_v46 = vld [vmem:[%s6623_s4 + $0x208] sm:$0xff]  ;;  %v4157_v48 = vcombine.high %v533_v42, %v541_v43  ;;  %v567_v14 = vld [vmem:[%s6623_s4 + $0x398] sm:$0xff] }
  0x16   : > { %4556 = vmatprep.subr.bf16.mxu0 %v4790_v1  ;;  %v508_v22 = vld [vmem:[%s6623_s4 + $0x1c0] sm:$0xff]  ;;  %1308 = vmatprep.subr.bf16.mxu1 %v4155_v15  ;;  %v525_v47 = vld [vmem:[%s6623_s4 + $0x248] sm:$0xff]  ;;  %v4156_v49 = vcombine.low %v533_v42, %v541_v43  ;;  %v4191_v15 = vcombine.high %v566_v12, %v574_v13  ;;  %v4190_v17 = vcombine.low %v566_v12, %v574_v13  ;;  %v543_v42 = vld [vmem:[%s6623_s4 + $0x2d8] sm:$0xff] }
  0x17   : > { %v484_v26 = vld [vmem:[%s6623_s4 + $0x100] sm:$0xff]  ;;  %v4123_v28 = vcombine.high %v500_v21, %v508_v22  ;;  %v4122_v34 = vcombine.low %v500_v21, %v508_v22  ;;  %v501_v50 = vld [vmem:[%s6623_s4 + $0x188] sm:$0xff]  ;;  %v4141_v52 = vcombine.high %v517_v46, %v525_v47  ;;  %v4140_v53 = vcombine.low %v517_v46, %v525_v47  ;;  %v518_v47 = vld [vmem:[%s6623_s4 + $0x210] sm:$0xff] }
  0x18   : > { %v492_v27 = vld [vmem:[%s6623_s4 + $0x140] sm:$0xff]  ;;  %v509_v51 = vld [vmem:[%s6623_s4 + $0x1c8] sm:$0xff] }
  0x19   : > { %4557 = vmatpush3.bf16.msra.mxu0 %v4584_v8  ;;  %1309 = vmatpush1.bf16.msra.mxu1 %v4154_v20  ;;  %v4588_v31 = vld [vmem:[%s6620_s1] sm:$0xff]   ;;  %v4107_v35 = vcombine.high %v484_v26, %v492_v27  ;;  %v4106_v39 = vcombine.low %v484_v26, %v492_v27  ;;  %v485_v54 = vld [vmem:[%s6623_s4 + $0x108] sm:$0xff]  ;;  %v4125_v56 = vcombine.high %v501_v50, %v509_v51  ;;  %v4792_v20 = vmov 0  }
  0x1a   : > { %4558 = vmatprep.subr.bf16.mxu0 %v4790_v1  ;;  %1310 = vmatprep.subr.bf16.mxu1 %v4139_v23  ;;  %v332_v32 = vld [vmem:[%s317_s29] sm:$0xff]  ;;  %v493_v55 = vld [vmem:[%s6623_s4 + $0x148] sm:$0xff]  ;;  %v4124_v57 = vcombine.low %v501_v50, %v509_v51  ;;  %v527_v50 = vld [vmem:[%s6623_s4 + $0x258] sm:$0xff] }
  0x1b   : > { %v334_v40 = vpack.c.bf16 %v333_v33, %v332_v32  ;;  %v4109_v58 = vcombine.high %v485_v54, %v493_v55  ;;  %v4108_v59 = vcombine.low %v485_v54, %v493_v55  ;;  %v468_v60 = vld [vmem:[%s6623_s4 + $0x80] sm:$0xff]  ;;  %v469_v62 = vld [vmem:[%s6623_s4 + $0x88] sm:$0xff]  ;;  %1336 = vmatprep.mubr.bf16.mxu1 %v4792_v20  ;;  %v551_v32 = vld [vmem:[%s6623_s4 + $0x318] sm:$0xff] }
  0x1c   : > { %v476_v61 = vld [vmem:[%s6623_s4 + $0xc0] sm:$0xff]  ;;  %v477_v0 = vld [vmem:[%s6623_s4 + $0xc8] sm:$0xff]  ;;  %v559_v33 = vld [vmem:[%s6623_s4 + $0x358] sm:$0xff] }
  0x1d   : > { %4559 = vmatpush3.bf16.msra.mxu0 %v4585_v16  ;;  %1311 = vmatpush1.bf16.msra.mxu1 %v4138_v25  ;;  %v4091_v63 = vcombine.high %v468_v60, %v476_v61  ;;  %v4093_v2 = vcombine.high %v469_v62, %v477_v0  ;;  %v4090_v3 = vcombine.low %v468_v60, %v476_v61  ;;  %v452_v4 = vld [vmem:[%s6623_s4] sm:$0xff]  ;;  %v453_v6 = vld [vmem:[%s6623_s4 + $0x8] sm:$0xff]  ;;  %v575_v16 = vld [vmem:[%s6623_s4 + $0x3d8] sm:$0xff] }
  0x1e   : > { %4560 = vmatprep.subr.bf16.mxu0 %v4790_v1  ;;  %1312 = vmatprep.subr.bf16.mxu1 %v4123_v28  ;;  %v460_v5 = vld [vmem:[%s6623_s4 + $0x40] sm:$0xff]  ;;  %v461_v8 = vld [vmem:[%s6623_s4 + $0x48] sm:$0xff]  ;;  %v4192_v18 = vcombine.low %v567_v14, %v575_v16  ;;  %v502_v55 = vld [vmem:[%s6623_s4 + $0x190] sm:$0xff] }
  0x1f   : > { %v4075_v7 = vcombine.high %v452_v4, %v460_v5  ;;  %v4076_v9 = vcombine.low %v453_v6, %v461_v8  ;;  %v4077_v10 = vcombine.high %v453_v6, %v461_v8  ;;  %v4074_v11 = vcombine.low %v452_v4, %v460_v5  ;;  %v4065_v21 = vld [vmem:[%s6621_s2] ss:$0 sm:$0xff]  ;;  %v448_v27 = vld [vmem:[%s323_s23 + $0x8] sm:$0xff]  ;;  %v478_v8 = vld [vmem:[%s6623_s4 + $0xd0] sm:$0xff] }
  0x20   : > { %v447_v25 = vld [vmem:[%s323_s23] sm:$0xff] }
  0x21   : > { %4561 = vmatpush3.bf16.msra.mxu0 %v4586_v19  ;;  %1313 = vmatpush1.bf16.msra.mxu1 %v4122_v34  ;;  %v4193_v19 = vcombine.high %v567_v14, %v575_v16  ;;  %v462_v16 = vld [vmem:[%s6623_s4 + $0x50] sm:$0xff] }
  0x22   : > { %4562 = vmatprep.subr.bf16.mxu0 %v4790_v1  ;;  %1314 = vmatprep.subr.bf16.mxu1 %v4107_v35 }
  0x25   : > { %4563 = vmatpush3.bf16.msra.mxu0 %v4587_v24  ;;  %1315 = vmatpush1.bf16.msra.mxu1 %v4106_v39  ;;  %v534_v39 = vld [vmem:[%s6623_s4 + $0x290] sm:$0xff] }
  0x26   : > { %4564 = vmatprep.subr.bf16.mxu0 %v4790_v1  ;;  %v4092_v1 = vcombine.low %v469_v62, %v477_v0  ;;  %1316 = vmatprep.subr.bf16.mxu1 %v4091_v63  ;;  %v486_v63 = vld [vmem:[%s6623_s4 + $0x110] sm:$0xff] }
  0x27   : > { %v494_v0 = vld [vmem:[%s6623_s4 + $0x150] sm:$0xff] }
  0x28   : > { %v4111_v5 = vcombine.high %v486_v63, %v494_v0 }
  0x29   : > { %4565 = vmatpush3.bf16.msra.mxu0 %v4588_v31  ;;  %1317 = vmatpush1.bf16.msra.mxu1 %v4090_v3  ;;  %v558_v31 = vld [vmem:[%s6623_s4 + $0x350] sm:$0xff] }
  0x2a   : > { %1347 = vmatprep.subr.bf16.mxu0 %v4189_v38  ;;  %1318 = vmatprep.subr.bf16.mxu1 %v4075_v7  ;;  %v4175_v37 = vcombine.high %v550_v29, %v558_v31  ;;  %v4177_v38 = vcombine.high %v551_v32, %v559_v33  ;;  %v4174_v43 = vcombine.low %v550_v29, %v558_v31  ;;  %v470_v7 = vld [vmem:[%s6623_s4 + $0x90] sm:$0xff] }
  0x2b   : > { %v4095_v13 = vcombine.high %v470_v7, %v478_v8 }
  0x2c   : > { %4567 = vmatmul.mubr.bf16.vlgmr.msra.gmra.mxu0 %v334_v40  ;;  %v542_v40 = vld [vmem:[%s6623_s4 + $0x2d0] sm:$0xff] }
  0x2d   : > { %1348 = vmatpush1.bf16.msra.mxu0 %v4188_v41  ;;  %1319 = vmatpush1.bf16.msra.mxu1 %v4074_v11  ;;  %v535_v41 = vld [vmem:[%s6623_s4 + $0x298] sm:$0xff]  ;;  %v4158_v51 = vcombine.low %v534_v39, %v542_v40  ;;  %v4110_v11 = vcombine.low %v486_v63, %v494_v0 }
  0x2e   : > { %1349 = vmatprep.subr.bf16.mxu0 %v4173_v44  ;;  %1379 = vmatprep.mubr.bf16.mxu0 %v4792_v20  ;;  %v4176_v44 = vcombine.low %v551_v32, %v559_v33  ;;  %v4161_v46 = vcombine.high %v535_v41, %v543_v42  ;;  %v552_v32 = vld [vmem:[%s6623_s4 + $0x320] sm:$0xff] }
  0x2f   : > { %1390 = vmatprep.subr.bf16.mxu1 %v4191_v15  ;;  %v454_v15 = vld [vmem:[%s6623_s4 + $0x10] sm:$0xff]  ;;  %v560_v33 = vld [vmem:[%s6623_s4 + $0x360] sm:$0xff] }
  0x31   : > { %1350 = vmatpush1.bf16.msra.mxu0 %v4172_v45  ;;  %v4159_v45 = vcombine.high %v534_v39, %v542_v40  ;;  %v4179_v39 = vcombine.high %v552_v32, %v560_v33 }
  0x32   : > { %1351 = vmatprep.subr.bf16.mxu0 %v4157_v48  ;;  %v526_v48 = vld [vmem:[%s6623_s4 + $0x250] sm:$0xff] }
  0x35   : > { %1352 = vmatpush1.bf16.msra.mxu0 %v4156_v49  ;;  %v519_v49 = vld [vmem:[%s6623_s4 + $0x218] sm:$0xff] }
  0x36   : > { %1353 = vmatprep.subr.bf16.mxu0 %v4141_v52  ;;  %v4160_v52 = vcombine.low %v535_v41, %v543_v42  ;;  %v4145_v54 = vcombine.high %v519_v49, %v527_v50  ;;  %v4144_v60 = vcombine.low %v519_v49, %v527_v50  ;;  %v536_v41 = vld [vmem:[%s6623_s4 + $0x2a0] sm:$0xff] }
  0x37   : > { %v544_v42 = vld [vmem:[%s6623_s4 + $0x2e0] sm:$0xff] }
  0x38   : > { %v520_v49 = vld [vmem:[%s6623_s4 + $0x220] sm:$0xff] }
  0x39   : > { %1354 = vmatpush1.bf16.msra.mxu0 %v4140_v53  ;;  %v4143_v53 = vcombine.high %v518_v47, %v526_v48  ;;  %v528_v50 = vld [vmem:[%s6623_s4 + $0x260] sm:$0xff] }
  0x3a   : > { %1355 = vmatprep.subr.bf16.mxu0 %v4125_v56  ;;  %v510_v56 = vld [vmem:[%s6623_s4 + $0x1d0] sm:$0xff] }
  0x3b   : > { %v4127_v61 = vcombine.high %v502_v55, %v510_v56  ;;  %v4126_v3 = vcombine.low %v502_v55, %v510_v56  ;;  %v4147_v55 = vcombine.high %v520_v49, %v528_v50 }
  0x3d   : > { %1356 = vmatpush1.bf16.msra.mxu0 %v4124_v57  ;;  %v503_v57 = vld [vmem:[%s6623_s4 + $0x198] sm:$0xff] }
  0x3e   : > { %1357 = vmatprep.subr.bf16.mxu0 %v4109_v58  ;;  %v511_v58 = vld [vmem:[%s6623_s4 + $0x1d8] sm:$0xff] }
  0x3f   : > { %v4129_v62 = vcombine.high %v503_v57, %v511_v58  ;;  %v4128_v4 = vcombine.low %v503_v57, %v511_v58  ;;  %v504_v57 = vld [vmem:[%s6623_s4 + $0x1a0] sm:$0xff] }
  0x40   : > { %v512_v58 = vld [vmem:[%s6623_s4 + $0x1e0] sm:$0xff] }
  0x41   : > { %1358 = vmatpush1.bf16.msra.mxu0 %v4108_v59  ;;  %v4142_v59 = vcombine.low %v518_v47, %v526_v48  ;;  %v4163_v47 = vcombine.high %v536_v41, %v544_v42  ;;  %v4131_v63 = vcombine.high %v504_v57, %v512_v58 }
  0x42   : > { %1359 = vmatprep.subr.bf16.mxu0 %v4093_v2  ;;  %v495_v2 = vld [vmem:[%s6623_s4 + $0x158] sm:$0xff] }
  0x45   : > { %1360 = vmatpush1.bf16.msra.mxu0 %v4092_v1  ;;  %v487_v1 = vld [vmem:[%s6623_s4 + $0x118] sm:$0xff] }
  0x46   : > { %1361 = vmatprep.subr.bf16.mxu0 %v4077_v10  ;;  %v4113_v6 = vcombine.high %v487_v1, %v495_v2  ;;  %v479_v10 = vld [vmem:[%s6623_s4 + $0xd8] sm:$0xff]  ;;  %v4112_v12 = vcombine.low %v487_v1, %v495_v2  ;;  %v488_v1 = vld [vmem:[%s6623_s4 + $0x120] sm:$0xff] }
  0x47   : > { %v496_v2 = vld [vmem:[%s6623_s4 + $0x160] sm:$0xff] }
  0x49   : > { %1362 = vmatpush1.bf16.msra.mxu0 %v4076_v9  ;;  %v471_v9 = vld [vmem:[%s6623_s4 + $0x98] sm:$0xff] }
  0x4a   : > { %1433 = vmatprep.subr.bf16.mxu0 %v4193_v19  ;;  %v4097_v14 = vcombine.high %v471_v9, %v479_v10  ;;  %v4094_v19 = vcombine.low %v470_v7, %v478_v8  ;;  %v4115_v7 = vcombine.high %v488_v1, %v496_v2 }
  0xec   : > { %v440_v22 = vpop.f32.mrf.mxu0 }
  0xed   : > { %v441_v24 = vadd.f32 %v4065_v21, %v440_v22  ;;  %v4079_v22 = vcombine.high %v454_v15, %v462_v16 }
  0xee   : > { %v4568_v23 = vpop.f32.mrf.mxu0 }
  0xef   : > { %v449_v34 = vadd.f32 %v447_v25, %v441_v24  ;;  %v568_v24 = vld [vmem:[%s6623_s4 + $0x3a0] sm:$0xff] }
  0xf0   : > { %v443_v26 = vpop.f32.mrf.mxu0  ;;  %v576_v25 = vld [vmem:[%s6623_s4 + $0x3e0] sm:$0xff] }
  0xf1   : > { %v444_v28 = vadd.f32 %v4065_v21, %v443_v26  ;;  %v4096_v21 = vcombine.low %v471_v9, %v479_v10  ;;  %v569_v26 = vld [vmem:[%s6623_s4 + $0x3a8] sm:$0xff]  ;;  %v472_v9 = vld [vmem:[%s6623_s4 + $0xa0] sm:$0xff] }
  0xf2   : > { %v4569_v30 = vpop.f32.mrf.mxu0  ;;  %v480_v10 = vld [vmem:[%s6623_s4 + $0xe0] sm:$0xff] }
  0xf3   : > { %v450_v35 = vadd.f32 %v448_v27, %v444_v28  ;;  %v577_v27 = vld [vmem:[%s6623_s4 + $0x3e8] sm:$0xff]  ;;  %v4078_v28 = vcombine.low %v454_v15, %v462_v16  ;;  %v4195_v30 = vcombine.high %v568_v24, %v576_v25  ;;  %v4099_v15 = vcombine.high %v472_v9, %v480_v10 }
  0xf4   : > { %v4197_v31 = vcombine.high %v569_v26, %v577_v27 }
  0xf5   : > { %v5015_v36 = vpack.c.bf16 %v450_v35, %v449_v34  ;;  %v553_v34 = vld [vmem:[%s6623_s4 + $0x328] sm:$0xff] }
  0xf6   : > { %v561_v35 = vld [vmem:[%s6623_s4 + $0x368] sm:$0xff] }
  0xf7   : > { %1337 = vmatmul.mubr.bf16.vlgmr.msra.gmra.mxu1 %v5015_v36  ;;  %1380 = vmatmul.mubr.bf16.vlgmr.msra.gmra.mxu0 %v5015_v36  ;;  %v4181_v40 = vcombine.high %v553_v34, %v561_v35 }
  0xf8   : > { %1391 = vmatpush1.bf16.msra.mxu1 %v4190_v17  ;;  %1434 = vmatpush1.bf16.msra.mxu0 %v4192_v18  ;;  %v455_v17 = vld [vmem:[%s6623_s4 + $0x18] sm:$0xff] }
  0xf9   : > { %1392 = vmatprep.subr.bf16.mxu1 %v4175_v37  ;;  %1435 = vmatprep.subr.bf16.mxu0 %v4177_v38  ;;  %v463_v18 = vld [vmem:[%s6623_s4 + $0x58] sm:$0xff]  ;;  %v4194_v37 = vcombine.low %v568_v24, %v576_v25  ;;  %v4196_v38 = vcombine.low %v569_v26, %v577_v27  ;;  %v570_v26 = vld [vmem:[%s6623_s4 + $0x3b0] sm:$0xff] }
  0xfa   : > { %1422 = vmatprep.mubr.bf16.mxu1 %v4792_v20  ;;  %1465 = vmatprep.mubr.bf16.mxu0 %v4792_v20  ;;  %v4081_v23 = vcombine.high %v455_v17, %v463_v18  ;;  %v4080_v29 = vcombine.low %v455_v17, %v463_v18  ;;  %v456_v17 = vld [vmem:[%s6623_s4 + $0x20] sm:$0xff]  ;;  %v578_v27 = vld [vmem:[%s6623_s4 + $0x3f0] sm:$0xff] }
  0xfb   : > { %v464_v18 = vld [vmem:[%s6623_s4 + $0x60] sm:$0xff] }
  0xfc   : > { %1393 = vmatpush1.bf16.msra.mxu1 %v4174_v43  ;;  %1436 = vmatpush1.bf16.msra.mxu0 %v4176_v44  ;;  %v537_v43 = vld [vmem:[%s6623_s4 + $0x2a8] sm:$0xff]  ;;  %v4083_v24 = vcombine.high %v456_v17, %v464_v18 }
  0xfd   : > { %1394 = vmatprep.subr.bf16.mxu1 %v4159_v45  ;;  %1437 = vmatprep.subr.bf16.mxu0 %v4161_v46  ;;  %v545_v44 = vld [vmem:[%s6623_s4 + $0x2e8] sm:$0xff]  ;;  %v4178_v45 = vcombine.low %v552_v32, %v560_v33  ;;  %v4180_v46 = vcombine.low %v553_v34, %v561_v35  ;;  %v4199_v32 = vcombine.high %v570_v26, %v578_v27  ;;  %v554_v34 = vld [vmem:[%s6623_s4 + $0x330] sm:$0xff] }
  0xfe   : > { %v4165_v48 = vcombine.high %v537_v43, %v545_v44  ;;  %v562_v35 = vld [vmem:[%s6623_s4 + $0x370] sm:$0xff] }
 0x100   : > { %1395 = vmatpush1.bf16.msra.mxu1 %v4158_v51  ;;  %1438 = vmatpush1.bf16.msra.mxu0 %v4160_v52  ;;  %v521_v51 = vld [vmem:[%s6623_s4 + $0x228] sm:$0xff] }
 0x101   : > { %1396 = vmatprep.subr.bf16.mxu1 %v4143_v53  ;;  %1439 = vmatprep.subr.bf16.mxu0 %v4145_v54  ;;  %v529_v52 = vld [vmem:[%s6623_s4 + $0x268] sm:$0xff]  ;;  %v4162_v53 = vcombine.low %v536_v41, %v544_v42  ;;  %v4164_v54 = vcombine.low %v537_v43, %v545_v44  ;;  %v4183_v41 = vcombine.high %v554_v34, %v562_v35  ;;  %v538_v43 = vld [vmem:[%s6623_s4 + $0x2b0] sm:$0xff] }
 0x102   : > { %v4149_v56 = vcombine.high %v521_v51, %v529_v52  ;;  %v546_v44 = vld [vmem:[%s6623_s4 + $0x2f0] sm:$0xff] }
 0x104   : > { %1397 = vmatpush1.bf16.msra.mxu1 %v4142_v59  ;;  %1440 = vmatpush1.bf16.msra.mxu0 %v4144_v60  ;;  %v505_v59 = vld [vmem:[%s6623_s4 + $0x1a8] sm:$0xff] }
 0x105   : > { %1398 = vmatprep.subr.bf16.mxu1 %v4127_v61  ;;  %1441 = vmatprep.subr.bf16.mxu0 %v4129_v62  ;;  %v513_v60 = vld [vmem:[%s6623_s4 + $0x1e8] sm:$0xff]  ;;  %v4146_v61 = vcombine.low %v520_v49, %v528_v50  ;;  %v4148_v62 = vcombine.low %v521_v51, %v529_v52  ;;  %v4167_v49 = vcombine.high %v538_v43, %v546_v44  ;;  %v522_v51 = vld [vmem:[%s6623_s4 + $0x230] sm:$0xff] }
 0x106   : > { %v4133_v0 = vcombine.high %v505_v59, %v513_v60  ;;  %v530_v52 = vld [vmem:[%s6623_s4 + $0x270] sm:$0xff] }
 0x108   : > { %1399 = vmatpush1.bf16.msra.mxu1 %v4126_v3  ;;  %1442 = vmatpush1.bf16.msra.mxu0 %v4128_v4  ;;  %v489_v3 = vld [vmem:[%s6623_s4 + $0x128] sm:$0xff] }
 0x109   : > { %1400 = vmatprep.subr.bf16.mxu1 %v4111_v5  ;;  %1443 = vmatprep.subr.bf16.mxu0 %v4113_v6  ;;  %v497_v4 = vld [vmem:[%s6623_s4 + $0x168] sm:$0xff]  ;;  %v4130_v5 = vcombine.low %v504_v57, %v512_v58  ;;  %v4132_v6 = vcombine.low %v505_v59, %v513_v60  ;;  %v4151_v57 = vcombine.high %v522_v51, %v530_v52  ;;  %v506_v59 = vld [vmem:[%s6623_s4 + $0x1b0] sm:$0xff] }
 0x10a   : > { %v4117_v8 = vcombine.high %v489_v3, %v497_v4  ;;  %v514_v60 = vld [vmem:[%s6623_s4 + $0x1f0] sm:$0xff] }
 0x10c   : > { %1401 = vmatpush1.bf16.msra.mxu1 %v4110_v11  ;;  %1444 = vmatpush1.bf16.msra.mxu0 %v4112_v12  ;;  %v473_v11 = vld [vmem:[%s6623_s4 + $0xa8] sm:$0xff] }
 0x10d   : > { %1402 = vmatprep.subr.bf16.mxu1 %v4095_v13  ;;  %1445 = vmatprep.subr.bf16.mxu0 %v4097_v14  ;;  %v481_v12 = vld [vmem:[%s6623_s4 + $0xe8] sm:$0xff]  ;;  %v4114_v13 = vcombine.low %v488_v1, %v496_v2  ;;  %v4116_v14 = vcombine.low %v489_v3, %v497_v4  ;;  %v490_v2 = vld [vmem:[%s6623_s4 + $0x130] sm:$0xff]  ;;  %v491_v4 = vld [vmem:[%s6623_s4 + $0x138] sm:$0xff] }
 0x10e   : > { %v4101_v16 = vcombine.high %v473_v11, %v481_v12  ;;  %v498_v3 = vld [vmem:[%s6623_s4 + $0x170] sm:$0xff] }
 0x110   : > { %1403 = vmatpush1.bf16.msra.mxu1 %v4094_v19  ;;  %1446 = vmatpush1.bf16.msra.mxu0 %v4096_v21  ;;  %v457_v19 = vld [vmem:[%s6623_s4 + $0x28] sm:$0xff] }
 0x111   : > { %1404 = vmatprep.subr.bf16.mxu1 %v4079_v22  ;;  %1447 = vmatprep.subr.bf16.mxu0 %v4081_v23  ;;  %v465_v21 = vld [vmem:[%s6623_s4 + $0x68] sm:$0xff]  ;;  %v4098_v22 = vcombine.low %v472_v9, %v480_v10  ;;  %v4100_v23 = vcombine.low %v473_v11, %v481_v12  ;;  %v474_v10 = vld [vmem:[%s6623_s4 + $0xb0] sm:$0xff]  ;;  %v475_v12 = vld [vmem:[%s6623_s4 + $0xb8] sm:$0xff] }
 0x112   : > { %v4085_v25 = vcombine.high %v457_v19, %v465_v21  ;;  %v482_v11 = vld [vmem:[%s6623_s4 + $0xf0] sm:$0xff] }
 0x114   : > { %1405 = vmatpush1.bf16.msra.mxu1 %v4078_v28  ;;  %1448 = vmatpush1.bf16.msra.mxu0 %v4080_v29  ;;  %v571_v28 = vld [vmem:[%s6623_s4 + $0x3b8] sm:$0xff] }
 0x115   : > { %1476 = vmatprep.subr.bf16.mxu1 %v4195_v30  ;;  %1519 = vmatprep.subr.bf16.mxu0 %v4197_v31  ;;  %v579_v29 = vld [vmem:[%s6623_s4 + $0x3f8] sm:$0xff]  ;;  %v4082_v30 = vcombine.low %v456_v17, %v464_v18  ;;  %v4084_v31 = vcombine.low %v457_v19, %v465_v21  ;;  %v458_v18 = vld [vmem:[%s6623_s4 + $0x30] sm:$0xff] }
 0x116   : > { %v4201_v33 = vcombine.high %v571_v28, %v579_v29  ;;  %v466_v19 = vld [vmem:[%s6623_s4 + $0x70] sm:$0xff]  ;;  %v459_v21 = vld [vmem:[%s6623_s4 + $0x38] sm:$0xff] }
 0x117   : > { %1423 = vmatmul.mubr.bf16.vlgmr.msra.gmra.mxu1 %v5015_v36  ;;  %1466 = vmatmul.mubr.bf16.vlgmr.msra.gmra.mxu0 %v5015_v36 }
 0x118   : > { %1477 = vmatpush1.bf16.msra.mxu1 %v4194_v37  ;;  %1520 = vmatpush1.bf16.msra.mxu0 %v4196_v38  ;;  %v555_v37 = vld [vmem:[%s6623_s4 + $0x338] sm:$0xff] }
 0x119   : > { %1478 = vmatprep.subr.bf16.mxu1 %v4179_v39  ;;  %1521 = vmatprep.subr.bf16.mxu0 %v4181_v40  ;;  %v563_v38 = vld [vmem:[%s6623_s4 + $0x378] sm:$0xff]  ;;  %v4198_v39 = vcombine.low %v570_v26, %v578_v27  ;;  %v4200_v40 = vcombine.low %v571_v28, %v579_v29  ;;  %v4086_v27 = vcombine.low %v458_v18, %v466_v19 }
 0x11a   : > { %1508 = vmatprep.mubr.bf16.mxu1 %v4792_v20  ;;  %1551 = vmatprep.mubr.bf16.mxu0 %v4792_v20  ;;  %v4185_v42 = vcombine.high %v555_v37, %v563_v38  ;;  %v4589_v29 = vld [vmem:[%s6625_s6 + $0x78] sm:$0xff]  }
 0x11c   : > { %1479 = vmatpush1.bf16.msra.mxu1 %v4178_v45  ;;  %1522 = vmatpush1.bf16.msra.mxu0 %v4180_v46  ;;  %v539_v45 = vld [vmem:[%s6623_s4 + $0x2b8] sm:$0xff] }
 0x11d   : > { %1480 = vmatprep.subr.bf16.mxu1 %v4163_v47  ;;  %1523 = vmatprep.subr.bf16.mxu0 %v4165_v48  ;;  %v547_v46 = vld [vmem:[%s6623_s4 + $0x2f8] sm:$0xff]  ;;  %v4182_v47 = vcombine.low %v554_v34, %v562_v35  ;;  %v4184_v48 = vcombine.low %v555_v37, %v563_v38  ;;  %v4595_v34 = vld [vmem:[%s6625_s6 + $0x30] sm:$0xff]   ;;  %v4597_v37 = vld [vmem:[%s6625_s6 + $0x68] sm:$0xff]  }
 0x11e   : > { %v4169_v50 = vcombine.high %v539_v45, %v547_v46  ;;  %v4596_v35 = vld [vmem:[%s6625_s6 + $0xb0] sm:$0xff]   ;;  %v4598_v38 = vld [vmem:[%s6625_s6 + $0xe8] sm:$0xff]  }
 0x120   : > { %1481 = vmatpush1.bf16.msra.mxu1 %v4162_v53  ;;  %1524 = vmatpush1.bf16.msra.mxu0 %v4164_v54  ;;  %v523_v53 = vld [vmem:[%s6623_s4 + $0x238] sm:$0xff] }
 0x121   : > { %1482 = vmatprep.subr.bf16.mxu1 %v4147_v55  ;;  %1525 = vmatprep.subr.bf16.mxu0 %v4149_v56  ;;  %v531_v54 = vld [vmem:[%s6623_s4 + $0x278] sm:$0xff]  ;;  %v4166_v55 = vcombine.low %v538_v43, %v546_v44  ;;  %v4168_v56 = vcombine.low %v539_v45, %v547_v46  ;;  %v4603_v43 = vld [vmem:[%s6625_s6 + $0x20] sm:$0xff]  }
 0x122   : > { %v4153_v58 = vcombine.high %v523_v53, %v531_v54  ;;  %v4604_v44 = vld [vmem:[%s6625_s6 + $0xa0] sm:$0xff]   ;;  %v4605_v45 = vld [vmem:[%s6625_s6 + $0x58] sm:$0xff]  }
 0x123   : > { %v4606_v46 = vld [vmem:[%s6625_s6 + $0xd8] sm:$0xff]  }
 0x124   : > { %1483 = vmatpush1.bf16.msra.mxu1 %v4146_v61  ;;  %1526 = vmatpush1.bf16.msra.mxu0 %v4148_v62  ;;  %v515_v61 = vld [vmem:[%s6623_s4 + $0x1f8] sm:$0xff]  ;;  %v4150_v62 = vcombine.low %v522_v51, %v530_v52  ;;  %v4611_v51 = vld [vmem:[%s6625_s6 + $0x10] sm:$0xff]  }
 0x125   : > { %1484 = vmatprep.subr.bf16.mxu1 %v4131_v63  ;;  %1527 = vmatprep.subr.bf16.mxu0 %v4133_v0  ;;  %v4152_v63 = vcombine.low %v523_v53, %v531_v54  ;;  %v4135_v0 = vcombine.high %v506_v59, %v514_v60  ;;  %v4612_v52 = vld [vmem:[%s6625_s6 + $0x90] sm:$0xff]   ;;  %v4613_v53 = vld [vmem:[%s6625_s6 + $0x48] sm:$0xff]  }
 0x126   : > { %v4614_v54 = vld [vmem:[%s6625_s6 + $0xc8] sm:$0xff]  }
 0x128   : > { %1485 = vmatpush1.bf16.msra.mxu1 %v4130_v5  ;;  %1528 = vmatpush1.bf16.msra.mxu0 %v4132_v6  ;;  %v499_v5 = vld [vmem:[%s6623_s4 + $0x178] sm:$0xff]  ;;  %v4134_v6 = vcombine.low %v506_v59, %v514_v60  ;;  %v584_v59 = vlaneseq  ;;  %v4619_v60 = vld [vmem:[%s6625_s6] sm:$0xff]  }
 0x129   : > { %1486 = vmatprep.subr.bf16.mxu1 %v4115_v7  ;;  %1529 = vmatprep.subr.bf16.mxu0 %v4117_v8  ;;  %v4119_v8 = vcombine.high %v490_v2, %v498_v3  ;;  %v4121_v9 = vcombine.high %v491_v4, %v499_v5 }
 0x12c   : > { %1487 = vmatpush1.bf16.msra.mxu1 %v4114_v13  ;;  %1530 = vmatpush1.bf16.msra.mxu0 %v4116_v14  ;;  %v483_v13 = vld [vmem:[%s6623_s4 + $0xf8] sm:$0xff]  ;;  %v4118_v14 = vcombine.low %v490_v2, %v498_v3  ;;  %v5404_v2 = vld [vmem:[%s6624_s5] sm:$0xff] }
 0x12d   : > { %1488 = vmatprep.subr.bf16.mxu1 %v4099_v15  ;;  %1531 = vmatprep.subr.bf16.mxu0 %v4101_v16  ;;  %v4120_v15 = vcombine.low %v491_v4, %v499_v5  ;;  %v4103_v16 = vcombine.high %v474_v10, %v482_v11  ;;  %v4105_v17 = vcombine.high %v475_v12, %v483_v13 }
 0x130   : > { %1489 = vmatpush1.bf16.msra.mxu1 %v4098_v22  ;;  %1532 = vmatpush1.bf16.msra.mxu0 %v4100_v23  ;;  %v467_v22 = vld [vmem:[%s6623_s4 + $0x78] sm:$0xff]  ;;  %v4102_v23 = vcombine.low %v474_v10, %v482_v11 }
 0x131   : > { %1490 = vmatprep.subr.bf16.mxu1 %v4083_v24  ;;  %1533 = vmatprep.subr.bf16.mxu0 %v4085_v25  ;;  %v4104_v24 = vcombine.low %v475_v12, %v483_v13  ;;  %v4087_v25 = vcombine.high %v458_v18, %v466_v19  ;;  %v4089_v26 = vcombine.high %v459_v21, %v467_v22 }
 0x132   : > { %v4088_v28 = vcombine.low %v459_v21, %v467_v22 }
 0x134   : > { %1491 = vmatpush1.bf16.msra.mxu1 %v4082_v30  ;;  %1534 = vmatpush1.bf16.msra.mxu0 %v4084_v31  ;;  %v4590_v30 = vld [vmem:[%s6625_s6 + $0xf8] sm:$0xff]  }
 0x135   : > { %1562 = vmatprep.subr.bf16.mxu1 %v4199_v32  ;;  %1605 = vmatprep.subr.bf16.mxu0 %v4201_v33  ;;  %v4591_v31 = vld [vmem:[%s6625_s6 + $0x38] sm:$0xff]   ;;  %v4594_v33 = vld [vmem:[%s6625_s6 + $0xf0] sm:$0xff]  }
 0x136   : > { %v4592_v32 = vld [vmem:[%s6625_s6 + $0xb8] sm:$0xff]  }
 0x137   : > { %1509 = vmatmul.mubr.bf16.vlgmr.msra.gmra.mxu1 %v5015_v36  ;;  %1552 = vmatmul.mubr.bf16.vlgmr.msra.gmra.mxu0 %v5015_v36 }
 0x138   : > { %1563 = vmatpush1.bf16.msra.mxu1 %v4198_v39  ;;  %1606 = vmatpush1.bf16.msra.mxu0 %v4200_v40  ;;  %v4599_v39 = vld [vmem:[%s6625_s6 + $0x28] sm:$0xff]  }
 0x139   : > { %1564 = vmatprep.subr.bf16.mxu1 %v4183_v41  ;;  %1607 = vmatprep.subr.bf16.mxu0 %v4185_v42  ;;  %v4600_v40 = vld [vmem:[%s6625_s6 + $0xa8] sm:$0xff]   ;;  %v4601_v41 = vld [vmem:[%s6625_s6 + $0x60] sm:$0xff]  }
 0x13a   : > { %1594 = vmatprep.mubr.bf16.mxu1 %v4792_v20  ;;  %1637 = vmatprep.mubr.bf16.mxu0 %v4792_v20  ;;  %v507_v20 = vld [vmem:[%s6623_s4 + $0x1b8] sm:$0xff]  ;;  %v4602_v42 = vld [vmem:[%s6625_s6 + $0xe0] sm:$0xff]  }
 0x13b   : > { %v4137_v1 = vcombine.high %v507_v20, %v515_v61  ;;  %v4136_v7 = vcombine.low %v507_v20, %v515_v61  ;;  %v4620_v20 = vld [vmem:[%s6625_s6 + $0x80] sm:$0xff]   ;;  %v4621_v61 = vld [vmem:[%s6625_s6 + $0x178] sm:$0xff]  }
 0x13c   : > { %1565 = vmatpush1.bf16.msra.mxu1 %v4182_v47  ;;  %1608 = vmatpush1.bf16.msra.mxu0 %v4184_v48  ;;  %v4607_v47 = vld [vmem:[%s6625_s6 + $0x18] sm:$0xff]  }
 0x13d   : > { %1566 = vmatprep.subr.bf16.mxu1 %v4167_v49  ;;  %1609 = vmatprep.subr.bf16.mxu0 %v4169_v50  ;;  %v4608_v48 = vld [vmem:[%s6625_s6 + $0x98] sm:$0xff]   ;;  %v4609_v49 = vld [vmem:[%s6625_s6 + $0x50] sm:$0xff]  }
 0x13e   : > { %v4610_v50 = vld [vmem:[%s6625_s6 + $0xd0] sm:$0xff]  }
 0x140   : > { %1567 = vmatpush1.bf16.msra.mxu1 %v4166_v55  ;;  %1610 = vmatpush1.bf16.msra.mxu0 %v4168_v56  ;;  %v4615_v55 = vld [vmem:[%s6625_s6 + $0x8] sm:$0xff]  }
 0x141   : > { %1568 = vmatprep.subr.bf16.mxu1 %v4151_v57  ;;  %1611 = vmatprep.subr.bf16.mxu0 %v4153_v58  ;;  %v4616_v56 = vld [vmem:[%s6625_s6 + $0x88] sm:$0xff]   ;;  %v4617_v57 = vld [vmem:[%s6625_s6 + $0x40] sm:$0xff]  }
 0x142   : > { %v4618_v58 = vld [vmem:[%s6625_s6 + $0xc0] sm:$0xff]  }
 0x144   : > { %1569 = vmatpush1.bf16.msra.mxu1 %v4150_v62  ;;  %1612 = vmatpush1.bf16.msra.mxu0 %v4152_v63  ;;  %v4622_v62 = vld [vmem:[%s6625_s6 + $0x1f8] sm:$0xff]   ;;  %v5397_v63 = vshrl.u32 %v584_v59, 7 }
 0x145   : > { %1570 = vmatprep.subr.bf16.mxu1 %v4135_v0  ;;  %1613 = vmatprep.subr.bf16.mxu0 %v4137_v1 }
 0x146   : > { %6635 = vst [vmem:[#allocation2_spill] sm:$0xff] %v5397_v63  ;;  %v586_v0 = vsub.s32 0, %v5397_v63  ;;  %v594_v1 = vsub.s32 2, %v5397_v63  ;;  %v590_v3 = vsub.s32 1, %v5397_v63 }
 0x148   : > { %1571 = vmatpush1.bf16.msra.mxu1 %v4134_v6  ;;  %1614 = vmatpush1.bf16.msra.mxu0 %v4136_v7  ;;  %v587_v4 = vrot.slane %v5404_v2, %v586_v0  ;;  %v595_v5 = vrot.slane %v5404_v2, %v594_v1  ;;  %v598_v6 = vsub.s32 3, %v5397_v63 }
 0x149   : > { %1572 = vmatprep.subr.bf16.mxu1 %v4119_v8  ;;  %1615 = vmatprep.subr.bf16.mxu0 %v4121_v9  ;;  %v5417_v9 = vrot.slane %v5404_v2, %v590_v3 }
 0x14a   : > { %v5426_v13 = vrot.slane %v5404_v2, %v598_v6 }
 0x14c   : > { %1573 = vmatpush1.bf16.msra.mxu1 %v4118_v14  ;;  %1616 = vmatpush1.bf16.msra.mxu0 %v4120_v15 }
 0x14d   : > { %1574 = vmatprep.subr.bf16.mxu1 %v4103_v16  ;;  %1617 = vmatprep.subr.bf16.mxu0 %v4105_v17 }
 0x150   : > { %1575 = vmatpush1.bf16.msra.mxu1 %v4102_v23  ;;  %1618 = vmatpush1.bf16.msra.mxu0 %v4104_v24 }
 0x151   : > { %1576 = vmatprep.subr.bf16.mxu1 %v4087_v25  ;;  %1619 = vmatprep.subr.bf16.mxu0 %v4089_v26 }
 0x154   : > { %1577 = vmatpush1.bf16.msra.mxu1 %v4086_v27  ;;  %1620 = vmatpush1.bf16.msra.mxu0 %v4088_v28 }
 0x155   : > { %4374 = vmatprep.subr.bf16.mxu1 %v4589_v29  ;;  %4396 = vmatprep.subr.bf16.mxu0 %v4590_v30 }
 0x157   : > { %1595 = vmatmul.mubr.bf16.vlgmr.msra.gmra.mxu1 %v5015_v36  ;;  %1638 = vmatmul.mubr.bf16.vlgmr.msra.gmra.mxu0 %v5015_v36  ;;  %v4593_v36 = vld [vmem:[%s6625_s6 + $0x70] sm:$0xff]  }
 0x158   : > { %4375 = vmatpush3.bf16.msra.mxu1 %v4591_v31  ;;  %4397 = vmatpush3.bf16.msra.mxu0 %v4592_v32 }
 0x159   : > { %4376 = vmatprep.subr.bf16.mxu1 %v4593_v36  ;;  %4398 = vmatprep.subr.bf16.mxu0 %v4594_v33 }
 0x15c   : > { %4377 = vmatpush3.bf16.msra.mxu1 %v4595_v34  ;;  %4399 = vmatpush3.bf16.msra.mxu0 %v4596_v35 }
 0x15d   : > { %4378 = vmatprep.subr.bf16.mxu1 %v4597_v37  ;;  %4400 = vmatprep.subr.bf16.mxu0 %v4598_v38 }
 0x160   : > { %4379 = vmatpush3.bf16.msra.mxu1 %v4599_v39  ;;  %4401 = vmatpush3.bf16.msra.mxu0 %v4600_v40 }
 0x161   : > { %4380 = vmatprep.subr.bf16.mxu1 %v4601_v41  ;;  %4402 = vmatprep.subr.bf16.mxu0 %v4602_v42 }
 0x164   : > { %4381 = vmatpush3.bf16.msra.mxu1 %v4603_v43  ;;  %4403 = vmatpush3.bf16.msra.mxu0 %v4604_v44 }
 0x165   : > { %4382 = vmatprep.subr.bf16.mxu1 %v4605_v45  ;;  %4404 = vmatprep.subr.bf16.mxu0 %v4606_v46 }
 0x168   : > { %4383 = vmatpush3.bf16.msra.mxu1 %v4607_v47  ;;  %4405 = vmatpush3.bf16.msra.mxu0 %v4608_v48 }
 0x169   : > { %4384 = vmatprep.subr.bf16.mxu1 %v4609_v49  ;;  %4406 = vmatprep.subr.bf16.mxu0 %v4610_v50  ;;  %v6631_v50 = vsub.s32 4, %v5397_v63 }
 0x16c   : > { %4385 = vmatpush3.bf16.msra.mxu1 %v4611_v51  ;;  %4407 = vmatpush3.bf16.msra.mxu0 %v4612_v52 }
 0x16d   : > { %4386 = vmatprep.subr.bf16.mxu1 %v4613_v53  ;;  %4408 = vmatprep.subr.bf16.mxu0 %v4614_v54 }
 0x170   : > { %4387 = vmatpush3.bf16.msra.mxu1 %v4615_v55  ;;  %4409 = vmatpush3.bf16.msra.mxu0 %v4616_v56 }
 0x171   : > { %4388 = vmatprep.subr.bf16.mxu1 %v4617_v57  ;;  %4410 = vmatprep.subr.bf16.mxu0 %v4618_v58  ;;  %v6629_v58 = vsub.s32 6, %v5397_v63 }
 0x174   : > { %4389 = vmatpush3.bf16.msra.mxu1 %v4619_v60  ;;  %4411 = vmatpush3.bf16.msra.mxu0 %v4620_v20  ;;  %v6630_v20 = vsub.s32 5, %v5397_v63 }
 0x175   : > { %4418 = vmatprep.subr.bf16.mxu1 %v4621_v61  ;;  %4440 = vmatprep.subr.bf16.mxu0 %v4622_v62  ;;  %v5492_v62 = vrot.slane %v5404_v2, %v6631_v50 }
 0x1b7   : > { %v1338_v7 = vpop.f32.mrf.mxu1  ;;  %v1381_v8 = vpop.f32.mrf.mxu0 }
 0x1b8   : > { %v5419_v10 = vadd.f32 %v1338_v7, %v587_v4  ;;  %v5421_v11 = vadd.f32 %v1381_v8, %v595_v5 }
 0x1b9   : > { %v1340_v12 = vpop.f32.mrf.mxu1  ;;  %v1383_v16 = vpop.f32.mrf.mxu0 }
 0x1ba   : > { %v1680_v14 = vmul.f32 0.70710677, %v5419_v10  ;;  %v1682_v15 = vmul.f32 0.70710677, %v5421_v11  ;;  %v5431_v17 = vadd.f32 %v1340_v12, %v5417_v9  ;;  %v5439_v22 = vadd.f32 %v1383_v16, %v5426_v13 }
 0x1bb   : > { %v1342_v26 = vpop.f32.mrf.mxu1  ;;  %v1385_v47 = vpop.f32.mrf.mxu0 }
 0x1bc   : > { %v5433_v18 = vclamps-f32 %v1680_v14, 4.0  ;;  %v5435_v19 = vclamps-f32 %v1682_v15, 4.0  ;;  %v1681_v21 = vmul.f32 0.70710677, %v5431_v17  ;;  %v1683_v28 = vmul.f32 0.70710677, %v5439_v22 }
 0x1bd   : > { %v5455_v31 = vadd.f32 %v1342_v26, %v587_v4  ;;  %v5479_v54 = vadd.f32 %v1385_v47, %v595_v5  ;;  %v6628_v4 = vsub.s32 7, %v5397_v63  ;;  %v581_v14 = vld [vmem:[%s6624_s5 + $0x8] sm:$0xff]  ;;  %v5507_v26 = vrot.slane %v5404_v2, %v6629_v58 }
 0x1be   : > { %v5443_v23 = vmul.f32 %v5433_v18, %v5433_v18  ;;  %v5447_v24 = vmul.f32 %v5435_v19, %v5435_v19  ;;  %v5449_v25 = vclamps-f32 %v1681_v21, 4.0  ;;  %v5462_v34 = vclamps-f32 %v1683_v28, 4.0 }
 0x1bf   : > { %v1696_v38 = vmul.f32 0.70710677, %v5455_v31  ;;  %v1698_v12 = vmul.f32 0.70710677, %v5479_v54 }
 0x1c0   : > { %v1808_v27 = vmul.f32 -2.7261424e-10, %v5443_v23  ;;  %v2224_v29 = vmul.f32 -1.45660715e-05, %v5443_v23  ;;  %v1810_v30 = vmul.f32 -2.7261424e-10, %v5447_v24  ;;  %v5459_v32 = vmul.f32 %v5449_v25, %v5449_v25 }
 0x1c1   : > { %v2226_v36 = vmul.f32 -1.45660715e-05, %v5447_v24  ;;  %v5470_v43 = vmul.f32 %v5462_v34, %v5462_v34  ;;  %v5474_v46 = vclamps-f32 %v1696_v38, 4.0  ;;  %v5523_v38 = vrot.slane %v581_v14, %v586_v0 }
 0x1c2   : > { %v1840_v33 = vadd.f32 2.7706815e-08, %v1808_v27  ;;  %v2256_v35 = vadd.f32 -0.00021337405, %v2224_v29  ;;  %v1842_v37 = vadd.f32 2.7706815e-08, %v1810_v30  ;;  %v1344_v30 = vpop.f32.mrf.mxu1 }
 0x1c3   : > { %v1809_v39 = vmul.f32 -2.7261424e-10, %v5459_v32  ;;  %v2258_v40 = vadd.f32 -0.00021337405, %v2226_v36  ;;  %v2225_v42 = vmul.f32 -1.45660715e-05, %v5459_v32  ;;  %v5483_v57 = vmul.f32 %v5474_v46, %v5474_v46 }
 0x1c4   : > { %v1872_v41 = vmul.f32 %v1840_v33, %v5443_v23  ;;  %v2288_v44 = vmul.f32 %v2256_v35, %v5443_v23  ;;  %v1874_v45 = vmul.f32 %v1842_v37, %v5447_v24  ;;  %v1811_v53 = vmul.f32 -2.7261424e-10, %v5470_v43 }
 0x1c5   : > { %v1841_v48 = vadd.f32 2.7706815e-08, %v1809_v39  ;;  %v2290_v49 = vmul.f32 %v2258_v40, %v5447_v24  ;;  %v2257_v52 = vadd.f32 -0.00021337405, %v2225_v42  ;;  %v2227_v60 = vmul.f32 -1.45660715e-05, %v5470_v43 }
 0x1c6   : > { %v1904_v51 = vadd.f32 -2.101024e-06, %v1872_v41  ;;  %v2320_v55 = vadd.f32 -0.001682827, %v2288_v44  ;;  %v1906_v56 = vadd.f32 -2.101024e-06, %v1874_v45  ;;  %v5513_v36 = vrot.slane %v5404_v2, %v6630_v20  ;;  %v1387_v44 = vpop.f32.mrf.mxu0 }
 0x1c7   : > { %v1873_v59 = vmul.f32 %v1841_v48, %v5459_v32  ;;  %v2322_v61 = vadd.f32 -0.001682827, %v2290_v49  ;;  %v2289_v7 = vmul.f32 %v2257_v52, %v5459_v32  ;;  %v1843_v8 = vadd.f32 2.7706815e-08, %v1811_v53 }
 0x1c8   : > { %v1936_v5 = vmul.f32 %v1904_v51, %v5443_v23  ;;  %v2352_v15 = vmul.f32 %v2320_v55, %v5443_v23  ;;  %v1938_v16 = vmul.f32 %v1906_v56, %v5447_v24  ;;  %v1824_v21 = vmul.f32 -2.7261424e-10, %v5483_v57 }
 0x1c9   : > { %v1905_v27 = vadd.f32 -2.101024e-06, %v1873_v59  ;;  %v2259_v28 = vadd.f32 -0.00021337405, %v2227_v60  ;;  %v2240_v29 = vmul.f32 -1.45660715e-05, %v5483_v57  ;;  %v2354_v33 = vmul.f32 %v2322_v61, %v5447_v24 }
 0x1ca   : > { %v1856_v35 = vadd.f32 2.7706815e-08, %v1824_v21  ;;  %v5519_v37 = vrot.slane %v5404_v2, %v6628_v4  ;;  %v1968_v39 = vadd.f32 -5.6925062e-05, %v1936_v5  ;;  %v2321_v40 = vadd.f32 -0.001682827, %v2289_v7 }
 0x1cb   : > { %v1875_v41 = vmul.f32 %v1843_v8, %v5470_v43  ;;  %v5526_v42 = vclamps-f32 %v1698_v12, 4.0  ;;  %v2384_v45 = vadd.f32 -0.0073733293, %v2352_v15  ;;  %v1970_v47 = vadd.f32 -5.6925062e-05, %v1938_v16 }
 0x1cc   : > { %v5529_v48 = vadd.f32 %v1344_v30, %v5417_v9  ;;  %v5533_v2 = vrot.slane %v581_v14, %v594_v1  ;;  %v1937_v49 = vmul.f32 %v1905_v27, %v5459_v32  ;;  %v2291_v0 = vmul.f32 %v2259_v28, %v5470_v43 }
 0x1cd   : > { %v2272_v51 = vadd.f32 -0.00021337405, %v2240_v29  ;;  %v5539_v52 = vmul.f32 %v5526_v42, %v5526_v42  ;;  %v2386_v53 = vadd.f32 -0.0073733293, %v2354_v33  ;;  %v1888_v55 = vmul.f32 %v1856_v35, %v5483_v57 }
 0x1ce   : > { %v5543_v56 = vadd.f32 %v1387_v44, %v5426_v13  ;;  %v5547_v9 = vrot.slane %v581_v14, %v590_v3  ;;  %v2000_v1 = vmul.f32 %v1968_v39, %v5443_v23  ;;  %v2353_v59 = vmul.f32 %v2321_v40, %v5459_v32 }
 0x1cf   : > { %v1907_v60 = vadd.f32 -2.101024e-06, %v1875_v41  ;;  %v1826_v61 = vmul.f32 -2.7261424e-10, %v5539_v52  ;;  %v2416_v5 = vmul.f32 %v2384_v45, %v5443_v23  ;;  %v2002_v7 = vmul.f32 %v1970_v47, %v5447_v24 }
 0x1d0   : > { %v2242_v8 = vmul.f32 -1.45660715e-05, %v5539_v52  ;;  %v1697_v13 = vmul.f32 0.70710677, %v5529_v48  ;;  %v1969_v12 = vadd.f32 -5.6925062e-05, %v1937_v49  ;;  %v2304_v3 = vmul.f32 %v2272_v51, %v5483_v57 }
 0x1d1   : > { %v2323_v15 = vadd.f32 -0.001682827, %v2291_v0  ;;  %v1858_v16 = vadd.f32 2.7706815e-08, %v1826_v61  ;;  %v1920_v21 = vadd.f32 -2.101024e-06, %v1888_v55  ;;  %v5561_v29 = vrot.slane %v581_v14, %v598_v6 }
 0x1d2   : > { %v2274_v27 = vadd.f32 -0.00021337405, %v2242_v8  ;;  %v5557_v28 = vclamps-f32 %v1697_v13, 4.0  ;;  %v2385_v30 = vadd.f32 -0.0073733293, %v2353_v59  ;;  %v1939_v33 = vmul.f32 %v1907_v60, %v5470_v43 }
 0x1d3   : > { %6636 = vst [vmem:[#allocation3_spill] sm:$0xff] %v5561_v29  ;;  %v1890_v35 = vmul.f32 %v1858_v16, %v5539_v52  ;;  %v1699_v39 = vmul.f32 0.70710677, %v5543_v56  ;;  %v2032_v40 = vadd.f32 -0.00073499064, %v2000_v1  ;;  %v2418_v41 = vmul.f32 %v2386_v53, %v5447_v24 }
 0x1d4   : > { %v2306_v44 = vmul.f32 %v2274_v27, %v5539_v52  ;;  %v5570_v45 = vmul.f32 %v5557_v28, %v5557_v28  ;;  %v2448_v47 = vadd.f32 -0.014264739, %v2416_v5  ;;  %v2034_v49 = vadd.f32 -0.00073499064, %v2002_v7 }
 0x1d5   : > { %v2355_v6 = vmul.f32 %v2323_v15, %v5470_v43  ;;  %v2336_v14 = vadd.f32 -0.001682827, %v2304_v3  ;;  %v5574_v0 = vmul.f32 0.5, %v5419_v10  ;;  %v2001_v51 = vmul.f32 %v1969_v12, %v5459_v32 }
 0x1d6   : > { %v1952_v55 = vmul.f32 %v1920_v21, %v5483_v57  ;;  %v1922_v1 = vadd.f32 -2.101024e-06, %v1890_v35  ;;  %v5579_v53 = vmul.f32 0.5, %v5421_v11  ;;  %v2417_v59 = vmul.f32 %v2385_v30, %v5459_v32 }
 0x1d7   : > { %v1971_v60 = vadd.f32 -5.6925062e-05, %v1939_v33  ;;  %v5582_v61 = vclamps-f32 %v1699_v39, 4.0  ;;  %v2064_v5 = vmul.f32 %v2032_v40, %v5443_v23  ;;  %v2450_v7 = vadd.f32 -0.014264739, %v2418_v41  ;;  %v1424_v3 = vpop.f32.mrf.mxu1 }
 0x1d8   : > { %v2338_v8 = vadd.f32 -0.001682827, %v2306_v44  ;;  %v1825_v10 = vmul.f32 -2.7261424e-10, %v5570_v45  ;;  %4717 = vrcp.f32 %v2448_v47  ;;  %v2066_v13 = vmul.f32 %v2034_v49, %v5447_v24  ;;  %v1467_v49 = vpop.f32.mrf.mxu0 }
 0x1d9   : > { %v2387_v12 = vadd.f32 -0.0073733293, %v2355_v6  ;;  %v2368_v15 = vmul.f32 %v2336_v14, %v5483_v57  ;;  %v2033_v11 = vadd.f32 -0.00073499064, %v2001_v51  ;;  %v1984_v16 = vadd.f32 -5.6925062e-05, %v1952_v55 }
 0x1da   : > { %v1954_v21 = vmul.f32 %v1922_v1, %v5539_v52  ;;  %v1857_v27 = vadd.f32 2.7706815e-08, %v1825_v10  ;;  %v2449_v30 = vadd.f32 -0.014264739, %v2417_v59  ;;  %v2003_v33 = vmul.f32 %v1971_v60, %v5470_v43 }
 0x1db   : > { %v2241_v35 = vmul.f32 -1.45660715e-05, %v5570_v45  ;;  %v5593_v39 = vmul.f32 %v5582_v61, %v5582_v61  ;;  %v2096_v40 = vadd.f32 -0.0029546, %v2064_v5  ;;  %v2370_v41 = vmul.f32 %v2338_v8, %v5539_v52 }
 0x1dc   : > { %v1889_v44 = vmul.f32 %v1857_v27, %v5570_v45  ;;  %v5598_v47 = vadd.f32 %v1424_v3, %v5492_v62  ;;  %4719 = vrcp.f32 %v2450_v7  ;;  %v2400_v6 = vadd.f32 -0.0073733293, %v2368_v15 }
 0x1dd   : > { %v2273_v14 = vadd.f32 -0.00021337405, %v2241_v35  ;;  %v1827_v51 = vmul.f32 -2.7261424e-10, %v5593_v39  ;;  %v2419_v55 = vmul.f32 %v2387_v12, %v5470_v43  ;;  %v2016_v1 = vmul.f32 %v1984_v16, %v5483_v57 }
 0x1de   : > { %v1986_v59 = vadd.f32 -5.6925062e-05, %v1954_v21  ;;  %v1921_v60 = vadd.f32 -2.101024e-06, %v1889_v44  ;;  %v2243_v10 = vmul.f32 -1.45660715e-05, %v5593_v39  ;;  %v5606_v3 = vadd.f32 %v1467_v49, %v5507_v26 }
 0x1df   : > { %v2305_v5 = vmul.f32 %v2273_v14, %v5570_v45  ;;  %v1859_v8 = vadd.f32 2.7706815e-08, %v1827_v51  ;;  %v2035_v27 = vadd.f32 -0.00073499064, %v2003_v33  ;;  %v2402_v7 = vadd.f32 -0.0073733293, %v2370_v41 }
 0x1e0   : > { %v1953_v15 = vmul.f32 %v1921_v60, %v5570_v45  ;;  %v1684_v35 = vmul.f32 0.70710677, %v5598_v47  ;;  %v2432_v12 = vmul.f32 %v2400_v6, %v5483_v57  ;;  %v2275_v21 = vadd.f32 -0.00021337405, %v2243_v10 }
 0x1e1   : > { %v2337_v4 = vadd.f32 -0.001682827, %v2305_v5  ;;  %v1891_v16 = vmul.f32 %v1859_v8, %v5593_v39  ;;  %v2048_v44 = vadd.f32 -0.00073499064, %v2016_v1  ;;  %v2018_v14 = vmul.f32 %v1986_v59, %v5539_v52 }
 0x1e2   : > { %v1985_v51 = vadd.f32 -5.6925062e-05, %v1953_v15  ;;  %v5613_v58 = vclamps-f32 %v1684_v35, 4.0  ;;  %v2307_v41 = vmul.f32 %v2275_v21, %v5593_v39  ;;  %v1686_v60 = vmul.f32 0.70710677, %v5606_v3 }
 0x1e3   : > { %v2369_v49 = vmul.f32 %v2337_v4, %v5570_v45  ;;  %v1923_v33 = vadd.f32 -2.101024e-06, %v1891_v16  ;;  %v2098_v20 = vadd.f32 -0.0029546, %v2066_v13  ;;  %v2065_v6 = vmul.f32 %v2033_v11, %v5459_v32 }
 0x1e4   : > { %v2434_v5 = vmul.f32 %v2402_v7, %v5539_v52  ;;  %v2017_v8 = vmul.f32 %v1985_v51, %v5570_v45  ;;  %v2339_v10 = vadd.f32 -0.001682827, %v2307_v41  ;;  %v5624_v15 = vmul.f32 %v5613_v58, %v5613_v58 }
 0x1e5   : > { %v2401_v1 = vadd.f32 -0.0073733293, %v2369_v49  ;;  %v1955_v59 = vmul.f32 %v1923_v33, %v5593_v39  ;;  %v5626_v4 = vpop.eup %4717  ;;  %4721 = vrcp.f32 %v2449_v30  ;;  %v2067_v35 = vmul.f32 %v2035_v27, %v5470_v43 }
 0x1e6   : > { %v2080_v13 = vmul.f32 %v2048_v44, %v5483_v57  ;;  %v2464_v11 = vadd.f32 -0.014264739, %v2432_v12  ;;  %v2451_v16 = vadd.f32 -0.014264739, %v2419_v55  ;;  %v2050_v7 = vadd.f32 -0.00073499064, %v2018_v14 }
 0x1e7   : > { %v2433_v21 = vmul.f32 %v2401_v1, %v5570_v45  ;;  %v5631_v51 = vclamps-f32 %v1686_v60, 4.0  ;;  %v2128_v49 = vmul.f32 %v2096_v40, %v5443_v23  ;;  %v2097_v33 = vadd.f32 -0.0029546, %v2065_v6 }
 0x1e8   : > { %v2049_v41 = vadd.f32 -0.00073499064, %v2017_v8  ;;  %v2371_v50 = vmul.f32 %v2339_v10, %v5593_v39  ;;  %v2130_v63 = vmul.f32 %v2098_v20, %v5447_v24  ;;  %v2466_v30 = vadd.f32 -0.014264739, %v2434_v5 }
 0x1e9   : > { %v1987_v29 = vadd.f32 -5.6925062e-05, %v1955_v59  ;;  %v1812_v27 = vmul.f32 -2.7261424e-10, %v5624_v15  ;;  %v4720_v44 = vpop.eup %4719  ;;  %v2099_v12 = vadd.f32 -0.0029546, %v2067_v35  ;;  %4723 = vrcp.f32 %v2464_v11 }
 0x1ea   : > { %v2112_v55 = vadd.f32 -0.0029546, %v2080_v13  ;;  %v2465_v14 = vadd.f32 -0.014264739, %v2433_v21  ;;  %4725 = vrcp.f32 %v2451_v16  ;;  %v2082_v60 = vmul.f32 %v2050_v7, %v5539_v52  ;;  %v1426_v13 = vpop.f32.mrf.mxu1 }
 0x1eb   : > { %v2403_v1 = vadd.f32 -0.0073733293, %v2371_v50  ;;  %v5640_v23 = vmul.f32 %v5631_v51, %v5631_v51  ;;  %v2160_v40 = vadd.f32 -0.016096033, %v2128_v49  ;;  %v5643_v24 = vmul.f32 0.5, %v5431_v17 }
 0x1ec   : > { %v2081_v20 = vmul.f32 %v2049_v41, %v5570_v45  ;;  %v2228_v6 = vmul.f32 -1.45660715e-05, %v5624_v15  ;;  %v2129_v5 = vmul.f32 %v2097_v33, %v5459_v32  ;;  %4727 = vrcp.f32 %v2466_v30  ;;  %v1469_v33 = vpop.f32.mrf.mxu0 }
 0x1ed   : > { %v2019_v8 = vmul.f32 %v1987_v29, %v5593_v39  ;;  %v1844_v59 = vadd.f32 2.7706815e-08, %v1812_v27  ;;  %v2162_v10 = vadd.f32 -0.016096033, %v2130_v63  ;;  %v2131_v50 = vmul.f32 %v2099_v12, %v5470_v43 }
 0x1ee   : > { %v2144_v35 = vmul.f32 %v2112_v55, %v5483_v57  ;;  %4729 = vrcp.f32 %v2465_v14  ;;  %v5652_v17 = vmul.f32 0.5, %v5439_v22  ;;  %v2114_v11 = vadd.f32 -0.0029546, %v2082_v60 }
 0x1ef   : > { %v2435_v16 = vmul.f32 %v2403_v1, %v5593_v39  ;;  %v1814_v7 = vmul.f32 -2.7261424e-10, %v5640_v23  ;;  %v5657_v32 = vmul.f32 0.5, %v5455_v31  ;;  %v5660_v29 = vmul.f32 0.5, %v5479_v54 }
 0x1f0   : > { %v2113_v63 = vadd.f32 -0.0029546, %v2081_v20  ;;  %v2260_v43 = vadd.f32 -0.00021337405, %v2228_v6  ;;  %v2161_v21 = vadd.f32 -0.016096033, %v2129_v5  ;;  %v1876_v49 = vmul.f32 %v1844_v59, %v5624_v15  ;;  %v1428_v5 = vpop.f32.mrf.mxu1 }
 0x1f1   : > { %v2051_v57 = vadd.f32 -0.00073499064, %v2019_v8  ;;  %v5664_v22 = vadd.f32 %v1426_v13, %v5513_v36  ;;  %v2192_v41 = vmul.f32 %v5433_v18, %v2160_v40  ;;  %v2194_v30 = vmul.f32 %v5435_v19, %v2162_v10 }
 0x1f2   : > { %v2163_v27 = vadd.f32 -0.016096033, %v2131_v50  ;;  %v2176_v31 = vadd.f32 -0.016096033, %v2144_v35  ;;  %v4722_v12 = vpop.eup %4721  ;;  %v2146_v54 = vmul.f32 %v2114_v11, %v5539_v52  ;;  %v5670_v55 = vmul.f32 0.5, %v5529_v48 }
 0x1f3   : > { %v2467_v14 = vadd.f32 -0.014264739, %v2435_v16  ;;  %v1846_v60 = vadd.f32 2.7706815e-08, %v1814_v7  ;;  %v2145_v1 = vmul.f32 %v2113_v63, %v5570_v45  ;;  %v5674_v20 = vmul.f32 0.5, %v5543_v56 }
 0x1f4   : > { %v2292_v6 = vmul.f32 %v2260_v43, %v5624_v15  ;;  %v5678_v18 = vadd.f32 %v1469_v33, %v5519_v37  ;;  %v2193_v19 = vmul.f32 %v5449_v25, %v2161_v21  ;;  %v2083_v40 = vmul.f32 %v2051_v57, %v5593_v39 }
 0x1f5   : > { %v1908_v52 = vadd.f32 -2.101024e-06, %v1876_v49  ;;  %v1685_v48 = vmul.f32 0.70710677, %v5664_v22  ;;  %v2512_v8 = vmul.f32 %v5626_v4, %v2192_v41  ;;  %v2514_v59 = vmul.f32 %v4720_v44, %v2194_v30 }
 0x1f6   : > { %v2195_v45 = vmul.f32 %v5462_v34, %v2163_v27  ;;  %v2208_v56 = vmul.f32 %v5474_v46, %v2176_v31  ;;  %v4724_v10 = vpop.eup %4723  ;;  %v2178_v50 = vadd.f32 -0.016096033, %v2146_v54  ;;  %4731 = vrcp.f32 %v2467_v14 }
 0x1f7   : > { %v1878_v35 = vmul.f32 %v1846_v60, %v5640_v23  ;;  %v2230_v25 = vmul.f32 -1.45660715e-05, %v5640_v23  ;;  %v4726_v13 = vpop.eup %4725  ;;  %v2177_v11 = vadd.f32 -0.016096033, %v2145_v1  ;;  %v2324_v16 = vadd.f32 -0.001682827, %v2292_v6  ;;  %v1471_v1 = vpop.f32.mrf.mxu0 }
 0x1f8   : > { %v1687_v7 = vmul.f32 0.70710677, %v5678_v18  ;;  %v5690_v63 = vadd.f32 %v1428_v5, %v5492_v62  ;;  %v2513_v4 = vmul.f32 %v4722_v12, %v2193_v19  ;;  %v2115_v44 = vadd.f32 -0.0029546, %v2083_v40 }
 0x1f9   : > { %v1940_v34 = vmul.f32 %v1908_v52, %v5624_v15  ;;  %v5693_v46 = vclamps-f32 %v1685_v48, 4.0  ;;  %v4728_v43 = vpop.eup %4727  ;;  %v2544_v21 = vadd.f32 1.0, %v2512_v8  ;;  %v2546_v57 = vadd.f32 1.0, %v2514_v59 }
 0x1fa   : > { %v2528_v49 = vmul.f32 %v4724_v10, %v2208_v56  ;;  %v5696_v33 = vmul.f32 0.5, %v5598_v47  ;;  %v2515_v30 = vmul.f32 %v4726_v13, %v2195_v45  ;;  %v2210_v27 = vmul.f32 %v5526_v42, %v2178_v50 }
 0x1fb   : > { %v4730_v41 = vpop.eup %4729  ;;  %v1910_v31 = vadd.f32 -2.101024e-06, %v1878_v35  ;;  %v2262_v62 = vadd.f32 -0.00021337405, %v2230_v25  ;;  %v2209_v12 = vmul.f32 %v5557_v28, %v2177_v11  ;;  %v2356_v54 = vmul.f32 %v2324_v16, %v5624_v15 }
 0x1fc   : > { %v5701_v14 = vclamps-f32 %v1687_v7, 4.0  ;;  %v1700_v60 = vmul.f32 0.70710677, %v5690_v63  ;;  %v2545_v6 = vadd.f32 1.0, %v2513_v4  ;;  %v2147_v19 = vmul.f32 %v2115_v44, %v5593_v39 }
 0x1fd   : > { %v1972_v47 = vadd.f32 -5.6925062e-05, %v1940_v34  ;;  %v5707_v40 = vmul.f32 %v5693_v46, %v5693_v46  ;;  %v5710_v42 = vmul.f32 %v2544_v21, %v5574_v0  ;;  %v2560_v52 = vadd.f32 1.0, %v2528_v49 }
 0x1fe   : > { %v2530_v28 = vmul.f32 %v4728_v43, %v2210_v27  ;;  %v2529_v48 = vmul.f32 %v4730_v41, %v2209_v12  ;;  %v2547_v5 = vadd.f32 1.0, %v2515_v30  ;;  %v1942_v8 = vmul.f32 %v1910_v31, %v5640_v23 }
 0x1ff   : > { %v2294_v59 = vmul.f32 %v2262_v62, %v5640_v23  ;;  %v5715_v45 = vadd.f32 %v1471_v1, %v5507_v26  ;;  %v5718_v39 = vmul.f32 %v2546_v57, %v5579_v53  ;;  %v2388_v56 = vadd.f32 -0.0073733293, %v2356_v54 }
 0x200   : > { %v5722_v10 = vmul.f32 %v5701_v14, %v5701_v14  ;;  %v5724_v0 = vclamps-f32 %v1700_v60, 4.0  ;;  %v2577_v50 = vmul.f32 %v2545_v6, %v5643_v24  ;;  %v2179_v35 = vadd.f32 -0.016096033, %v2147_v19 }
 0x201   : > { %v2004_v25 = vmul.f32 %v1972_v47, %v5624_v15  ;;  %v1813_v13 = vmul.f32 -2.7261424e-10, %v5707_v40  ;;  %v2592_v26 = vmul.f32 %v2560_v52, %v5657_v32  ;;  %v2562_v11 = vadd.f32 1.0, %v2530_v28  ;;  %v4623_v28 = vld [vmem:[%s6625_s6 + $0x138] sm:$0xff]  }
 0x202   : > { %v2561_v16 = vadd.f32 1.0, %v2529_v48  ;;  %v5732_v53 = vmul.f32 %v5724_v0, %v5724_v0  ;;  %v5735_v7 = vmul.f32 %v2547_v5, %v5652_v17  ;;  %v1974_v4 = vadd.f32 -5.6925062e-05, %v1942_v8  ;;  %v1430_v8 = vpop.f32.mrf.mxu1 }
 0x203   : > { %v2326_v44 = vadd.f32 -0.001682827, %v2294_v59  ;;  %v1702_v24 = vmul.f32 0.70710677, %v5715_v45  ;;  %v4732_v34 = vpop.eup %4731  ;;  %v2420_v43 = vmul.f32 %v2388_v56, %v5624_v15  ;;  %v5740_v21 = vmul.f32 0.5, %v5606_v3 }
 0x204   : > { %v2229_v32 = vmul.f32 -1.45660715e-05, %v5707_v40  ;;  %v1815_v57 = vmul.f32 -2.7261424e-10, %v5722_v10  ;;  %v2211_v49 = vmul.f32 %v5582_v61, %v2179_v35  ;;  %v2036_v41 = vadd.f32 -0.00073499064, %v2004_v25 }
 0x205   : > { %v1845_v30 = vadd.f32 2.7706815e-08, %v1813_v13  ;;  %v5745_v17 = vclamps-f32 %v1702_v24, 4.0  ;;  %v2608_v27 = vpack.c.bf16 %v2592_v26, %v5710_v42  ;;  %v2593_v31 = vmul.f32 %v2561_v16, %v5670_v55  ;;  %v1473_v26 = vpop.f32.mrf.mxu0 }
 0x206   : > { %v2231_v62 = vmul.f32 -1.45660715e-05, %v5722_v10  ;;  %v1828_v12 = vmul.f32 -2.7261424e-10, %v5732_v53  ;;  %v5752_v3 = vmul.f32 %v2562_v11, %v5660_v29  ;;  %v2531_v54 = vmul.f32 %v4732_v34, %v2211_v49  ;;  %v4625_v11 = vld [vmem:[%s6625_s6 + $0x170] sm:$0xff]  }
 0x207   : > { %v2006_v60 = vmul.f32 %v1974_v4, %v5640_v23  ;;  %v2358_v61 = vmul.f32 %v2326_v44, %v5640_v23  ;;  %v5757_v1 = vmul.f32 0.5, %v5664_v22  ;;  %v2261_v6 = vadd.f32 -0.00021337405, %v2229_v32 }
 0x208   : > { %v1847_v19 = vadd.f32 2.7706815e-08, %v1815_v57  ;;  %v5761_v55 = vmul.f32 %v5745_v17, %v5745_v17  ;;  %v2068_v47 = vmul.f32 %v2036_v41, %v5624_v15  ;;  %v2452_v42 = vadd.f32 -0.014264739, %v2420_v43 }
 0x209   : > { %v1877_v29 = vmul.f32 %v1845_v30, %v5707_v40  ;;  %v2244_v52 = vmul.f32 -1.45660715e-05, %v5732_v53  ;;  %v2263_v48 = vadd.f32 -0.00021337405, %v2231_v62  ;;  %v1860_v22 = vadd.f32 2.7706815e-08, %v1828_v12 }
 0x20a   : > { %v1830_v5 = vmul.f32 -2.7261424e-10, %v5761_v55  ;;  %v2609_v59 = vpack.c.bf16 %v2593_v31, %v2577_v50  ;;  %v2610_v56 = vpack.c.bf16 %v5752_v3, %v5718_v39  ;;  %v2563_v35 = vadd.f32 1.0, %v2531_v54  ;;  %v4627_v31 = vld [vmem:[%s6625_s6 + $0x130] sm:$0xff]   ;;  %v4629_v12 = vld [vmem:[%s6625_s6 + $0x168] sm:$0xff]   ;;  %v4637_v3 = vld [vmem:[%s6625_s6 + $0x158] sm:$0xff]  }
 0x20b   : > { %v2038_v25 = vadd.f32 -0.00073499064, %v2006_v60  ;;  %v2390_v13 = vadd.f32 -0.0073733293, %v2358_v61  ;;  %v2293_v16 = vmul.f32 %v2261_v6, %v5707_v40  ;;  %v1879_v4 = vmul.f32 %v1847_v19, %v5722_v10  ;;  %v4628_v39 = vld [vmem:[%s6625_s6 + $0x1b0] sm:$0xff]  }
 0x20c   : > { %v1862_v44 = vadd.f32 2.7706815e-08, %v1830_v5  ;;  %v2246_v24 = vmul.f32 -1.45660715e-05, %v5761_v55  ;;  %3687 = vmatprep.mubr.bf16.mxu1 %v2609_v59  ;;  %v2100_v50 = vadd.f32 -0.0029546, %v2068_v47  ;;  %v5779_v32 = vadd.f32 %v1430_v8, %v5513_v36 }
 0x20d   : > { %v1909_v34 = vadd.f32 -2.101024e-06, %v1877_v29  ;;  %v2276_v43 = vadd.f32 -0.00021337405, %v2244_v52  ;;  %3688 = vmatmul.mubr.bf16.vlgmr.msra.gmra.mxu1 %v2608_v27  ;;  %v2295_v57 = vmul.f32 %v2263_v48, %v5722_v10  ;;  %v1892_v49 = vmul.f32 %v1860_v22, %v5732_v53  ;;  %v4631_v47 = vld [vmem:[%s6625_s6 + $0x128] sm:$0xff]   ;;  %v4624_v8 = vld [vmem:[%s6625_s6 + $0x1b8] sm:$0xff]  }
 0x20e   : > { %v2278_v41 = vadd.f32 -0.00021337405, %v2246_v24  ;;  %v5784_v30 = vadd.f32 %v1473_v26, %v5519_v37  ;;  %4419 = vmatpush3.bf16.msra.mxu1 %v4623_v28  ;;  %v2595_v62 = vmul.f32 %v2563_v35, %v5674_v20  ;;  %4733 = vrcp.f32 %v2452_v42  ;;  %v4633_v59 = vld [vmem:[%s6625_s6 + $0x160] sm:$0xff]  }
 0x20f   : > { %v2422_v36 = vmul.f32 %v2390_v13, %v5640_v23  ;;  %v5792_v27 = vmul.f32 0.5, %v5678_v18  ;;  %4420 = vmatprep.subr.bf16.mxu1 %v4625_v11  ;;  %v2070_v37 = vmul.f32 %v2038_v25, %v5640_v23  ;;  %v2325_v54 = vadd.f32 -0.001682827, %v2293_v16 }
 0x210   : > { %v1911_v60 = vadd.f32 -2.101024e-06, %v1879_v4  ;;  %v1894_v61 = vmul.f32 %v1862_v44, %v5761_v55  ;;  %v2132_v6 = vmul.f32 %v2100_v50, %v5624_v15  ;;  %v1941_v20 = vmul.f32 %v1909_v34, %v5707_v40  ;;  %v1510_v44 = vpop.f32.mrf.mxu1 }
 0x211   : > { %v2308_v19 = vmul.f32 %v2276_v43, %v5732_v53  ;;  %v1701_v18 = vmul.f32 0.70710677, %v5779_v32  ;;  %v2327_v42 = vadd.f32 -0.001682827, %v2295_v57  ;;  %v1924_v29 = vadd.f32 -2.101024e-06, %v1892_v49 }
 0x212   : > { %v2310_v52 = vmul.f32 %v2278_v41, %v5761_v55  ;;  %v1703_v28 = vmul.f32 0.70710677, %v5784_v30  ;;  %4421 = vmatpush3.bf16.msra.mxu1 %v4627_v31  ;;  %v2454_v48 = vadd.f32 -0.014264739, %v2422_v36  ;;  %v5809_v15 = vmul.f32 0.5, %v5690_v63  ;;  %v4635_v57 = vld [vmem:[%s6625_s6 + $0x120] sm:$0xff]  }
 0x213   : > { %v5811_v22 = vclamps-f32 %v1701_v18, 4.0  ;;  %v2611_v5 = vpack.c.bf16 %v2595_v62, %v5735_v7  ;;  %4422 = vmatprep.subr.bf16.mxu1 %v4629_v12  ;;  %v2357_v35 = vmul.f32 %v2325_v54, %v5707_v40  ;;  %v1943_v25 = vmul.f32 %v1911_v60, %v5722_v10  ;;  %v4626_v7 = vld [vmem:[%s6625_s6 + $0x1f0] sm:$0xff]   ;;  %v4630_v12 = vld [vmem:[%s6625_s6 + $0x1e8] sm:$0xff]  }
 0x214   : > { %v1926_v13 = vadd.f32 -2.101024e-06, %v1894_v61  ;;  %v5822_v63 = vclamps-f32 %v1703_v28, 4.0  ;;  %v2164_v26 = vadd.f32 -0.016096033, %v2132_v6  ;;  %v2359_v50 = vmul.f32 %v2327_v42, %v5722_v10  ;;  %v4639_v42 = vld [vmem:[%s6625_s6 + $0x118] sm:$0xff]  }
 0x215   : > { %v5827_v11 = vadd.f32 -0.0029546, %v2070_v37  ;;  %v2340_v16 = vadd.f32 -0.001682827, %v2308_v19  ;;  %v5831_v4 = vmul.f32 %v5811_v22, %v5811_v22  ;;  %3728 = vmatprep.mubr.bf16.mxu0 %v2611_v5  ;;  %v1973_v24 = vadd.f32 -5.6925062e-05, %v1941_v20 }
 0x216   : > { %v1956_v34 = vmul.f32 %v1924_v29, %v5732_v53  ;;  %v2342_v43 = vadd.f32 -0.001682827, %v2310_v52  ;;  %3729 = vmatmul.mubr.bf16.vlgmr.msra.gmra.mxu0 %v2610_v56  ;;  %4423 = vmatpush3.bf16.msra.mxu1 %v4631_v47  ;;  %4735 = vrcp.f32 %v2454_v48  ;;  %v5845_v31 = vmul.f32 %v5822_v63, %v5822_v63  ;;  %v4632_v5 = vld [vmem:[%s6625_s6 + $0x1a8] sm:$0xff]  }
 0x217   : > { %v1829_v49 = vmul.f32 -2.7261424e-10, %v5831_v4  ;;  %v2245_v41 = vmul.f32 -1.45660715e-05, %v5831_v4  ;;  %4441 = vmatpush3.bf16.msra.mxu0 %v4624_v8  ;;  %4424 = vmatprep.subr.bf16.mxu1 %v4633_v59  ;;  %v2389_v56 = vadd.f32 -0.0073733293, %v2357_v35  ;;  %v1958_v36 = vmul.f32 %v1926_v13, %v5761_v55  ;;  %v1553_v8 = vpop.f32.mrf.mxu0 }
 0x218   : > { %v1975_v62 = vadd.f32 -5.6925062e-05, %v1943_v25  ;;  %4442 = vmatprep.subr.bf16.mxu0 %v4626_v7  ;;  %v5858_v37 = vadd.f32 %v1510_v44, %v5523_v38  ;;  %v2372_v54 = vmul.f32 %v2340_v16, %v5732_v53  ;;  %v1831_v6 = vmul.f32 -2.7261424e-10, %v5845_v31  ;;  %v4641_v59 = vld [vmem:[%s6625_s6 + $0x150] sm:$0xff]   ;;  %v4634_v44 = vld [vmem:[%s6625_s6 + $0x1e0] sm:$0xff]  }
 0x219   : > { %v1861_v60 = vadd.f32 2.7706815e-08, %v1829_v49  ;;  %v2277_v61 = vadd.f32 -0.00021337405, %v2245_v41  ;;  %v2005_v20 = vmul.f32 %v1973_v24, %v5707_v40  ;;  %v2391_v19 = vadd.f32 -0.0073733293, %v2359_v50 }
 0x21a   : > { %v1988_v18 = vadd.f32 -5.6925062e-05, %v1956_v34  ;;  %v2374_v47 = vmul.f32 %v2342_v43, %v5761_v55  ;;  %4425 = vmatpush3.bf16.msra.mxu1 %v4635_v57  ;;  %v1863_v28 = vadd.f32 2.7706815e-08, %v1831_v6  ;;  %v2247_v48 = vmul.f32 -1.45660715e-05, %v5845_v31 }
 0x21b   : > { %v1893_v29 = vmul.f32 %v1861_v60, %v5831_v4  ;;  %v2309_v52 = vmul.f32 %v2277_v61, %v5831_v4  ;;  %4443 = vmatpush3.bf16.msra.mxu0 %v4628_v39  ;;  %4426 = vmatprep.subr.bf16.mxu1 %v4637_v3  ;;  %v4734_v35 = vpop.eup %4733  ;;  %v2196_v25 = vmul.f32 %v5613_v58, %v2164_v26  ;;  %v1990_v7 = vadd.f32 -5.6925062e-05, %v1958_v36  ;;  %v4643_v26 = vld [vmem:[%s6625_s6 + $0x110] sm:$0xff]   ;;  %v4636_v36 = vld [vmem:[%s6625_s6 + $0x1a0] sm:$0xff]  }
 0x21c   : > { %v2421_v13 = vmul.f32 %v2389_v56, %v5707_v40  ;;  %4444 = vmatprep.subr.bf16.mxu0 %v4630_v12  ;;  %v1688_v16 = vmul.f32 0.70710677, %v5858_v37  ;;  %v2007_v24 = vmul.f32 %v1975_v62, %v5722_v10  ;;  %v2404_v50 = vadd.f32 -0.0073733293, %v2372_v54  ;;  %v4645_v12 = vld [vmem:[%s6625_s6 + $0x148] sm:$0xff]  }
 0x21d   : > { %v1925_v34 = vadd.f32 -2.101024e-06, %v1893_v29  ;;  %v1895_v43 = vmul.f32 %v1863_v28, %v5845_v31  ;;  %v2406_v57 = vadd.f32 -0.0073733293, %v2374_v47  ;;  %v2279_v49 = vadd.f32 -0.00021337405, %v2247_v48 }
 0x21e   : > { %v5884_v41 = vclamps-f32 %v1688_v16, 4.0  ;;  %v5887_v58 = vadd.f32 %v1553_v8, %v5533_v2  ;;  %4427 = vmatpush3.bf16.msra.mxu1 %v4639_v42  ;;  %v2037_v39 = vadd.f32 -0.00073499064, %v2005_v20  ;;  %v2423_v3 = vmul.f32 %v2391_v19, %v5722_v10  ;;  %v4638_v20 = vld [vmem:[%s6625_s6 + $0x1d8] sm:$0xff]   ;;  %v4647_v29 = vld [vmem:[%s6625_s6 + $0x108] sm:$0xff]  }
 0x21f   : > { %v2020_v56 = vmul.f32 %v1988_v18, %v5732_v53  ;;  %v2341_v62 = vadd.f32 -0.001682827, %v2309_v52  ;;  %4445 = vmatpush3.bf16.msra.mxu0 %v4632_v5  ;;  %4428 = vmatprep.subr.bf16.mxu1 %v4641_v59  ;;  %v2022_v54 = vmul.f32 %v1990_v7, %v5761_v55  ;;  %v1927_v60 = vadd.f32 -2.101024e-06, %v1895_v43  ;;  %v4640_v16 = vld [vmem:[%s6625_s6 + $0x198] sm:$0xff]  }
 0x220   : > { %v2311_v61 = vmul.f32 %v2279_v49, %v5845_v31  ;;  %v5904_v6 = vmul.f32 %v5884_v41, %v5884_v41  ;;  %4446 = vmatprep.subr.bf16.mxu0 %v4634_v44  ;;  %v2453_v19 = vadd.f32 -0.014264739, %v2421_v13  ;;  %v2039_v18 = vadd.f32 -0.00073499064, %v2007_v24  ;;  %v4649_v44 = vld [vmem:[%s6625_s6 + $0x140] sm:$0xff]  }
 0x221   : > { %v2436_v47 = vmul.f32 %v2404_v50, %v5732_v53  ;;  %v1957_v42 = vmul.f32 %v1925_v34, %v5831_v4  ;;  %v2438_v52 = vmul.f32 %v2406_v57, %v5761_v55  ;;  %v1690_v5 = vmul.f32 0.70710677, %v5887_v58 }
 0x222   : > { %v2343_v28 = vadd.f32 -0.001682827, %v2311_v61  ;;  %v1816_v48 = vmul.f32 -2.7261424e-10, %v5904_v6  ;;  %4429 = vmatpush3.bf16.msra.mxu1 %v4643_v26  ;;  %v2134_v8 = vmul.f32 %v5827_v11, %v5640_v23  ;;  %v2455_v59 = vadd.f32 -0.014264739, %v2423_v3 }
 0x223   : > { %v2052_v13 = vadd.f32 -0.00073499064, %v2020_v56  ;;  %v2373_v7 = vmul.f32 %v2341_v62, %v5831_v4  ;;  %4447 = vmatpush3.bf16.msra.mxu0 %v4636_v36  ;;  %4430 = vmatprep.subr.bf16.mxu1 %v4645_v12  ;;  %v4736_v24 = vpop.eup %4735  ;;  %v2516_v50 = vmul.f32 %v4734_v35, %v2196_v25  ;;  %v2069_v34 = vmul.f32 %v2037_v39, %v5707_v40  ;;  %v4642_v11 = vld [vmem:[%s6625_s6 + $0x1d0] sm:$0xff]   ;;  %v4651_v39 = vld [vmem:[%s6625_s6 + $0x100] sm:$0xff]   ;;  %v4653_v61 = vld [vmem:[%s6625_s6 + $0x278] sm:$0xff]  }
 0x224   : > { %v2054_v43 = vadd.f32 -0.00073499064, %v2022_v54  ;;  %v1959_v23 = vmul.f32 %v1927_v60, %v5845_v31  ;;  %4448 = vmatprep.subr.bf16.mxu0 %v4638_v20  ;;  %v2071_v57 = vmul.f32 %v2039_v18, %v5722_v10  ;;  %v2468_v49 = vadd.f32 -0.014264739, %v2436_v47  ;;  %v4644_v25 = vld [vmem:[%s6625_s6 + $0x190] sm:$0xff]   ;;  %v4646_v60 = vld [vmem:[%s6625_s6 + $0x1c8] sm:$0xff]  }
 0x225   : > { %v1989_v26 = vadd.f32 -5.6925062e-05, %v1957_v42  ;;  %v1848_v3 = vadd.f32 2.7706815e-08, %v1816_v48  ;;  %4737 = vrcp.f32 %v2453_v19  ;;  %v2470_v56 = vadd.f32 -0.014264739, %v2438_v52 }
 0x226   : > { %v2375_v62 = vmul.f32 %v2343_v28, %v5845_v31  ;;  %v5933_v35 = vclamps-f32 %v1690_v5, 4.0  ;;  %4431 = vmatpush3.bf16.msra.mxu1 %v4647_v29  ;;  %v2166_v36 = vadd.f32 -0.016096033, %v2134_v8  ;;  %4739 = vrcp.f32 %v2455_v59 }
 0x227   : > { %v2084_v12 = vmul.f32 %v2052_v13, %v5732_v53  ;;  %v2405_v54 = vadd.f32 -0.0073733293, %v2373_v7  ;;  %4449 = vmatpush3.bf16.msra.mxu0 %v4640_v16  ;;  %4432 = vmatprep.subr.bf16.mxu1 %v4649_v44  ;;  %v2101_v20 = vadd.f32 -0.0029546, %v2069_v34  ;;  %v2086_v19 = vmul.f32 %v2054_v43, %v5761_v55  ;;  %v1512_v16 = vpop.f32.mrf.mxu1  ;;  %v4648_v44 = vld [vmem:[%s6625_s6 + $0x188] sm:$0xff]  }
 0x228   : > { %v1991_v18 = vadd.f32 -5.6925062e-05, %v1959_v23  ;;  %v2232_v47 = vmul.f32 -1.45660715e-05, %v5904_v6  ;;  %4450 = vmatprep.subr.bf16.mxu0 %v4642_v11  ;;  %v2103_v42 = vadd.f32 -0.0029546, %v2071_v57  ;;  %4741 = vrcp.f32 %v2468_v49 }
 0x229   : > { %v2021_v29 = vmul.f32 %v1989_v26, %v5831_v4  ;;  %v1880_v52 = vmul.f32 %v1848_v3, %v5904_v6  ;;  %v2548_v28 = vadd.f32 1.0, %v2516_v50  ;;  %4743 = vrcp.f32 %v2470_v56 }
 0x22a   : > { %v2407_v48 = vadd.f32 -0.0073733293, %v2375_v62  ;;  %v5954_v5 = vmul.f32 %v5933_v35, %v5933_v35  ;;  %4433 = vmatpush3.bf16.msra.mxu1 %v4651_v39  ;;  %v2198_v8 = vmul.f32 %v5631_v51, %v2166_v36  ;;  %v2116_v59 = vadd.f32 -0.0029546, %v2084_v12  ;;  %v4650_v51 = vld [vmem:[%s6625_s6 + $0x1c0] sm:$0xff]   ;;  %v1514_v36 = vpop.f32.mrf.mxu1 }
 0x22b   : > { %v5958_v13 = vmul.f32 0.5, %v5715_v45  ;;  %v2437_v7 = vmul.f32 %v2405_v54, %v5831_v4  ;;  %4451 = vmatpush3.bf16.msra.mxu0 %v4644_v25  ;;  %4462 = vmatprep.subr.bf16.mxu1 %v4653_v61  ;;  %v2133_v50 = vmul.f32 %v2101_v20, %v5707_v40  ;;  %v2118_v34 = vadd.f32 -0.0029546, %v2086_v19 }
 0x22c   : > { %v2023_v43 = vmul.f32 %v1991_v18, %v5845_v31  ;;  %v2264_v23 = vadd.f32 -0.00021337405, %v2232_v47  ;;  %4452 = vmatprep.subr.bf16.mxu0 %v4646_v60  ;;  %v2135_v45 = vmul.f32 %v2103_v42, %v5722_v10  ;;  %v5971_v11 = vmul.f32 0.5, %v5779_v32  ;;  %v1555_v32 = vpop.f32.mrf.mxu0 }
 0x22d   : > { %v2053_v57 = vadd.f32 -0.00073499064, %v2021_v29  ;;  %v1912_v49 = vadd.f32 -2.101024e-06, %v1880_v52  ;;  %v5974_v26 = vmul.f32 %v2548_v28, %v5696_v33  ;;  %v2439_v40 = vmul.f32 %v2407_v48, %v5845_v31  ;;  %v4652_v33 = vld [vmem:[%s6625_s6 + $0x180] sm:$0xff]   ;;  %v6637_v29 = vld [vmem:[#allocation3_spill] sm:$0xff] }
 0x22e   : > { %v1818_v3 = vmul.f32 -2.7261424e-10, %v5954_v5  ;;  %v5979_v56 = vadd.f32 %v1512_v16, %v5547_v9  ;;  %v2518_v62 = vmul.f32 %v4736_v24, %v2198_v8  ;;  %v2148_v25 = vmul.f32 %v2116_v59, %v5732_v53  ;;  %v4654_v53 = vld [vmem:[%s6625_s6 + $0x2f8] sm:$0xff]  }
 0x22f   : > { %v2469_v39 = vadd.f32 -0.014264739, %v2437_v7  ;;  %v2234_v10 = vmul.f32 -1.45660715e-05, %v5954_v5  ;;  %4453 = vmatpush3.bf16.msra.mxu0 %v4648_v44  ;;  %v2165_v12 = vadd.f32 -0.016096033, %v2133_v50  ;;  %v2150_v54 = vmul.f32 %v2118_v34, %v5761_v55 }
 0x230   : > { %v2055_v60 = vadd.f32 -0.00073499064, %v2023_v43  ;;  %v2296_v61 = vmul.f32 %v2264_v23, %v5904_v6  ;;  %4454 = vmatprep.subr.bf16.mxu0 %v4650_v51  ;;  %v2167_v24 = vadd.f32 -0.016096033, %v2135_v45  ;;  %v2085_v20 = vmul.f32 %v2053_v57, %v5831_v4 }
 0x231   : > { %v1944_v19 = vmul.f32 %v1912_v49, %v5904_v6  ;;  %v1689_v18 = vmul.f32 0.70710677, %v5979_v56  ;;  %v2471_v47 = vadd.f32 -0.014264739, %v2439_v40  ;;  %v1850_v42 = vadd.f32 2.7706815e-08, %v1818_v3 }
 0x232   : > { %v5995_v52 = vadd.f32 %v1555_v32, %v6637_v29  ;;  %v5998_v55 = vadd.f32 %v1514_v36, %v5523_v38  ;;  %v4738_v28 = vpop.eup %4737  ;;  %v2550_v48 = vadd.f32 1.0, %v2518_v62  ;;  %v2180_v8 = vadd.f32 -0.016096033, %v2148_v25 }
 0x233   : > { %4745 = vrcp.f32 %v2469_v39  ;;  %v2266_v59 = vadd.f32 -0.00021337405, %v2234_v10  ;;  %4455 = vmatpush3.bf16.msra.mxu0 %v4652_v33  ;;  %v4740_v7 = vpop.eup %4739  ;;  %v2182_v16 = vadd.f32 -0.016096033, %v2150_v54  ;;  %v2087_v44 = vmul.f32 %v2055_v60, %v5845_v31  ;;  %v1557_v33 = vpop.f32.mrf.mxu0 }
 0x234   : > { %v2328_v50 = vadd.f32 -0.001682827, %v2296_v61  ;;  %v6001_v34 = vclamps-f32 %v1689_v18, 4.0  ;;  %4484 = vmatprep.subr.bf16.mxu0 %v4654_v53  ;;  %v2197_v43 = vmul.f32 %v5693_v46, %v2165_v12  ;;  %v2199_v23 = vmul.f32 %v5701_v14, %v2167_v24 }
 0x235   : > { %v2117_v38 = vadd.f32 -0.0029546, %v2085_v20  ;;  %v1976_v51 = vadd.f32 -5.6925062e-05, %v1944_v19  ;;  %v4742_v45 = vpop.eup %4741  ;;  %4747 = vrcp.f32 %v2471_v47  ;;  %v1882_v57 = vmul.f32 %v1850_v42, %v5954_v5 }
 0x236   : > { %v1691_v49 = vmul.f32 0.70710677, %v5995_v52  ;;  %v1704_v40 = vmul.f32 0.70710677, %v5998_v55  ;;  %v4744_v3 = vpop.eup %4743  ;;  %v2517_v62 = vmul.f32 %v4738_v28, %v2197_v43  ;;  %v2519_v25 = vmul.f32 %v4740_v7, %v2199_v23 }
 0x237   : > { %v2212_v39 = vmul.f32 %v5724_v0, %v2180_v8  ;;  %v2298_v10 = vmul.f32 %v2266_v59, %v5954_v5  ;;  %v2214_v46 = vmul.f32 %v5745_v17, %v2182_v16  ;;  %v2119_v14 = vadd.f32 -0.0029546, %v2087_v44 }
 0x238   : > { %v2360_v32 = vmul.f32 %v2328_v50, %v5904_v6  ;;  %v6014_v36 = vmul.f32 %v6001_v34, %v6001_v34  ;;  %v2149_v12 = vmul.f32 %v2117_v38, %v5831_v4  ;;  %v6018_v54 = vmul.f32 0.5, %v5784_v30 }
 0x239   : > { %v2008_v60 = vmul.f32 %v1976_v51, %v5904_v6  ;;  %v6021_v0 = vclamps-f32 %v1704_v40, 4.0  ;;  %v2532_v61 = vmul.f32 %v4742_v45, %v2212_v39  ;;  %v2534_v53 = vmul.f32 %v4744_v3, %v2214_v46 }
 0x23a   : > { %v1914_v17 = vadd.f32 -2.101024e-06, %v1882_v57  ;;  %v6023_v24 = vclamps-f32 %v1691_v49, 4.0  ;;  %v2549_v20 = vadd.f32 1.0, %v2517_v62  ;;  %v2551_v19 = vadd.f32 1.0, %v2519_v25 }
 0x23b   : > { %v2330_v18 = vadd.f32 -0.001682827, %v2298_v10  ;;  %v6026_v47 = vadd.f32 %v1557_v33, %v5533_v2  ;;  %v2151_v4 = vmul.f32 %v2119_v14, %v5845_v31  ;;  %v2392_v42 = vadd.f32 -0.0073733293, %v2360_v32 }
 0x23c   : > { %v1817_v30 = vmul.f32 -2.7261424e-10, %v6014_v36  ;;  %v6032_v28 = vmul.f32 %v6021_v0, %v6021_v0  ;;  %v6035_v8 = vmul.f32 %v2550_v48, %v5740_v21  ;;  %v2181_v59 = vadd.f32 -0.016096033, %v2149_v12 }
 0x23d   : > { %v2040_v7 = vadd.f32 -0.00073499064, %v2008_v60  ;;  %v2233_v16 = vmul.f32 -1.45660715e-05, %v6014_v36  ;;  %v2564_v44 = vadd.f32 1.0, %v2532_v61  ;;  %v2566_v50 = vadd.f32 1.0, %v2534_v53 }
 0x23e   : > { %v1946_v2 = vmul.f32 %v1914_v17, %v5954_v5  ;;  %v6041_v31 = vmul.f32 %v6023_v24, %v6023_v24  ;;  %v6044_v43 = vmul.f32 %v2549_v20, %v5757_v1  ;;  %v6047_v23 = vmul.f32 %v2551_v19, %v5792_v27 }
 0x23f   : > { %v2362_v21 = vmul.f32 %v2330_v18, %v5954_v5  ;;  %v1706_v48 = vmul.f32 0.70710677, %v6026_v47  ;;  %v2183_v51 = vadd.f32 -0.016096033, %v2151_v4  ;;  %v2424_v45 = vmul.f32 %v2392_v42, %v5904_v6  ;;  %v1516_v42 = vpop.f32.mrf.mxu1 }
 0x240   : > { %v4746_v38 = vpop.eup %4745  ;;  %v1849_v57 = vadd.f32 2.7706815e-08, %v1817_v30  ;;  %v1832_v49 = vmul.f32 -2.7261424e-10, %v6032_v28  ;;  %v2213_v40 = vmul.f32 %v5811_v22, %v2181_v59  ;;  %v2072_v3 = vmul.f32 %v2040_v7, %v5904_v6 }
 0x241   : > { %v2265_v1 = vadd.f32 -0.00021337405, %v2233_v16  ;;  %v2248_v62 = vmul.f32 -1.45660715e-05, %v6032_v28  ;;  %v6057_v27 = vmul.f32 %v2564_v44, %v5809_v15  ;;  %v6060_v25 = vmul.f32 %v2566_v50, %v5958_v13 }
 0x242   : > { %v1978_v39 = vadd.f32 -5.6925062e-05, %v1946_v2  ;;  %v1819_v10 = vmul.f32 -2.7261424e-10, %v6041_v31  ;;  %v4748_v46 = vpop.eup %4747  ;;  %v2533_v14 = vmul.f32 %v4746_v38, %v2213_v40  ;;  %v2394_v32 = vadd.f32 -0.0073733293, %v2362_v21 }
 0x243   : > { %v2235_v33 = vmul.f32 -1.45660715e-05, %v6041_v31  ;;  %v6064_v22 = vclamps-f32 %v1706_v48, 4.0  ;;  %v2215_v12 = vmul.f32 %v5822_v63, %v2183_v51  ;;  %v2456_v60 = vadd.f32 -0.014264739, %v2424_v45 }
 0x244   : > { %v1881_v61 = vmul.f32 %v1849_v57, %v6014_v36  ;;  %v1864_v15 = vadd.f32 2.7706815e-08, %v1832_v49  ;;  %v2104_v53 = vadd.f32 -0.0029546, %v2072_v3  ;;  %v2297_v13 = vmul.f32 %v2265_v1, %v6014_v36  ;;  %v1559_v3 = vpop.f32.mrf.mxu0 }
 0x245   : > { %v2280_v17 = vadd.f32 -0.00021337405, %v2248_v62  ;;  %v6071_v20 = vmul.f32 %v6064_v22, %v6064_v22  ;;  %v2612_v19 = vpack.c.bf16 %v6057_v27, %v5974_v26  ;;  %v2614_v18 = vpack.c.bf16 %v6060_v25, %v6035_v8 }
 0x246   : > { %v2535_v4 = vmul.f32 %v4748_v46, %v2215_v12  ;;  %v1851_v63 = vadd.f32 2.7706815e-08, %v1819_v10  ;;  %v2565_v30 = vadd.f32 1.0, %v2533_v14  ;;  %v2010_v59 = vmul.f32 %v1978_v39, %v5954_v5 }
 0x247   : > { %v2426_v7 = vmul.f32 %v2394_v32, %v5954_v5  ;;  %v2267_v16 = vadd.f32 -0.00021337405, %v2235_v33  ;;  %4749 = vrcp.f32 %v2456_v60  ;;  %v1913_v44 = vadd.f32 -2.101024e-06, %v1881_v61 }
 0x248   : > { %v1896_v50 = vmul.f32 %v1864_v15, %v6032_v28  ;;  %v1834_v2 = vmul.f32 -2.7261424e-10, %v6071_v20  ;;  %v2136_v21 = vmul.f32 %v2104_v53, %v5904_v6  ;;  %v2329_v48 = vadd.f32 -0.001682827, %v2297_v13 }
 0x249   : > { %v2312_v38 = vmul.f32 %v2280_v17, %v6032_v28  ;;  %v6084_v51 = vadd.f32 %v1516_v42, %v5547_v9  ;;  %v2567_v45 = vadd.f32 1.0, %v2535_v4  ;;  %v1883_v57 = vmul.f32 %v1851_v63, %v6041_v31 }
 0x24a   : > { %v1866_v49 = vadd.f32 2.7706815e-08, %v1834_v2  ;;  %v2250_v40 = vmul.f32 -1.45660715e-05, %v6071_v20  ;;  %v2597_v1 = vmul.f32 %v2565_v30, %v5971_v11  ;;  %v2042_v62 = vadd.f32 -0.00073499064, %v2010_v59 }
 0x24b   : > { %v6089_v39 = vadd.f32 -0.014264739, %v2426_v7  ;;  %v2299_v6 = vmul.f32 %v2267_v16, %v6041_v31  ;;  %v1945_v10 = vmul.f32 %v1913_v44, %v6014_v36  ;;  %v1928_v46 = vadd.f32 -2.101024e-06, %v1896_v50  ;;  %v4655_v50 = vld [vmem:[%s6625_s6 + $0x238] sm:$0xff]  }
 0x24c   : > { %v1898_v9 = vmul.f32 %v1866_v49, %v6071_v20  ;;  %v2282_v14 = vadd.f32 -0.00021337405, %v2250_v40  ;;  %v2361_v32 = vmul.f32 %v2329_v48, %v6014_v36  ;;  %v2344_v33 = vadd.f32 -0.001682827, %v2312_v38 }
 0x24d   : > { %v1705_v12 = vmul.f32 0.70710677, %v6084_v51  ;;  %v6097_v60 = vadd.f32 %v1559_v3, %v6637_v29  ;;  %v2599_v11 = vmul.f32 %v2567_v45, %v6018_v54  ;;  %v1915_v61 = vadd.f32 -2.101024e-06, %v1883_v57  ;;  %v4656_v45 = vld [vmem:[%s6625_s6 + $0x2b8] sm:$0xff]   ;;  %v4658_v57 = vld [vmem:[%s6625_s6 + $0x2f0] sm:$0xff]  }
 0x24e   : > { %v1930_v15 = vadd.f32 -2.101024e-06, %v1898_v9  ;;  %v2314_v53 = vmul.f32 %v2282_v14, %v6071_v20  ;;  %v6101_v13 = vadd.f32 -0.016096033, %v2136_v21  ;;  %v2074_v17 = vmul.f32 %v2042_v62, %v5954_v5  ;;  %v4660_v9 = vld [vmem:[%s6625_s6 + $0x2b0] sm:$0xff]   ;;  %v4661_v14 = vld [vmem:[%s6625_s6 + $0x268] sm:$0xff]  }
 0x24f   : > { %v2331_v4 = vadd.f32 -0.001682827, %v2299_v6  ;;  %v6104_v63 = vclamps-f32 %v1705_v12, 4.0  ;;  %v1977_v42 = vadd.f32 -5.6925062e-05, %v1945_v10  ;;  %v1960_v30 = vmul.f32 %v1928_v46, %v6032_v28  ;;  %v4659_v46 = vld [vmem:[%s6625_s6 + $0x230] sm:$0xff]  }
 0x250   : > { %v2346_v59 = vadd.f32 -0.001682827, %v2314_v53  ;;  %v1707_v29 = vmul.f32 0.70710677, %v6097_v60  ;;  %v2393_v7 = vadd.f32 -0.0073733293, %v2361_v32  ;;  %v2376_v54 = vmul.f32 %v2344_v33, %v6032_v28 }
 0x251   : > { %v6111_v16 = vmul.f32 %v6104_v63, %v6104_v63  ;;  %v2613_v44 = vpack.c.bf16 %v2597_v1, %v6044_v43  ;;  %v1947_v2 = vmul.f32 %v1915_v61, %v6041_v31  ;;  %v1962_v21 = vmul.f32 %v1930_v15, %v6071_v20  ;;  %v4657_v43 = vld [vmem:[%s6625_s6 + $0x270] sm:$0xff]   ;;  %v6164_v15 = vld [vmem:[%s6624_s5 + $0x8] sm:$0xff]  ;;  %v6638_v53 = vld [vmem:[#allocation2_spill] sm:$0xff] }
 0x252   : > { %v6119_v48 = vclamps-f32 %v1707_v29, 4.0  ;;  %v2615_v38 = vpack.c.bf16 %v2599_v11, %v6047_v23  ;;  %v6131_v49 = vadd.f32 -0.0029546, %v2074_v17  ;;  %v2363_v40 = vmul.f32 %v2331_v4, %v6041_v31  ;;  %v1596_v29 = vpop.f32.mrf.mxu1 }
 0x253   : > { %v1833_v3 = vmul.f32 -2.7261424e-10, %v6111_v16  ;;  %v2249_v23 = vmul.f32 -1.45660715e-05, %v6111_v16  ;;  %3769 = vmatprep.mubr.bf16.mxu1 %v2613_v44  ;;  %v2009_v1 = vmul.f32 %v1977_v42, %v6014_v36  ;;  %v1992_v62 = vadd.f32 -5.6925062e-05, %v1960_v30 }
 0x254   : > { %v2378_v6 = vmul.f32 %v2346_v59, %v6071_v20  ;;  %v6140_v10 = vmul.f32 %v6119_v48, %v6119_v48  ;;  %3810 = vmatprep.mubr.bf16.mxu0 %v2615_v38  ;;  %3770 = vmatmul.mubr.bf16.vlgmr.msra.gmra.mxu1 %v2612_v19  ;;  %v6154_v32 = vpop.eup %4749  ;;  %v2425_v33 = vmul.f32 %v2393_v7, %v6014_v36  ;;  %v2408_v12 = vadd.f32 -0.0073733293, %v2376_v54  ;;  %v4662_v30 = vld [vmem:[%s6625_s6 + $0x2e8] sm:$0xff]  }
 0x255   : > { %v1865_v11 = vadd.f32 2.7706815e-08, %v1833_v3  ;;  %v2281_v26 = vadd.f32 -0.00021337405, %v2249_v23  ;;  %3811 = vmatmul.mubr.bf16.vlgmr.msra.gmra.mxu0 %v2614_v18  ;;  %4463 = vmatpush3.bf16.msra.mxu1 %v4655_v50  ;;  %v1979_v27 = vadd.f32 -5.6925062e-05, %v1947_v2  ;;  %v2024_v54 = vmul.f32 %v1992_v62, %v6032_v28 }
 0x256   : > { %v1994_v19 = vadd.f32 -5.6925062e-05, %v1962_v21  ;;  %v1835_v61 = vmul.f32 -2.7261424e-10, %v6140_v10  ;;  %4485 = vmatpush3.bf16.msra.mxu0 %v4656_v45  ;;  %4464 = vmatprep.subr.bf16.mxu1 %v4657_v43  ;;  %v6639_v17 = vsub.s32 4, %v6638_v53  ;;  %v4663_v59 = vld [vmem:[%s6625_s6 + $0x228] sm:$0xff]   ;;  %v2440_v2 = vmul.f32 %v2408_v12, %v6032_v28 }
 0x257   : > { %v2395_v42 = vadd.f32 -0.0073733293, %v2363_v40  ;;  %v1897_v8 = vmul.f32 %v1865_v11, %v6111_v16  ;;  %v2313_v25 = vmul.f32 %v2281_v26, %v6111_v16  ;;  %v2251_v18 = vmul.f32 -1.45660715e-05, %v6140_v10  ;;  %4486 = vmatprep.subr.bf16.mxu0 %v4658_v57  ;;  %v4664_v3 = vld [vmem:[%s6625_s6 + $0x2a8] sm:$0xff]  }
 0x258   : > { %v6169_v4 = vrot.slane %v6164_v15, %v6639_v17  ;;  %v2041_v7 = vadd.f32 -0.00073499064, %v2009_v1  ;;  %v2410_v44 = vadd.f32 -0.0073733293, %v2378_v6  ;;  %v1867_v50 = vadd.f32 2.7706815e-08, %v1835_v61 }
 0x259   : > { %v1929_v21 = vadd.f32 -2.101024e-06, %v1897_v8  ;;  %v2345_v38 = vadd.f32 -0.001682827, %v2313_v25  ;;  %v2283_v45 = vadd.f32 -0.00021337405, %v2251_v18  ;;  %4465 = vmatpush3.bf16.msra.mxu1 %v4659_v46  ;;  %v2026_v57 = vmul.f32 %v1994_v19, %v6071_v20 }
 0x25a   : > { %v2457_v43 = vadd.f32 -0.014264739, %v2425_v33  ;;  %v1899_v40 = vmul.f32 %v1867_v50, %v6140_v10  ;;  %4487 = vmatpush3.bf16.msra.mxu0 %v4660_v9  ;;  %4466 = vmatprep.subr.bf16.mxu1 %v4661_v14  ;;  %v6188_v23 = vadd.f32 %v1596_v29, %v6169_v4  ;;  %v4665_v1 = vld [vmem:[%s6625_s6 + $0x260] sm:$0xff]   ;;  %v2011_v62 = vmul.f32 %v1979_v27, %v6041_v31  ;;  %v4669_v61 = vld [vmem:[%s6625_s6 + $0x258] sm:$0xff]  }
 0x25b   : > { %v2427_v6 = vmul.f32 %v2395_v42, %v6041_v31  ;;  %v1961_v46 = vmul.f32 %v1929_v21, %v6111_v16  ;;  %v2377_v9 = vmul.f32 %v2345_v38, %v6111_v16  ;;  %4488 = vmatprep.subr.bf16.mxu0 %v4662_v30  ;;  %v4666_v14 = vld [vmem:[%s6625_s6 + $0x2e0] sm:$0xff]   ;;  %v2073_v33 = vmul.f32 %v2041_v7, %v6014_v36 }
 0x25c   : > { %v2056_v12 = vadd.f32 -0.00073499064, %v2024_v54  ;;  %v2442_v11 = vmul.f32 %v2410_v44, %v6071_v20  ;;  %v2315_v26 = vmul.f32 %v2283_v45, %v6140_v10  ;;  %v4667_v27 = vld [vmem:[%s6625_s6 + $0x220] sm:$0xff]   ;;  %4751 = vrcp.f32 %v6089_v39  ;;  %v4670_v39 = vld [vmem:[%s6625_s6 + $0x2d8] sm:$0xff]  }
 0x25d   : > { %v4668_v19 = vld [vmem:[%s6625_s6 + $0x2a0] sm:$0xff]   ;;  %v1993_v17 = vadd.f32 -5.6925062e-05, %v1961_v46  ;;  %v2409_v42 = vadd.f32 -0.0073733293, %v2377_v9  ;;  %4467 = vmatpush3.bf16.msra.mxu1 %v4663_v59  ;;  %4753 = vrcp.f32 %v2457_v43  ;;  %v6641_v46 = vsub.s32 6, %v6638_v53 }
 0x25e   : > { %v1931_v8 = vadd.f32 -2.101024e-06, %v1899_v40  ;;  %v2472_v25 = vadd.f32 -0.014264739, %v2440_v2  ;;  %v2058_v18 = vadd.f32 -0.00073499064, %v2026_v57  ;;  %4489 = vmatpush3.bf16.msra.mxu0 %v4664_v3  ;;  %4468 = vmatprep.subr.bf16.mxu1 %v4665_v1  ;;  %v2088_v59 = vmul.f32 %v2056_v12, %v6032_v28  ;;  %v1598_v3 = vpop.f32.mrf.mxu1 }
 0x25f   : > { %v1692_v30 = vmul.f32 0.70710677, %v6188_v23  ;;  %v2043_v29 = vadd.f32 -0.00073499064, %v2011_v62  ;;  %v2459_v7 = vadd.f32 -0.014264739, %v2427_v6  ;;  %v2025_v54 = vmul.f32 %v1993_v17, %v6111_v16  ;;  %4490 = vmatprep.subr.bf16.mxu0 %v4666_v14 }
 0x260   : > { %v2441_v44 = vmul.f32 %v2409_v42, %v6111_v16  ;;  %v2105_v50 = vadd.f32 -0.0029546, %v2073_v33  ;;  %v2474_v2 = vadd.f32 -0.014264739, %v2442_v11  ;;  %v2347_v21 = vadd.f32 -0.001682827, %v2315_v26 }
 0x261   : > { %v2057_v38 = vadd.f32 -0.00073499064, %v2025_v54  ;;  %v1963_v43 = vmul.f32 %v1931_v8, %v6140_v10  ;;  %v6640_v57 = vsub.s32 5, %v6638_v53  ;;  %4469 = vmatpush3.bf16.msra.mxu1 %v4667_v27  ;;  %v4671_v1 = vld [vmem:[%s6625_s6 + $0x218] sm:$0xff]   ;;  %4755 = vrcp.f32 %v2472_v25  ;;  %v4673_v33 = vld [vmem:[%s6625_s6 + $0x250] sm:$0xff]   ;;  %v1639_v27 = vpop.f32.mrf.mxu0 }
 0x262   : > { %v2473_v45 = vadd.f32 -0.014264739, %v2441_v44  ;;  %v2090_v62 = vmul.f32 %v2058_v18, %v6071_v20  ;;  %v6230_v6 = vclamps-f32 %v1692_v30, 4.0  ;;  %v6235_v9 = vrot.slane %v6164_v15, %v6641_v46  ;;  %4491 = vmatpush3.bf16.msra.mxu0 %v4668_v19  ;;  %4470 = vmatprep.subr.bf16.mxu1 %v4669_v61  ;;  %v4672_v14 = vld [vmem:[%s6625_s6 + $0x298] sm:$0xff]   ;;  %v4674_v19 = vld [vmem:[%s6625_s6 + $0x2d0] sm:$0xff]  }
 0x263   : > { %v6224_v40 = vrot.slane %v6164_v15, %v6640_v57  ;;  %v2200_v12 = vmul.f32 %v5884_v41, %v6101_v13  ;;  %v2138_v11 = vmul.f32 %v6131_v49, %v5954_v5  ;;  %v2089_v26 = vmul.f32 %v2057_v38, %v6111_v16  ;;  %4492 = vmatprep.subr.bf16.mxu0 %v4670_v39  ;;  %v4675_v49 = vld [vmem:[%s6625_s6 + $0x210] sm:$0xff]   ;;  %v4678_v39 = vld [vmem:[%s6625_s6 + $0x2c8] sm:$0xff]  }
 0x264   : > { %4757 = vrcp.f32 %v2473_v45  ;;  %v2075_v61 = vmul.f32 %v2043_v29, %v6041_v31  ;;  %v2120_v17 = vadd.f32 -0.0029546, %v2088_v59  ;;  %v1995_v13 = vadd.f32 -5.6925062e-05, %v1963_v43  ;;  %v4676_v29 = vld [vmem:[%s6625_s6 + $0x290] sm:$0xff]   ;;  %v4679_v43 = vld [vmem:[%s6625_s6 + $0x208] sm:$0xff]  }
 0x265   : > { %4759 = vrcp.f32 %v2474_v2  ;;  %v6253_v42 = vadd.f32 %v1598_v3, %v6224_v40  ;;  %v2121_v41 = vadd.f32 -0.0029546, %v2089_v26  ;;  %v2379_v5 = vmul.f32 %v2347_v21, %v6140_v10  ;;  %4471 = vmatpush3.bf16.msra.mxu1 %v4671_v1 }
 0x266   : > { %4761 = vrcp.f32 %v2459_v7  ;;  %v2137_v8 = vmul.f32 %v2105_v50, %v6014_v36  ;;  %v2122_v25 = vadd.f32 -0.0029546, %v2090_v62  ;;  %v6262_v18 = vmul.f32 %v6230_v6, %v6230_v6  ;;  %4493 = vmatpush3.bf16.msra.mxu0 %v4672_v14  ;;  %4472 = vmatprep.subr.bf16.mxu1 %v4673_v33  ;;  %v4677_v7 = vld [vmem:[%s6625_s6 + $0x248] sm:$0xff]  }
 0x267   : > { %v6265_v30 = vadd.f32 %v1639_v27, %v6235_v9  ;;  %v1656_v36 = vmul.f32 0.5, %v5858_v37  ;;  %v2520_v54 = vmul.f32 %v6154_v32, %v2200_v12  ;;  %v1693_v44 = vmul.f32 0.70710677, %v6253_v42  ;;  %4494 = vmatprep.subr.bf16.mxu0 %v4674_v19 }
 0x268   : > { %v6280_v50 = vmul.f32 0.5, %v5887_v58  ;;  %v2170_v59 = vadd.f32 -0.016096033, %v2138_v11  ;;  %v2107_v2 = vadd.f32 -0.0029546, %v2075_v61  ;;  %v2152_v21 = vmul.f32 %v2120_v17, %v6032_v28  ;;  %v4680_v58 = vld [vmem:[%s6625_s6 + $0x288] sm:$0xff]   ;;  %v1641_v61 = vpop.f32.mrf.mxu0 }
 0x269   : > { %v6284_v38 = vmul.f32 0.5, %v5979_v56  ;;  %v2153_v37 = vmul.f32 %v2121_v41, %v6111_v16  ;;  %v2027_v32 = vmul.f32 %v1995_v13, %v6140_v10  ;;  %v2411_v45 = vadd.f32 -0.0073733293, %v2379_v5  ;;  %4473 = vmatpush3.bf16.msra.mxu1 %v4675_v49  ;;  %v4681_v28 = vld [vmem:[%s6625_s6 + $0x240] sm:$0xff]   ;;  %v4752_v56 = vpop.eup %4751 }
 0x26a   : > { %v2169_v57 = vadd.f32 -0.016096033, %v2137_v8  ;;  %v2154_v16 = vmul.f32 %v2122_v25, %v6071_v20  ;;  %v1820_v3 = vmul.f32 -2.7261424e-10, %v6262_v18  ;;  %v1694_v1 = vmul.f32 0.70710677, %v6265_v30  ;;  %4495 = vmatpush3.bf16.msra.mxu0 %v4676_v29  ;;  %4474 = vmatprep.subr.bf16.mxu1 %v4677_v7  ;;  %v4754_v62 = vpop.eup %4753 }
 0x26b   : > { %v2552_v46 = vadd.f32 1.0, %v2520_v54  ;;  %v6301_v14 = vmul.f32 0.5, %v5995_v52  ;;  %v6303_v33 = vclamps-f32 %v1693_v44, 4.0  ;;  %v6642_v12 = vsub.s32 7, %v6638_v53  ;;  %4496 = vmatprep.subr.bf16.mxu0 %v4678_v39  ;;  %v4682_v20 = vld [vmem:[%s6625_s6 + $0x2c0] sm:$0xff]   ;;  %v4685_v25 = vld [vmem:[%s6625_s6 + $0x378] sm:$0xff]  }
 0x26c   : > { %v2202_v26 = vmul.f32 %v5933_v35, %v2170_v59  ;;  %v2139_v27 = vmul.f32 %v2107_v2, %v6041_v31  ;;  %v2184_v19 = vadd.f32 -0.016096033, %v2152_v21  ;;  %v2236_v52 = vmul.f32 -1.45660715e-05, %v6262_v18  ;;  %v4683_v13 = vld [vmem:[%s6625_s6 + $0x200] sm:$0xff]  }
 0x26d   : > { %v6308_v11 = vrot.slane %v6164_v15, %v6642_v12  ;;  %v2185_v17 = vadd.f32 -0.016096033, %v2153_v37  ;;  %v2059_v41 = vadd.f32 -0.00073499064, %v2027_v32  ;;  %v2443_v53 = vmul.f32 %v2411_v45, %v6140_v10  ;;  %4475 = vmatpush3.bf16.msra.mxu1 %v4679_v43  ;;  %v4684_v35 = vld [vmem:[%s6625_s6 + $0x280] sm:$0xff]  }
 0x26e   : > { %v6319_v15 = vmul.f32 %v6303_v33, %v6303_v33  ;;  %v2201_v31 = vmul.f32 %v6001_v34, %v2169_v57  ;;  %v2186_v5 = vadd.f32 -0.016096033, %v2154_v16  ;;  %v1852_v49 = vadd.f32 2.7706815e-08, %v1820_v3  ;;  %4497 = vmatpush3.bf16.msra.mxu0 %v4680_v58  ;;  %4476 = vmatprep.subr.bf16.mxu1 %v4681_v28  ;;  %v4756_v29 = vpop.eup %4755  ;;  %v4686_v34 = vld [vmem:[%s6625_s6 + $0x3f8] sm:$0xff]  }
 0x26f   : > { %v6328_v8 = vclamps-f32 %v1694_v1, 4.0  ;;  %v6333_v7 = vmul.f32 %v2552_v46, %v1656_v36  ;;  %v2522_v54 = vmul.f32 %v4752_v56, %v2202_v26  ;;  %v1672_v44 = vmul.f32 0.5, %v5998_v55  ;;  %4498 = vmatprep.subr.bf16.mxu0 %v4682_v20 }
 0x270   : > { %v6337_v39 = vadd.f32 %v1641_v61, %v6308_v11  ;;  %v2521_v2 = vmul.f32 %v4754_v62, %v2201_v31  ;;  %v2171_v21 = vadd.f32 -0.016096033, %v2139_v27  ;;  %v2216_v37 = vmul.f32 %v6021_v0, %v2184_v19  ;;  %v1600_v19 = vpop.f32.mrf.mxu1 }
 0x271   : > { %v4758_v59 = vpop.eup %4757  ;;  %v2268_v32 = vadd.f32 -0.00021337405, %v2236_v52  ;;  %v2217_v36 = vmul.f32 %v6104_v63, %v2185_v17  ;;  %v2091_v43 = vmul.f32 %v2059_v41, %v6140_v10  ;;  %v2475_v55 = vadd.f32 -0.014264739, %v2443_v53  ;;  %4477 = vmatpush3.bf16.msra.mxu1 %v4683_v13 }
 0x272   : > { %v4760_v45 = vpop.eup %4759  ;;  %v1821_v58 = vmul.f32 -2.7261424e-10, %v6319_v15  ;;  %v1674_v56 = vmul.f32 0.5, %v6026_v47  ;;  %v2218_v57 = vmul.f32 %v6064_v22, %v2186_v5  ;;  %v1884_v16 = vmul.f32 %v1852_v49, %v6262_v18  ;;  %4499 = vmatpush3.bf16.msra.mxu0 %v4684_v35  ;;  %4506 = vmatprep.subr.bf16.mxu1 %v4685_v25 }
 0x273   : > { %v4762_v28 = vpop.eup %4761  ;;  %v6351_v0 = vmul.f32 %v6328_v8, %v6328_v8  ;;  %v2536_v63 = vmul.f32 %v4756_v29, %v2216_v37  ;;  %v1673_v3 = vmul.f32 0.5, %v6084_v51  ;;  %v2537_v1 = vmul.f32 %v4758_v59, %v2217_v36  ;;  %4528 = vmatprep.subr.bf16.mxu0 %v4686_v34  ;;  %v1643_v59 = vpop.f32.mrf.mxu0 }
 0x274   : > { %v1695_v62 = vmul.f32 0.70710677, %v6337_v39  ;;  %v2554_v46 = vadd.f32 1.0, %v2522_v54  ;;  %v2203_v47 = vmul.f32 %v6023_v24, %v2171_v21  ;;  %v2538_v12 = vmul.f32 %v4760_v45, %v2218_v57 }
 0x275   : > { %v2300_v22 = vmul.f32 %v2268_v32, %v6262_v18  ;;  %v2123_v20 = vadd.f32 -0.0029546, %v2091_v43  ;;  %4763 = vrcp.f32 %v2475_v55  ;;  %v1853_v26 = vadd.f32 2.7706815e-08, %v1821_v58  ;;  %v1602_v32 = vpop.f32.mrf.mxu1 }
 0x276   : > { %v2237_v27 = vmul.f32 -1.45660715e-05, %v6319_v15  ;;  %v2553_v52 = vadd.f32 1.0, %v2521_v2  ;;  %v2523_v61 = vmul.f32 %v4762_v28, %v2203_v47  ;;  %v1916_v17 = vadd.f32 -2.101024e-06, %v1884_v16 }
 0x277   : > { %v1822_v51 = vmul.f32 -2.7261424e-10, %v6351_v0  ;;  %v2568_v41 = vadd.f32 1.0, %v2536_v63  ;;  %v2569_v53 = vadd.f32 1.0, %v2537_v1  ;;  %v2238_v13 = vmul.f32 -1.45660715e-05, %v6351_v0 }
 0x278   : > { %v6360_v35 = vclamps-f32 %v1695_v62, 4.0  ;;  %v6363_v24 = vmul.f32 %v2554_v46, %v6280_v50  ;;  %v2570_v31 = vadd.f32 1.0, %v2538_v12  ;;  %v2332_v5 = vadd.f32 -0.001682827, %v2300_v22 }
 0x279   : > { %v6366_v49 = vadd.f32 %v1600_v19, %v6169_v4  ;;  %v6369_v25 = vmul.f32 0.5, %v6097_v60  ;;  %v2155_v29 = vmul.f32 %v2123_v20, %v6140_v10  ;;  %v1885_v54 = vmul.f32 %v1853_v26, %v6319_v15 }
 0x27a   : > { %v2269_v34 = vadd.f32 -0.00021337405, %v2237_v27  ;;  %v2585_v2 = vmul.f32 %v2553_v52, %v6284_v38  ;;  %v2555_v21 = vadd.f32 1.0, %v2523_v61  ;;  %v1948_v50 = vmul.f32 %v1916_v17, %v6262_v18  ;;  %v4691_v52 = vld [vmem:[%s6625_s6 + $0x330] sm:$0xff]  }
 0x27b   : > { %v1854_v37 = vadd.f32 2.7706815e-08, %v1822_v51  ;;  %v2600_v45 = vmul.f32 %v2568_v41, %v1672_v44  ;;  %v2601_v36 = vmul.f32 %v2569_v53, %v1673_v3  ;;  %v2270_v4 = vadd.f32 -0.00021337405, %v2238_v13 }
 0x27c   : > { %v6377_v60 = vmul.f32 %v6360_v35, %v6360_v35  ;;  %v6379_v43 = vmul.f32 %v2570_v31, %v1674_v56  ;;  %v2364_v10 = vmul.f32 %v2332_v5, %v6262_v18  ;;  %v1708_v55 = vmul.f32 0.70710677, %v6366_v49 }
 0x27d   : > { %v6384_v38 = vadd.f32 %v1643_v59, %v6235_v9  ;;  %v2187_v58 = vadd.f32 -0.016096033, %v2155_v29  ;;  %v1917_v28 = vadd.f32 -2.101024e-06, %v1885_v54  ;;  %v2301_v57 = vmul.f32 %v2269_v34, %v6319_v15 }
 0x27e   : > { %v6388_v44 = vadd.f32 %v1602_v32, %v6224_v40  ;;  %v6391_v16 = vmul.f32 %v2555_v21, %v6301_v14  ;;  %v1980_v63 = vadd.f32 -5.6925062e-05, %v1948_v50  ;;  %v1886_v56 = vmul.f32 %v1854_v37, %v6351_v0  ;;  %v4687_v40 = vld [vmem:[%s6625_s6 + $0x338] sm:$0xff]  }
 0x27f   : > { %v6394_v3 = vclamps-f32 %v1708_v55, 4.0  ;;  %v2616_v1 = vpack.c.bf16 %v2600_v45, %v6333_v7  ;;  %v2302_v9 = vmul.f32 %v2270_v4, %v6351_v0  ;;  %v1823_v62 = vmul.f32 -2.7261424e-10, %v6377_v60  ;;  %v4689_v7 = vld [vmem:[%s6625_s6 + $0x370] sm:$0xff]   ;;  %v4695_v55 = vld [vmem:[%s6625_s6 + $0x328] sm:$0xff]  }
 0x280   : > { %v2617_v46 = vpack.c.bf16 %v2601_v36, %v2585_v2  ;;  %v2618_v14 = vpack.c.bf16 %v6379_v43, %v6363_v24  ;;  %v2396_v47 = vadd.f32 -0.0073733293, %v2364_v10  ;;  %v1710_v22 = vmul.f32 0.70710677, %v6384_v38 }
 0x281   : > { %v6406_v12 = vmul.f32 %v6394_v3, %v6394_v3  ;;  %v2219_v20 = vmul.f32 %v6119_v48, %v2187_v58  ;;  %v1949_v26 = vmul.f32 %v1917_v28, %v6319_v15  ;;  %v2333_v27 = vadd.f32 -0.001682827, %v2301_v57  ;;  %v4693_v48 = vld [vmem:[%s6625_s6 + $0x368] sm:$0xff]   ;;  %v4697_v58 = vld [vmem:[%s6625_s6 + $0x360] sm:$0xff]  }
 0x282   : > { %v1709_v19 = vmul.f32 0.70710677, %v6388_v44  ;;  %3851 = vmatprep.mubr.bf16.mxu1 %v2617_v46  ;;  %v4764_v61 = vpop.eup %4763  ;;  %v2012_v17 = vmul.f32 %v1980_v63, %v6262_v18  ;;  %v1918_v51 = vadd.f32 -2.101024e-06, %v1886_v56  ;;  %v1855_v13 = vadd.f32 2.7706815e-08, %v1823_v62 }
 0x283   : > { %v1836_v41 = vmul.f32 -2.7261424e-10, %v6406_v12  ;;  %v2252_v53 = vmul.f32 -1.45660715e-05, %v6406_v12  ;;  %3852 = vmatmul.mubr.bf16.vlgmr.msra.gmra.mxu1 %v2616_v1  ;;  %v2239_v31 = vmul.f32 -1.45660715e-05, %v6377_v60  ;;  %v2428_v54 = vmul.f32 %v2396_v47, %v6262_v18 }
 0x284   : > { %v6425_v5 = vclamps-f32 %v1710_v22, 4.0  ;;  %v6427_v29 = vclamps-f32 %v1709_v19, 4.0  ;;  %4507 = vmatpush3.bf16.msra.mxu1 %v4687_v40  ;;  %v2334_v34 = vadd.f32 -0.001682827, %v2302_v9  ;;  %v2539_v21 = vmul.f32 %v4764_v61, %v2219_v20 }
 0x285   : > { %v1868_v59 = vadd.f32 2.7706815e-08, %v1836_v41  ;;  %v2284_v2 = vadd.f32 -0.00021337405, %v2252_v53  ;;  %4508 = vmatprep.subr.bf16.mxu1 %v4689_v7  ;;  %v1981_v50 = vadd.f32 -5.6925062e-05, %v1949_v26  ;;  %v2365_v37 = vmul.f32 %v2333_v27, %v6319_v15 }
 0x286   : > { %v6433_v32 = vmul.f32 %v6425_v5, %v6425_v5  ;;  %v1950_v45 = vmul.f32 %v1918_v51, %v6351_v0  ;;  %v6440_v10 = vmul.f32 %v6427_v29, %v6427_v29  ;;  %v2044_v28 = vadd.f32 -0.00073499064, %v2012_v17  ;;  %v4699_v41 = vld [vmem:[%s6625_s6 + $0x320] sm:$0xff]   ;;  %v4701_v53 = vld [vmem:[%s6625_s6 + $0x358] sm:$0xff]  }
 0x287   : > { %v1900_v36 = vmul.f32 %v1868_v59, %v6406_v12  ;;  %v2316_v4 = vmul.f32 %v2284_v2, %v6406_v12  ;;  %v1887_v57 = vmul.f32 %v1855_v13, %v6377_v60  ;;  %v2271_v63 = vadd.f32 -0.00021337405, %v2239_v31  ;;  %v1645_v59 = vpop.f32.mrf.mxu0 }
 0x288   : > { %v1838_v56 = vmul.f32 -2.7261424e-10, %v6433_v32  ;;  %4509 = vmatpush3.bf16.msra.mxu1 %v4691_v52  ;;  %v6451_v1 = vmul.f32 %v2334_v34, %v6351_v0  ;;  %v2254_v46 = vmul.f32 -1.45660715e-05, %v6433_v32  ;;  %v2571_v40 = vadd.f32 1.0, %v2539_v21 }
 0x289   : > { %v1932_v9 = vadd.f32 -2.101024e-06, %v1900_v36  ;;  %v2348_v62 = vadd.f32 -0.001682827, %v2316_v4  ;;  %4510 = vmatprep.subr.bf16.mxu1 %v4693_v48  ;;  %v2013_v47 = vmul.f32 %v1981_v50, %v6319_v15  ;;  %v2397_v22 = vadd.f32 -0.0073733293, %v2365_v37 }
 0x28a   : > { %v1870_v7 = vadd.f32 2.7706815e-08, %v1838_v56  ;;  %v2286_v27 = vadd.f32 -0.00021337405, %v2254_v46  ;;  %v1837_v19 = vmul.f32 -2.7261424e-10, %v6440_v10  ;;  %v2303_v61 = vmul.f32 %v2271_v63, %v6377_v60 }
 0x28b   : > { %v1964_v20 = vmul.f32 %v1932_v9, %v6406_v12  ;;  %v2380_v26 = vmul.f32 %v2348_v62, %v6406_v12  ;;  %v1919_v52 = vadd.f32 -2.101024e-06, %v1887_v57  ;;  %v2253_v51 = vmul.f32 -1.45660715e-05, %v6440_v10 }
 0x28c   : > { %v1902_v17 = vmul.f32 %v1870_v7, %v6433_v32  ;;  %4511 = vmatpush3.bf16.msra.mxu1 %v4695_v55  ;;  %v2318_v31 = vmul.f32 %v2286_v27, %v6433_v32  ;;  %v1869_v34 = vadd.f32 2.7706815e-08, %v1837_v19  ;;  %v2460_v2 = vadd.f32 -0.014264739, %v2428_v54  ;;  %v4703_v54 = vld [vmem:[%s6625_s6 + $0x318] sm:$0xff]  }
 0x28d   : > { %v1996_v48 = vadd.f32 -5.6925062e-05, %v1964_v20  ;;  %v2412_v13 = vadd.f32 -0.0073733293, %v2380_v26  ;;  %4512 = vmatprep.subr.bf16.mxu1 %v4697_v58  ;;  %v2429_v21 = vmul.f32 %v2397_v22, %v6319_v15  ;;  %v2285_v37 = vadd.f32 -0.00021337405, %v2253_v51 }
 0x28e   : > { %v1934_v50 = vadd.f32 -2.101024e-06, %v1902_v17  ;;  %v2045_v36 = vadd.f32 -0.00073499064, %v2013_v47  ;;  %v2350_v57 = vadd.f32 -0.001682827, %v2318_v31  ;;  %v1901_v56 = vmul.f32 %v1869_v34, %v6440_v10 }
 0x28f   : > { %v2028_v4 = vmul.f32 %v1996_v48, %v6406_v12  ;;  %v2444_v55 = vmul.f32 %v2412_v13, %v6406_v12  ;;  %v1982_v63 = vadd.f32 -5.6925062e-05, %v1950_v45  ;;  %v2317_v9 = vmul.f32 %v2285_v37, %v6440_v10  ;;  %v4705_v45 = vld [vmem:[%s6625_s6 + $0x350] sm:$0xff]   ;;  %v4709_v34 = vld [vmem:[%s6625_s6 + $0x348] sm:$0xff]  }
 0x290   : > { %v6474_v62 = vadd.f32 %v1645_v59, %v6308_v11  ;;  %4513 = vmatpush3.bf16.msra.mxu1 %v4699_v41  ;;  %v2603_v58 = vmul.f32 %v2571_v40, %v6369_v25  ;;  %v1951_v46 = vmul.f32 %v1919_v52, %v6377_v60  ;;  %v2335_v47 = vadd.f32 -0.001682827, %v2303_v61  ;;  %v4688_v41 = vld [vmem:[%s6625_s6 + $0x3b8] sm:$0xff]   ;;  %v4690_v13 = vld [vmem:[%s6625_s6 + $0x3f0] sm:$0xff]  }
 0x291   : > { %v2060_v22 = vadd.f32 -0.00073499064, %v2028_v4  ;;  %4514 = vmatprep.subr.bf16.mxu1 %v4701_v53  ;;  %v2476_v7 = vadd.f32 -0.014264739, %v2444_v55  ;;  %v1966_v11 = vmul.f32 %v1934_v50, %v6433_v32  ;;  %v1933_v20 = vadd.f32 -2.101024e-06, %v1901_v56 }
 0x292   : > { %v2349_v26 = vadd.f32 -0.001682827, %v2317_v9  ;;  %v2076_v27 = vmul.f32 %v2044_v28, %v6262_v18  ;;  %v2077_v19 = vmul.f32 %v2045_v36, %v6319_v15  ;;  %v2461_v17 = vadd.f32 -0.014264739, %v2429_v21  ;;  %v4707_v31 = vld [vmem:[%s6625_s6 + $0x310] sm:$0xff]  }
 0x293   : > { %v2382_v25 = vmul.f32 %v2350_v57, %v6433_v32  ;;  %v2092_v40 = vmul.f32 %v2060_v22, %v6406_v12  ;;  %v1965_v52 = vmul.f32 %v1933_v20, %v6440_v10  ;;  %v1711_v51 = vmul.f32 0.70710677, %v6474_v62 }
 0x294   : > { %v2381_v61 = vmul.f32 %v2349_v26, %v6440_v10  ;;  %4515 = vmatpush3.bf16.msra.mxu1 %v4703_v54  ;;  %4765 = vrcp.f32 %v2460_v2  ;;  %v1983_v28 = vadd.f32 -5.6925062e-05, %v1951_v46  ;;  %v2367_v53 = vmul.f32 %v2335_v47, %v6377_v60  ;;  %v4692_v54 = vld [vmem:[%s6625_s6 + $0x3b0] sm:$0xff]   ;;  %v4713_v47 = vld [vmem:[%s6625_s6 + $0x340] sm:$0xff]  }
 0x295   : > { %v2619_v48 = vpack.c.bf16 %v2603_v58, %v6391_v16  ;;  %4516 = vmatprep.subr.bf16.mxu1 %v4705_v45  ;;  %4767 = vrcp.f32 %v2476_v7  ;;  %v1998_v59 = vadd.f32 -5.6925062e-05, %v1966_v11  ;;  %v1997_v2 = vadd.f32 -5.6925062e-05, %v1965_v52  ;;  %v4711_v58 = vld [vmem:[%s6625_s6 + $0x308] sm:$0xff]  }
 0x296   : > { %v2413_v21 = vadd.f32 -0.0073733293, %v2381_v61  ;;  %v2398_v50 = vadd.f32 -0.0073733293, %v6451_v1  ;;  %v2109_v16 = vadd.f32 -0.0029546, %v2077_v19  ;;  %4769 = vrcp.f32 %v2461_v17 }
 0x297   : > { %v6507_v37 = vclamps-f32 %v1711_v51, 4.0  ;;  %3892 = vmatprep.mubr.bf16.mxu0 %v2619_v48  ;;  %v2124_v36 = vadd.f32 -0.0029546, %v2092_v40  ;;  %v2414_v4 = vadd.f32 -0.0073733293, %v2382_v25  ;;  %v2029_v55 = vmul.f32 %v1997_v2, %v6440_v10  ;;  %v4696_v17 = vld [vmem:[%s6625_s6 + $0x3a8] sm:$0xff]  }
 0x298   : > { %v2445_v57 = vmul.f32 %v2413_v21, %v6440_v10  ;;  %3893 = vmatmul.mubr.bf16.vlgmr.msra.gmra.mxu0 %v2618_v14  ;;  %v2014_v56 = vmul.f32 %v1982_v63, %v6351_v0  ;;  %v2399_v9 = vadd.f32 -0.0073733293, %v2367_v53  ;;  %4517 = vmatpush3.bf16.msra.mxu1 %v4707_v31  ;;  %v2108_v46 = vadd.f32 -0.0029546, %v2076_v27  ;;  %v4694_v63 = vld [vmem:[%s6625_s6 + $0x3e8] sm:$0xff]  }
 0x299   : > { %v6517_v1 = vmul.f32 %v6507_v37, %v6507_v37  ;;  %4529 = vmatpush3.bf16.msra.mxu0 %v4688_v41  ;;  %v2015_v24 = vmul.f32 %v1983_v28, %v6377_v60  ;;  %v2030_v43 = vmul.f32 %v1998_v59, %v6433_v32  ;;  %v2061_v14 = vadd.f32 -0.00073499064, %v2029_v55  ;;  %4518 = vmatprep.subr.bf16.mxu1 %v4709_v34  ;;  %v4700_v34 = vld [vmem:[%s6625_s6 + $0x3a0] sm:$0xff]  }
 0x29a   : > { %4530 = vmatprep.subr.bf16.mxu0 %v4690_v13  ;;  %v2430_v22 = vmul.f32 %v2398_v50, %v6351_v0  ;;  %v2477_v45 = vadd.f32 -0.014264739, %v2445_v57  ;;  %v2141_v20 = vmul.f32 %v2109_v16, %v6319_v15  ;;  %v2156_v26 = vmul.f32 %v2124_v36, %v6406_v12  ;;  %v4698_v15 = vld [vmem:[%s6625_s6 + $0x3e0] sm:$0xff]  }
 0x29b   : > { %v1839_v7 = vmul.f32 -2.7261424e-10, %v6517_v1  ;;  %v2255_v11 = vmul.f32 -1.45660715e-05, %v6517_v1  ;;  %v2446_v27 = vmul.f32 %v2414_v4, %v6433_v32  ;;  %v2093_v19 = vmul.f32 %v2061_v14, %v6440_v10  ;;  %v4715_v12 = vld [vmem:[%s6625_s6 + $0x300] sm:$0xff]  }
 0x29c   : > { %v2431_v25 = vmul.f32 %v2399_v9, %v6377_v60  ;;  %4771 = vrcp.f32 %v2477_v45  ;;  %4519 = vmatpush3.bf16.msra.mxu1 %v4711_v58  ;;  %v2140_v61 = vmul.f32 %v2108_v46, %v6262_v18  ;;  %v2047_v51 = vadd.f32 -0.00073499064, %v2015_v24  ;;  %v4702_v9 = vld [vmem:[%s6625_s6 + $0x3d8] sm:$0xff]  }
 0x29d   : > { %v1871_v40 = vadd.f32 2.7706815e-08, %v1839_v7  ;;  %v2287_v52 = vadd.f32 -0.00021337405, %v2255_v11  ;;  %4531 = vmatpush3.bf16.msra.mxu0 %v4692_v54  ;;  %v2062_v41 = vadd.f32 -0.00073499064, %v2030_v43  ;;  %4520 = vmatprep.subr.bf16.mxu1 %v4713_v47 }
 0x29e   : > { %v2125_v28 = vadd.f32 -0.0029546, %v2093_v19  ;;  %4532 = vmatprep.subr.bf16.mxu0 %v4694_v63  ;;  %v2046_v53 = vadd.f32 -0.00073499064, %v2014_v56  ;;  %v2462_v48 = vadd.f32 -0.014264739, %v2430_v22  ;;  %v2079_v57 = vmul.f32 %v2047_v51, %v6377_v60 }
 0x29f   : > { %v1903_v13 = vmul.f32 %v1871_v40, %v6517_v1  ;;  %v2319_v31 = vmul.f32 %v2287_v52, %v6517_v1  ;;  %v2173_v59 = vadd.f32 -0.016096033, %v2141_v20  ;;  %v2188_v2 = vadd.f32 -0.016096033, %v2156_v26  ;;  %v4704_v63 = vld [vmem:[%s6625_s6 + $0x398] sm:$0xff]  }
 0x2a0   : > { %v2478_v21 = vadd.f32 -0.014264739, %v2446_v27  ;;  %v2463_v50 = vadd.f32 -0.014264739, %v2431_v25  ;;  %v2157_v18 = vmul.f32 %v2125_v28, %v6440_v10  ;;  %4521 = vmatpush3.bf16.msra.mxu1 %v4715_v12  ;;  %v2172_v55 = vadd.f32 -0.016096033, %v2140_v61 }
 0x2a1   : > { %v1935_v16 = vadd.f32 -2.101024e-06, %v1903_v13  ;;  %v2351_v36 = vadd.f32 -0.001682827, %v2319_v31  ;;  %4533 = vmatpush3.bf16.msra.mxu0 %v4696_v17  ;;  %v4766_v4 = vpop.eup %4765  ;;  %v2094_v56 = vmul.f32 %v2062_v41, %v6433_v32  ;;  %4773 = vrcp.f32 %v2462_v48  ;;  %v4710_v28 = vld [vmem:[%s6625_s6 + $0x3c8] sm:$0xff]  }
 0x2a2   : > { %4534 = vmatprep.subr.bf16.mxu0 %v4698_v15  ;;  %v4768_v54 = vpop.eup %4767  ;;  %v2078_v24 = vmul.f32 %v2046_v53, %v6351_v0  ;;  %v2205_v43 = vmul.f32 %v6303_v33, %v2173_v59  ;;  %v2220_v14 = vmul.f32 %v6394_v3, %v2188_v2  ;;  %4775 = vrcp.f32 %v2478_v21  ;;  %v4706_v33 = vld [vmem:[%s6625_s6 + $0x3d0] sm:$0xff]   ;;  %v4712_v21 = vld [vmem:[%s6625_s6 + $0x388] sm:$0xff]  }
 0x2a3   : > { %v1967_v58 = vmul.f32 %v1935_v16, %v6517_v1  ;;  %v2383_v10 = vmul.f32 %v2351_v36, %v6517_v1  ;;  %v4770_v46 = vpop.eup %4769  ;;  %4777 = vrcp.f32 %v2463_v50  ;;  %v2189_v47 = vadd.f32 -0.016096033, %v2157_v18 }
 0x2a4   : > { %v2204_v7 = vmul.f32 %v6230_v6, %v2172_v55  ;;  %v2111_v11 = vadd.f32 -0.0029546, %v2079_v57  ;;  %v2540_v20 = vmul.f32 %v4768_v54, %v2220_v14  ;;  %v2126_v26 = vadd.f32 -0.0029546, %v2094_v56  ;;  %v4708_v6 = vld [vmem:[%s6625_s6 + $0x390] sm:$0xff]  }
 0x2a5   : > { %v1999_v22 = vadd.f32 -5.6925062e-05, %v1967_v58  ;;  %v2415_v45 = vadd.f32 -0.0073733293, %v2383_v10  ;;  %4535 = vmatpush3.bf16.msra.mxu0 %v4700_v34  ;;  %v2525_v3 = vmul.f32 %v4770_v46, %v2205_v43  ;;  %v2110_v25 = vadd.f32 -0.0029546, %v2078_v24 }
 0x2a6   : > { %4536 = vmatprep.subr.bf16.mxu0 %v4702_v9  ;;  %v2524_v17 = vmul.f32 %v4766_v4, %v2204_v7  ;;  %v2221_v40 = vmul.f32 %v6427_v29, %v2189_v47  ;;  %v2143_v61 = vmul.f32 %v2111_v11, %v6377_v60  ;;  %v2572_v51 = vadd.f32 1.0, %v2540_v20 }
 0x2a7   : > { %v2031_v27 = vmul.f32 %v1999_v22, %v6517_v1  ;;  %v2447_v19 = vmul.f32 %v2415_v45, %v6517_v1  ;;  %v2158_v41 = vmul.f32 %v2126_v26, %v6433_v32  ;;  %v2557_v53 = vadd.f32 1.0, %v2525_v3 }
 0x2a8   : > { %v2556_v13 = vadd.f32 1.0, %v2524_v17  ;;  %v2142_v31 = vmul.f32 %v2110_v25, %v6351_v0  ;;  %v1676_v34 = vmul.f32 0.5, %v6366_v49  ;;  %v1661_v60 = vmul.f32 0.5, %v6253_v42  ;;  %v4714_v0 = vld [vmem:[%s6625_s6 + $0x3c0] sm:$0xff]  }
 0x2a9   : > { %v2063_v52 = vadd.f32 -0.00073499064, %v2031_v27  ;;  %v2479_v15 = vadd.f32 -0.014264739, %v2447_v19  ;;  %4537 = vmatpush3.bf16.msra.mxu0 %v4704_v63  ;;  %v4772_v12 = vpop.eup %4771  ;;  %v1677_v59 = vmul.f32 0.5, %v6388_v44  ;;  %v1660_v50 = vmul.f32 0.5, %v6188_v23 }
 0x2aa   : > { %4538 = vmatprep.subr.bf16.mxu0 %v4706_v33  ;;  %v2541_v29 = vmul.f32 %v4772_v12, %v2221_v40  ;;  %v2604_v18 = vmul.f32 %v2572_v51, %v1676_v34  ;;  %v2190_v16 = vadd.f32 -0.016096033, %v2158_v41  ;;  %v2589_v49 = vmul.f32 %v2557_v53, %v1661_v60  ;;  %v4716_v23 = vld [vmem:[%s6625_s6 + $0x380] sm:$0xff]  }
 0x2ab   : > { %v2095_v48 = vmul.f32 %v2063_v52, %v6517_v1  ;;  %4779 = vrcp.f32 %v2479_v15  ;;  %v2175_v42 = vadd.f32 -0.016096033, %v2143_v61  ;;  %v2588_v55 = vmul.f32 %v2556_v13, %v1660_v50 }
 0x2ac   : > { %v2573_v32 = vadd.f32 1.0, %v2541_v29  ;;  %v2174_v57 = vadd.f32 -0.016096033, %v2142_v31  ;;  %v2222_v10 = vmul.f32 %v6425_v5, %v2190_v16  ;;  %v1678_v5 = vmul.f32 0.5, %v6384_v38  ;;  %v4234_v31 = vld [vmem:[%s6626_s7] ss:$0 sm:$0xff] }
 0x2ad   : > { %v2127_v2 = vadd.f32 -0.0029546, %v2095_v48  ;;  %4539 = vmatpush3.bf16.msra.mxu0 %v4708_v6  ;;  %v2620_v58 = vpack.c.bf16 %v2604_v18, %v2588_v55  ;;  %v2207_v46 = vmul.f32 %v6360_v35, %v2175_v42  ;;  %v1663_v35 = vmul.f32 0.5, %v6337_v39 }
 0x2ae   : > { %4540 = vmatprep.subr.bf16.mxu0 %v4710_v28  ;;  %v2605_v36 = vmul.f32 %v2573_v32, %v1677_v59  ;;  %v4774_v4 = vpop.eup %4773  ;;  %v1679_v26 = vmul.f32 0.5, %v6474_v62 }
 0x2af   : > { %v2159_v44 = vmul.f32 %v2127_v2, %v6517_v1  ;;  %v4776_v56 = vpop.eup %4775  ;;  %v2206_v1 = vmul.f32 %v6328_v8, %v2174_v57  ;;  %v1662_v8 = vmul.f32 0.5, %v6265_v30 }
 0x2b0   : > { %v2621_v9 = vpack.c.bf16 %v2605_v36, %v2589_v49  ;;  %v4778_v54 = vpop.eup %4777  ;;  %v2542_v43 = vmul.f32 %v4776_v56, %v2222_v10 }
 0x2b1   : > { %4541 = vmatpush3.bf16.msra.mxu0 %v4712_v21  ;;  %v2191_v24 = vadd.f32 -0.016096033, %v2159_v44  ;;  %v2527_v14 = vmul.f32 %v4778_v54, %v2207_v46  ;;  %v2526_v63 = vmul.f32 %v4774_v4, %v2206_v1 }
 0x2b2   : > { %4542 = vmatprep.subr.bf16.mxu0 %v4714_v0  ;;  %3933 = vmatprep.mubr.bf16.mxu1 %v2621_v9  ;;  %v2574_v45 = vadd.f32 1.0, %v2542_v43 }
 0x2b3   : > { %3934 = vmatmul.mubr.bf16.vlgmr.msra.gmra.mxu1 %v2620_v58  ;;  %v2223_v47 = vmul.f32 %v6507_v37, %v2191_v24  ;;  %v2559_v7 = vadd.f32 1.0, %v2527_v14  ;;  %v2558_v20 = vadd.f32 1.0, %v2526_v63 }
 0x2b4   : > { %v2606_v3 = vmul.f32 %v2574_v45, %v1678_v5 }
 0x2b5   : > { %4543 = vmatpush3.bf16.msra.mxu0 %v4716_v23  ;;  %v2591_v27 = vmul.f32 %v2559_v7, %v1663_v35  ;;  %v2590_v17 = vmul.f32 %v2558_v20, %v1662_v8 }
 0x2b7   : > { %v2622_v37 = vpack.c.bf16 %v2606_v3, %v2590_v17 }
 0x2b8   : > { %v4780_v22 = vpop.eup %4779 }
 0x2b9   : > { %v2543_v11 = vmul.f32 %v4780_v22, %v2223_v47 }
 0x2bb   : > { %v2575_v33 = vadd.f32 1.0, %v2543_v11 }
 0x2bd   : > { %v2607_v19 = vmul.f32 %v2575_v33, %v1679_v26 }
 0x2bf   : > { %v2623_v25 = vpack.c.bf16 %v2607_v19, %v2591_v27 }
 0x2c1   : > { %3974 = vmatprep.mubr.bf16.mxu0 %v2623_v25 }
 0x2c2   : > { %3975 = vmatmul.mubr.bf16.vlgmr.msra.gmra.mxu0 %v2622_v37 }
 0x2cd   : > { %v4390_v40 = vpop.f32.mrf.mxu1 }
 0x2cf   : > { %v4391_v52 = vpop.f32.mrf.mxu1 }
 0x2d0   : > { %v4392_v13 = vadd.f32 %v4391_v52, %v4390_v40 }
 0x2d1   : > { %v4393_v15 = vpop.f32.mrf.mxu1 }
 0x2d2   : > { %v3690_v59 = vadd.f32 %v4392_v13, %v4234_v31 }
 0x2d3   : > { %v4394_v6 = vpop.f32.mrf.mxu1 }
 0x2d4   : > { %v4395_v32 = vadd.f32 %v4394_v6, %v4393_v15 }
 0x2d6   : > { %v4412_v38 = vpop.f32.mrf.mxu0  ;;  %v3693_v42 = vadd.f32 %v4395_v32, %v4234_v31 }
 0x2d8   : > { %v4413_v39 = vpop.f32.mrf.mxu0 }
 0x2d9   : > { %v4414_v50 = vadd.f32 %v4413_v39, %v4412_v38 }
 0x2da   : > { %v4415_v62 = vpop.f32.mrf.mxu0 }
 0x2db   : > { %v3731_v49 = vadd.f32 %v4414_v50, %v3690_v59 }
 0x2dc   : > { %v4416_v41 = vpop.f32.mrf.mxu0 }
 0x2dd   : > { %v4417_v36 = vadd.f32 %v4416_v41, %v4415_v62 }
 0x2df   : > { %v3734_v56 = vadd.f32 %v4417_v36, %v3693_v42 }
 0x314   : > { %v4434_v12 = vpop.f32.mrf.mxu1 }
 0x315   : > { %v4456_v28 = vpop.f32.mrf.mxu0 }
 0x316   : > { %v4435_v61 = vpop.f32.mrf.mxu1 }
 0x317   : > { %v4457_v29 = vpop.f32.mrf.mxu0  ;;  %v4436_v18 = vadd.f32 %v4435_v61, %v4434_v12 }
 0x318   : > { %v4437_v51 = vpop.f32.mrf.mxu1  ;;  %v4458_v23 = vadd.f32 %v4457_v29, %v4456_v28 }
 0x319   : > { %v4459_v34 = vpop.f32.mrf.mxu0  ;;  %v3772_v44 = vadd.f32 %v4436_v18, %v3731_v49 }
 0x31a   : > { %v4438_v30 = vpop.f32.mrf.mxu1 }
 0x31b   : > { %v4460_v2 = vpop.f32.mrf.mxu0  ;;  %v4439_v4 = vadd.f32 %v4438_v30, %v4437_v51  ;;  %v3813_v54 = vadd.f32 %v4458_v23, %v3772_v44 }
 0x31c   : > { %v4461_v24 = vadd.f32 %v4460_v2, %v4459_v34 }
 0x31d   : > { %v3775_v58 = vadd.f32 %v4439_v4, %v3734_v56 }
 0x31f   : > { %v3816_v14 = vadd.f32 %v4461_v24, %v3775_v58 }
 0x343   : > { %v4478_v53 = vpop.f32.mrf.mxu1 }
 0x345   : > { %v4479_v48 = vpop.f32.mrf.mxu1 }
 0x346   : > { %v4480_v9 = vadd.f32 %v4479_v48, %v4478_v53 }
 0x347   : > { %v4481_v60 = vpop.f32.mrf.mxu1 }
 0x348   : > { %v3854_v1 = vadd.f32 %v4480_v9, %v3813_v54 }
 0x349   : > { %v4482_v21 = vpop.f32.mrf.mxu1 }
 0x34a   : > { %v4483_v43 = vadd.f32 %v4482_v21, %v4481_v60 }
 0x34c   : > { %v3857_v11 = vadd.f32 %v4483_v43, %v3816_v14 }
 0x358   : > { %v4500_v16 = vpop.f32.mrf.mxu0 }
 0x35a   : > { %v4501_v55 = vpop.f32.mrf.mxu0 }
 0x35b   : > { %v4502_v63 = vadd.f32 %v4501_v55, %v4500_v16 }
 0x35c   : > { %v4503_v10 = vpop.f32.mrf.mxu0 }
 0x35d   : > { %v3895_v7 = vadd.f32 %v4502_v63, %v3854_v1 }
 0x35e   : > { %v4504_v22 = vpop.f32.mrf.mxu0 }
 0x35f   : > { %v4505_v5 = vadd.f32 %v4504_v22, %v4503_v10 }
 0x361   : > { %v3898_v8 = vadd.f32 %v4505_v5, %v3857_v11 }
 0x373   : > { %v4522_v0 = vpop.f32.mrf.mxu1 }
 0x375   : > { %v4523_v57 = vpop.f32.mrf.mxu1 }
 0x376   : > { %v4524_v47 = vadd.f32 %v4523_v57, %v4522_v0 }
 0x377   : > { %v4525_v46 = vpop.f32.mrf.mxu1 }
 0x378   : > { %v3936_v35 = vadd.f32 %v4524_v47, %v3895_v7 }
 0x379   : > { %v4526_v45 = vpop.f32.mrf.mxu1 }
 0x37a   : > { %v4527_v26 = vadd.f32 %v4526_v45, %v4525_v46 }
 0x37c   : > { %v3939_v17 = vadd.f32 %v4527_v26, %v3898_v8 }
 0x382   : > { %v4544_v20 = vpop.f32.mrf.mxu0 }
 0x384   : > { %v4545_v33 = vpop.f32.mrf.mxu0 }
 0x385   : > { %v4546_v3 = vadd.f32 %v4545_v33, %v4544_v20 }
 0x386   : > { %v4547_v27 = vpop.f32.mrf.mxu0 }
 0x387   : > { %v3977_v19 = vadd.f32 %v4546_v3, %v3936_v35 }
 0x388   : > { %v4548_v25 = vpop.f32.mrf.mxu0 }
 0x389   : > { %3984 = vst.msk [vmem:[%s329_s14] sm:$0xff] %vm3983_vm1, %v3977_v19  ;;  %v4549_v37 = vadd.f32 %v4548_v25, %v4547_v27 }
 0x38b   : > { %v3980_v40 = vadd.f32 %v4549_v37, %v3939_v17 }
 0x38d   : > { %3985 = vst.msk [vmem:[%s329_s14 + $0x8] sm:$0xff] %vm3983_vm1, %v3980_v40 }
 0x38e PF: > { %s18_s27 = sadd.s32 1, %s4788_s27  }
 0x38f   : > { %p15_p4 = scmp.ge.s32.totalorder %s18_s27, 4  }
 0x391   :  { %17 = sbr.rel (!%p15_p4) target bundleno = 1 (0x1), region = 85 }

</bundles_post_ra>
